<compile_context>
chip_gen: v7x
topology: tpu7x:2x2x1
jax: 0.10.0
libtpu: 0.0.40
codegen_flags: <defaults>
</compile_context>

<pallas_src>
import functools

import numpy as np

import jax
import jax.numpy as jnp
from jax.experimental import pallas as pl
from jax.experimental.pallas import tpu as pltpu

EPS = 1e-5                       # nn.BatchNorm2d default eps
ACT_DTYPE = jnp.bfloat16         # MXU operand dtype (stats / BN epilogue in f32)
VMEM_LIMIT = 32 * 1024 * 1024    # leaves headroom even on v7x (64 MiB VMEM)


# ---------------------------------------------------------------------------
# The single fused kernel: whole CAM forward on resident VMEM data.
# Activation layout: (C, L) with L = N*H*W on lanes; flat = img*H*W + r*W + c.
# ---------------------------------------------------------------------------
def _cam_kernel(rix_ref, cix_ref, lo_ref, hi_ref,
                w1_ref, g1_ref, b1_ref,
                wd1_ref, gd1_ref, bd1_ref,
                wd2_ref, gd2_ref, bd2_ref,
                wd3_ref, gd3_ref, bd3_ref,
                wd4_ref, gd4_ref, bd4_ref,
                w2_ref, g2_ref, b2_ref,
                wf_ref, gf_ref, bf_ref,
                out_ref, *, n, h, w):
    L = n * h * w
    row = rix_ref[...]                     # (1, L) int32: row within image
    col = cix_ref[...]                     # (1, L) int32: col within image

    def bn_relu(y, g_ref, b_ref, count, stat_mask=None):
        # Train-mode BatchNorm2d (biased variance, two-pass) + ReLU, fused.
        # `stat_mask` restricts statistics to valid positions (final conv).
        inv_count = 1.0 / count
        ym = y if stat_mask is None else y * stat_mask
        mean = jnp.sum(ym, axis=1, keepdims=True) * inv_count
        cen = y - mean
        cm = cen if stat_mask is None else cen * stat_mask
        var = jnp.sum(cm * cm, axis=1, keepdims=True) * inv_count
        inv = jax.lax.rsqrt(var + EPS)                     # EUP slot
        return jnp.maximum(cen * (g_ref[...] * inv) + b_ref[...], 0.0)

    def conv3x3(x_f32, wim_ref, dil):
        # Zero-padded 3x3 dilated conv on the flattened (Cin, L) layout.
        # Each tap = lane roll of the flattened image + border mask; the mask
        # also zeroes the roll's cross-image wrap.  ONE MXU matmul with the
        # pre-laid-out (Cout, 9*Cin) im2col weight.
        taps = []
        for kh in range(3):
            for kw in range(3):
                dr, dc = (kh - 1) * dil, (kw - 1) * dil
                shift = (-(dr * w + dc)) % L
                t = pltpu.roll(x_f32, shift=shift, axis=1) if shift else x_f32
                conds = []
                if dr < 0:
                    conds.append(row >= -dr)
                elif dr > 0:
                    conds.append(row < h - dr)
                if dc < 0:
                    conds.append(col >= -dc)
                elif dc > 0:
                    conds.append(col < w - dc)
                if conds:
                    valid = conds[0]
                    for extra in conds[1:]:
                        valid = jnp.logical_and(valid, extra)
                    t = t * valid.astype(jnp.float32)
                taps.append(t)
        patches = jnp.concatenate(taps, axis=0).astype(ACT_DTYPE)   # (9*Cin, L)
        return jnp.dot(wim_ref[...], patches, preferred_element_type=jnp.float32)

    count_full = float(L)

    # ---- Bcnn 1x1 #1: torch.cat((lo, hi), dim=1) done in-kernel; the conv
    # bias is exactly cancelled by train-mode BN mean subtraction. -----------
    xin = jnp.concatenate([lo_ref[...], hi_ref[...]], axis=0)       # (12, L) bf16
    y = jnp.dot(w1_ref[...], xin, preferred_element_type=jnp.float32)
    x = bn_relu(y, g1_ref, b1_ref, count_full)                      # (Cout, L) f32

    cout = x.shape[0]
    c4 = cout // 4
    xc = [x[i * c4:(i + 1) * c4] for i in range(4)]                 # torch.chunk

    # ---- Dilated branches (inter-branch adds fused, all resident). ---------
    x1 = bn_relu(conv3x3(xc[0] + xc[1], wd1_ref, 1), gd1_ref, bd1_ref, count_full)
    x2 = bn_relu(conv3x3(x1 + xc[1] + xc[2], wd2_ref, 2), gd2_ref, bd2_ref, count_full)
    x3 = bn_relu(conv3x3(x2 + xc[2] + xc[3], wd3_ref, 3), gd3_ref, bd3_ref, count_full)
    x4 = bn_relu(conv3x3(x3 + xc[3], wd4_ref, 4), gd4_ref, bd4_ref, count_full)

    # ---- Bcnn 1x1 #2: torch.cat((x1..x4), dim=1) done in-kernel. -----------
    xin2 = jnp.concatenate([x1, x2, x3, x4], axis=0).astype(ACT_DTYPE)
    y2 = jnp.dot(w2_ref[...], xin2, preferred_element_type=jnp.float32)
    xm = bn_relu(y2, g2_ref, b2_ref, count_full)                    # (Cout, L) f32

    # ---- Final Bcnn 3x3, padding=0: computed as a "same" conv; interior
    # positions equal the valid conv, so BN stats use only the interior and
    # the wrapper slices the (H-2, W-2) window out of the lane-dense output.
    yf = conv3x3(xm, wf_ref, 1)
    interior = ((row >= 1) & (row <= h - 2) &
                (col >= 1) & (col <= w - 2)).astype(jnp.float32)
    count_valid = float(n * (h - 2) * (w - 2))
    out = bn_relu(yf, gf_ref, bf_ref, count_valid, stat_mask=interior)
    out_ref[...] = out.astype(out_ref.dtype)


# ---------------------------------------------------------------------------
# Forward wrapper (glue: bilinear resize, channel-major layout, final slice)
# ---------------------------------------------------------------------------
def cam_forward(lo_f, hi_f, pp):
    lo = lo_f.astype(jnp.float32)
    hi = hi_f.astype(jnp.float32)
    n, c_lo, h, w = lo.shape
    c_hi = hi.shape[1]
    if hi.shape[2:] != (h, w):
        # F.interpolate(mode='bilinear', align_corners=False) equivalent (upsampling)
        hi = jax.image.resize(hi, (n, c_hi, h, w), method="bilinear")

    L = n * h * w
    cout = pp["w1"].shape[0]
    c4 = cout // 4

    def to_cs(a):   # (N, C, H, W) -> channel-major, lane-dense (C, N*H*W)
        return jnp.transpose(a, (1, 0, 2, 3)).reshape(a.shape[1], L).astype(ACT_DTYPE)

    # Per-position row/col indices: compile-time constants (no in-kernel int div).
    sp = np.arange(L, dtype=np.int32) % (h * w)
    rix = jnp.asarray((sp // w).reshape(1, L))
    cix = jnp.asarray((sp % w).reshape(1, L))

    args = (rix, cix, to_cs(lo), to_cs(hi),
            pp["w1"], pp["g1"], pp["b1"],
            pp["wd1"], pp["gd1"], pp["bd1"],
            pp["wd2"], pp["gd2"], pp["bd2"],
            pp["wd3"], pp["gd3"], pp["bd3"],
            pp["wd4"], pp["gd4"], pp["bd4"],
            pp["w2"], pp["g2"], pp["b2"],
            pp["wf"], pp["gf"], pp["bf"])

    flops = 2 * L * ((c_lo + c_hi) * cout + 4 * 9 * c4 * c4
                     + cout * cout + 9 * cout * cout)
    bytes_accessed = ((c_lo + c_hi) * L * 2 + cout * L * 4 + 2 * L * 4
                      + sum(int(a.size) * 2 for a in args[4:]))

    out_flat = pl.pallas_call(
        functools.partial(_cam_kernel, n=n, h=h, w=w),
        out_shape=jax.ShapeDtypeStruct((cout, L), jnp.float32),
        compiler_params=pltpu.CompilerParams(vmem_limit_bytes=VMEM_LIMIT),
        cost_estimate=pl.CostEstimate(flops=flops,
                                      transcendentals=3 * cout + 4 * c4,
                                      bytes_accessed=bytes_accessed),
    )(*args)

    # (Cout, N*H*W) -> (N, Cout, H, W) -> valid (padding=0) window
    out = out_flat.reshape(cout, n, h, w).transpose(1, 0, 2, 3)
    return out[:, :, 1:h - 1, 1:w - 1]


# ---------------------------------------------------------------------------
# Parameters: PyTorch-layout init + one-time layout/cast (outside jit)
# ---------------------------------------------------------------------------
def init_params(key, hchannels, out_channels):
    oc4 = out_channels // 4
    keys = iter(jax.random.split(key, 32))

    def w1x1(cin, cout):
        return 0.1 * jax.random.normal(next(keys), (cout, cin), jnp.float32)

    def w3x3(cin, cout):
        return 0.1 * jax.random.normal(next(keys), (cout, cin, 3, 3), jnp.float32)

    def bn(c):
        g = 1.0 + 0.1 * jax.random.normal(next(keys), (c,), jnp.float32)
        b = 0.1 * jax.random.normal(next(keys), (c,), jnp.float32)
        return g, b

    p = {}
    # NOTE: the 1x1 conv biases (bias=True in PyTorch) are omitted: exactly
    # cancelled by the train-mode BatchNorm mean subtraction.
    p["w1"] = w1x1(hchannels + out_channels, out_channels)
    p["g1"], p["be1"] = bn(out_channels)
    for i in range(1, 5):
        p[f"wd{i}"] = w3x3(oc4, oc4)
        p[f"gd{i}"], p[f"bed{i}"] = bn(oc4)
    p["w2"] = w1x1(out_channels, out_channels)
    p["g2"], p["be2"] = bn(out_channels)
    p["wf"] = w3x3(out_channels, out_channels)
    p["gf"], p["bef"] = bn(out_channels)
    return p


def prepare_params(p):
    """One-time weight layout & cast (hoisted out of the forward):
    bf16 MXU operands, im2col (Cout, 9*Cin) 3x3 weights (tap-major, cin-minor
    K ordering matching the in-kernel patch build), (C, 1) f32 BN params."""
    def im2col_w(wt):   # (Cout, Cin, 3, 3) -> (Cout, 9*Cin)
        co, ci = wt.shape[0], wt.shape[1]
        return jnp.transpose(wt, (0, 2, 3, 1)).reshape(co, 9 * ci).astype(ACT_DTYPE)

    def colvec(v):
        return v.reshape(-1, 1).astype(jnp.float32)

    pp = {
        "w1": p["w1"].astype(ACT_DTYPE),
        "g1": colvec(p["g1"]), "b1": colvec(p["be1"]),
        "w2": p["w2"].astype(ACT_DTYPE),
        "g2": colvec(p["g2"]), "b2": colvec(p["be2"]),
        "wf": im2col_w(p["wf"]),
        "gf": colvec(p["gf"]), "bf": colvec(p["bef"]),
    }
    for i in range(1, 5):
        pp[f"wd{i}"] = im2col_w(p[f"wd{i}"])
        pp[f"gd{i}"] = colvec(p[f"gd{i}"])
        pp[f"bd{i}"] = colvec(p[f"bed{i}"])
    return pp


if __name__ == "__main__":
    hchannels, out_channels = 4, 8
    N, H, W = 2, 16, 16

    key = jax.random.PRNGKey(0)
    k_lo, k_hi, k_p = jax.random.split(key, 3)
    lo_f = jax.random.normal(k_lo, (N, hchannels, H, W), jnp.float32)               # NCHW
    hi_f = jax.random.normal(k_hi, (N, out_channels, H // 2, W // 2), jnp.float32)  # triggers bilinear resize

    params = init_params(k_p, hchannels, out_channels)
    pp = prepare_params(params)        # one-time layout/cast, outside jit

    out = jax.jit(cam_forward)(lo_f, hi_f, pp)
    out = jax.block_until_ready(out)
    assert out.shape == (N, out_channels, H - 2, W - 2), out.shape
    assert bool(jnp.all(jnp.isfinite(out)))
    assert bool(jnp.all(out >= 0.0))   # ReLU epilogue
    print("KERNEL_OK")
</pallas_src>

<mosaic_0001>
module attributes {stable_mosaic.version = 11 : i64} {
  func.func @_cam_kernel(%arg0: memref<1x512xi32, #tpu.memory_space<vmem>>, %arg1: memref<1x512xi32, #tpu.memory_space<vmem>>, %arg2: memref<4x512xbf16, #tpu.memory_space<vmem>>, %arg3: memref<8x512xbf16, #tpu.memory_space<vmem>>, %arg4: memref<8x12xbf16, #tpu.memory_space<vmem>>, %arg5: memref<8x1xf32, #tpu.memory_space<vmem>>, %arg6: memref<8x1xf32, #tpu.memory_space<vmem>>, %arg7: memref<2x18xbf16, #tpu.memory_space<vmem>>, %arg8: memref<2x1xf32, #tpu.memory_space<vmem>>, %arg9: memref<2x1xf32, #tpu.memory_space<vmem>>, %arg10: memref<2x18xbf16, #tpu.memory_space<vmem>>, %arg11: memref<2x1xf32, #tpu.memory_space<vmem>>, %arg12: memref<2x1xf32, #tpu.memory_space<vmem>>, %arg13: memref<2x18xbf16, #tpu.memory_space<vmem>>, %arg14: memref<2x1xf32, #tpu.memory_space<vmem>>, %arg15: memref<2x1xf32, #tpu.memory_space<vmem>>, %arg16: memref<2x18xbf16, #tpu.memory_space<vmem>>, %arg17: memref<2x1xf32, #tpu.memory_space<vmem>>, %arg18: memref<2x1xf32, #tpu.memory_space<vmem>>, %arg19: memref<8x8xbf16, #tpu.memory_space<vmem>>, %arg20: memref<8x1xf32, #tpu.memory_space<vmem>>, %arg21: memref<8x1xf32, #tpu.memory_space<vmem>>, %arg22: memref<8x72xbf16, #tpu.memory_space<vmem>>, %arg23: memref<8x1xf32, #tpu.memory_space<vmem>>, %arg24: memref<8x1xf32, #tpu.memory_space<vmem>>, %arg25: memref<8x512xf32, #tpu.memory_space<vmem>>) attributes {dimension_semantics = [], scalar_prefetch = 0 : i64, scratch_operands = 0 : i64, tpu.core_type = #tpu.core_type<tc>} {
    %c0 = arith.constant 0 : index
    %c0_0 = arith.constant 0 : index
    %0 = vector.load %arg0[%c0, %c0_0] : memref<1x512xi32, #tpu.memory_space<vmem>>, vector<1x512xi32>
    %c0_1 = arith.constant 0 : index
    %c0_2 = arith.constant 0 : index
    %1 = vector.load %arg1[%c0_1, %c0_2] : memref<1x512xi32, #tpu.memory_space<vmem>>, vector<1x512xi32>
    %c0_3 = arith.constant 0 : index
    %c0_4 = arith.constant 0 : index
    %2 = vector.load %arg2[%c0_3, %c0_4] : memref<4x512xbf16, #tpu.memory_space<vmem>>, vector<4x512xbf16>
    %c0_5 = arith.constant 0 : index
    %c0_6 = arith.constant 0 : index
    %3 = vector.load %arg3[%c0_5, %c0_6] : memref<8x512xbf16, #tpu.memory_space<vmem>>, vector<8x512xbf16>
    %4 = tpu.concatenate %2, %3 in 0 : vector<4x512xbf16>, vector<8x512xbf16> -> vector<12x512xbf16>
    %c0_7 = arith.constant 0 : index
    %c0_8 = arith.constant 0 : index
    %5 = vector.load %arg4[%c0_7, %c0_8] : memref<8x12xbf16, #tpu.memory_space<vmem>>, vector<8x12xbf16>
    %cst = arith.constant dense<0.000000e+00> : vector<8x512xf32>
    %6 = tpu.matmul %5, %4, %cst {dimension_numbers = #tpu.dot_dimension_numbers<[1], [0], [0], [1], [0, 0, 1, 1], [], []>} : vector<8x12xbf16>, vector<12x512xbf16>, vector<8x512xf32> -> vector<8x512xf32>
    %cst_9 = arith.constant dense<0.000000e+00> : vector<8xf32>
    %7 = vector.multi_reduction <add>, %6, %cst_9 [1] : vector<8x512xf32> to vector<8xf32>
    %8 = vector.shape_cast %7 : vector<8xf32> to vector<8x1xf32>
    %cst_10 = arith.constant 0.001953125 : f32
    %9 = vector.broadcast %cst_10 : f32 to vector<8x1xf32>
    %10 = arith.mulf %8, %9 : vector<8x1xf32>
    %11 = vector.broadcast %10 : vector<8x1xf32> to vector<8x512xf32>
    %12 = arith.subf %6, %11 : vector<8x512xf32>
    %13 = arith.mulf %12, %12 : vector<8x512xf32>
    %cst_11 = arith.constant dense<0.000000e+00> : vector<8xf32>
    %14 = vector.multi_reduction <add>, %13, %cst_11 [1] : vector<8x512xf32> to vector<8xf32>
    %15 = vector.shape_cast %14 : vector<8xf32> to vector<8x1xf32>
    %cst_12 = arith.constant 0.001953125 : f32
    %16 = vector.broadcast %cst_12 : f32 to vector<8x1xf32>
    %17 = arith.mulf %15, %16 : vector<8x1xf32>
    %cst_13 = arith.constant 9.99999974E-6 : f32
    %18 = vector.broadcast %cst_13 : f32 to vector<8x1xf32>
    %19 = arith.addf %17, %18 : vector<8x1xf32>
    %20 = math.rsqrt %19 : vector<8x1xf32>
    %c0_14 = arith.constant 0 : index
    %c0_15 = arith.constant 0 : index
    %21 = vector.load %arg5[%c0_14, %c0_15] : memref<8x1xf32, #tpu.memory_space<vmem>>, vector<8x1xf32>
    %22 = arith.mulf %21, %20 : vector<8x1xf32>
    %23 = vector.broadcast %22 : vector<8x1xf32> to vector<8x512xf32>
    %24 = arith.mulf %12, %23 : vector<8x512xf32>
    %c0_16 = arith.constant 0 : index
    %c0_17 = arith.constant 0 : index
    %25 = vector.load %arg6[%c0_16, %c0_17] : memref<8x1xf32, #tpu.memory_space<vmem>>, vector<8x1xf32>
    %26 = vector.broadcast %25 : vector<8x1xf32> to vector<8x512xf32>
    %27 = arith.addf %24, %26 : vector<8x512xf32>
    %cst_18 = arith.constant 0.000000e+00 : f32
    %28 = vector.broadcast %cst_18 : f32 to vector<8x512xf32>
    %29 = arith.maximumf %27, %28 : vector<8x512xf32>
    %30 = vector.extract_strided_slice %29 {offsets = [0, 0], sizes = [2, 512], strides = [1, 1]} : vector<8x512xf32> to vector<2x512xf32>
    %31 = vector.extract_strided_slice %29 {offsets = [2, 0], sizes = [2, 512], strides = [1, 1]} : vector<8x512xf32> to vector<2x512xf32>
    %32 = vector.extract_strided_slice %29 {offsets = [4, 0], sizes = [2, 512], strides = [1, 1]} : vector<8x512xf32> to vector<2x512xf32>
    %33 = vector.extract_strided_slice %29 {offsets = [6, 0], sizes = [2, 512], strides = [1, 1]} : vector<8x512xf32> to vector<2x512xf32>
    %34 = arith.addf %30, %31 : vector<2x512xf32>
    %c17_i32 = arith.constant 17 : i32
    %35 = tpu.dynamic_rotate %34 by %c17_i32 dim 1 : vector<2x512xf32>, i32 -> vector<2x512xf32>
    %c1_i32 = arith.constant 1 : i32
    %36 = vector.broadcast %c1_i32 : i32 to vector<1x512xi32>
    %37 = arith.cmpi sge, %0, %36 : vector<1x512xi32>
    %c1_i32_19 = arith.constant 1 : i32
    %38 = vector.broadcast %c1_i32_19 : i32 to vector<1x512xi32>
    %39 = arith.cmpi sge, %1, %38 : vector<1x512xi32>
    %40 = arith.andi %37, %39 : vector<1x512xi1>
    %41 = arith.extui %40 : vector<1x512xi1> to vector<1x512xi32>
    %42 = arith.sitofp %41 : vector<1x512xi32> to vector<1x512xf32>
    %43 = vector.broadcast %42 : vector<1x512xf32> to vector<2x512xf32>
    %44 = arith.mulf %35, %43 : vector<2x512xf32>
    %c16_i32 = arith.constant 16 : i32
    %45 = tpu.dynamic_rotate %34 by %c16_i32 dim 1 : vector<2x512xf32>, i32 -> vector<2x512xf32>
    %c1_i32_20 = arith.constant 1 : i32
    %46 = vector.broadcast %c1_i32_20 : i32 to vector<1x512xi32>
    %47 = arith.cmpi sge, %0, %46 : vector<1x512xi32>
    %48 = arith.extui %47 : vector<1x512xi1> to vector<1x512xi32>
    %49 = arith.sitofp %48 : vector<1x512xi32> to vector<1x512xf32>
    %50 = vector.broadcast %49 : vector<1x512xf32> to vector<2x512xf32>
    %51 = arith.mulf %45, %50 : vector<2x512xf32>
    %c15_i32 = arith.constant 15 : i32
    %52 = tpu.dynamic_rotate %34 by %c15_i32 dim 1 : vector<2x512xf32>, i32 -> vector<2x512xf32>
    %c1_i32_21 = arith.constant 1 : i32
    %53 = vector.broadcast %c1_i32_21 : i32 to vector<1x512xi32>
    %54 = arith.cmpi sge, %0, %53 : vector<1x512xi32>
    %c15_i32_22 = arith.constant 15 : i32
    %55 = vector.broadcast %c15_i32_22 : i32 to vector<1x512xi32>
    %56 = arith.cmpi slt, %1, %55 : vector<1x512xi32>
    %57 = arith.andi %54, %56 : vector<1x512xi1>
    %58 = arith.extui %57 : vector<1x512xi1> to vector<1x512xi32>
    %59 = arith.sitofp %58 : vector<1x512xi32> to vector<1x512xf32>
    %60 = vector.broadcast %59 : vector<1x512xf32> to vector<2x512xf32>
    %61 = arith.mulf %52, %60 : vector<2x512xf32>
    %c1_i32_23 = arith.constant 1 : i32
    %62 = tpu.dynamic_rotate %34 by %c1_i32_23 dim 1 : vector<2x512xf32>, i32 -> vector<2x512xf32>
    %c1_i32_24 = arith.constant 1 : i32
    %63 = vector.broadcast %c1_i32_24 : i32 to vector<1x512xi32>
    %64 = arith.cmpi sge, %1, %63 : vector<1x512xi32>
    %65 = arith.extui %64 : vector<1x512xi1> to vector<1x512xi32>
    %66 = arith.sitofp %65 : vector<1x512xi32> to vector<1x512xf32>
    %67 = vector.broadcast %66 : vector<1x512xf32> to vector<2x512xf32>
    %68 = arith.mulf %62, %67 : vector<2x512xf32>
    %c511_i32 = arith.constant 511 : i32
    %69 = tpu.dynamic_rotate %34 by %c511_i32 dim 1 : vector<2x512xf32>, i32 -> vector<2x512xf32>
    %c15_i32_25 = arith.constant 15 : i32
    %70 = vector.broadcast %c15_i32_25 : i32 to vector<1x512xi32>
    %71 = arith.cmpi slt, %1, %70 : vector<1x512xi32>
    %72 = arith.extui %71 : vector<1x512xi1> to vector<1x512xi32>
    %73 = arith.sitofp %72 : vector<1x512xi32> to vector<1x512xf32>
    %74 = vector.broadcast %73 : vector<1x512xf32> to vector<2x512xf32>
    %75 = arith.mulf %69, %74 : vector<2x512xf32>
    %c497_i32 = arith.constant 497 : i32
    %76 = tpu.dynamic_rotate %34 by %c497_i32 dim 1 : vector<2x512xf32>, i32 -> vector<2x512xf32>
    %c15_i32_26 = arith.constant 15 : i32
    %77 = vector.broadcast %c15_i32_26 : i32 to vector<1x512xi32>
    %78 = arith.cmpi slt, %0, %77 : vector<1x512xi32>
    %c1_i32_27 = arith.constant 1 : i32
    %79 = vector.broadcast %c1_i32_27 : i32 to vector<1x512xi32>
    %80 = arith.cmpi sge, %1, %79 : vector<1x512xi32>
    %81 = arith.andi %78, %80 : vector<1x512xi1>
    %82 = arith.extui %81 : vector<1x512xi1> to vector<1x512xi32>
    %83 = arith.sitofp %82 : vector<1x512xi32> to vector<1x512xf32>
    %84 = vector.broadcast %83 : vector<1x512xf32> to vector<2x512xf32>
    %85 = arith.mulf %76, %84 : vector<2x512xf32>
    %c496_i32 = arith.constant 496 : i32
    %86 = tpu.dynamic_rotate %34 by %c496_i32 dim 1 : vector<2x512xf32>, i32 -> vector<2x512xf32>
    %c15_i32_28 = arith.constant 15 : i32
    %87 = vector.broadcast %c15_i32_28 : i32 to vector<1x512xi32>
    %88 = arith.cmpi slt, %0, %87 : vector<1x512xi32>
    %89 = arith.extui %88 : vector<1x512xi1> to vector<1x512xi32>
    %90 = arith.sitofp %89 : vector<1x512xi32> to vector<1x512xf32>
    %91 = vector.broadcast %90 : vector<1x512xf32> to vector<2x512xf32>
    %92 = arith.mulf %86, %91 : vector<2x512xf32>
    %c495_i32 = arith.constant 495 : i32
    %93 = tpu.dynamic_rotate %34 by %c495_i32 dim 1 : vector<2x512xf32>, i32 -> vector<2x512xf32>
    %c15_i32_29 = arith.constant 15 : i32
    %94 = vector.broadcast %c15_i32_29 : i32 to vector<1x512xi32>
    %95 = arith.cmpi slt, %0, %94 : vector<1x512xi32>
    %c15_i32_30 = arith.constant 15 : i32
    %96 = vector.broadcast %c15_i32_30 : i32 to vector<1x512xi32>
    %97 = arith.cmpi slt, %1, %96 : vector<1x512xi32>
    %98 = arith.andi %95, %97 : vector<1x512xi1>
    %99 = arith.extui %98 : vector<1x512xi1> to vector<1x512xi32>
    %100 = arith.sitofp %99 : vector<1x512xi32> to vector<1x512xf32>
    %101 = vector.broadcast %100 : vector<1x512xf32> to vector<2x512xf32>
    %102 = arith.mulf %93, %101 : vector<2x512xf32>
    %103 = tpu.concatenate %44, %51, %61, %68, %34, %75, %85, %92, %102 in 0 : vector<2x512xf32>, vector<2x512xf32>, vector<2x512xf32>, vector<2x512xf32>, vector<2x512xf32>, vector<2x512xf32>, vector<2x512xf32>, vector<2x512xf32>, vector<2x512xf32> -> vector<18x512xf32>
    %104 = arith.truncf %103 : vector<18x512xf32> to vector<18x512xbf16>
    %c0_31 = arith.constant 0 : index
    %c0_32 = arith.constant 0 : index
    %105 = vector.load %arg7[%c0_31, %c0_32] : memref<2x18xbf16, #tpu.memory_space<vmem>>, vector<2x18xbf16>
    %cst_33 = arith.constant dense<0.000000e+00> : vector<2x512xf32>
    %106 = tpu.matmul %105, %104, %cst_33 {dimension_numbers = #tpu.dot_dimension_numbers<[1], [0], [0], [1], [0, 0, 1, 1], [], []>} : vector<2x18xbf16>, vector<18x512xbf16>, vector<2x512xf32> -> vector<2x512xf32>
    %cst_34 = arith.constant dense<0.000000e+00> : vector<2xf32>
    %107 = vector.multi_reduction <add>, %106, %cst_34 [1] : vector<2x512xf32> to vector<2xf32>
    %108 = vector.shape_cast %107 : vector<2xf32> to vector<2x1xf32>
    %cst_35 = arith.constant 0.001953125 : f32
    %109 = vector.broadcast %cst_35 : f32 to vector<2x1xf32>
    %110 = arith.mulf %108, %109 : vector<2x1xf32>
    %111 = vector.broadcast %110 : vector<2x1xf32> to vector<2x512xf32>
    %112 = arith.subf %106, %111 : vector<2x512xf32>
    %113 = arith.mulf %112, %112 : vector<2x512xf32>
    %cst_36 = arith.constant dense<0.000000e+00> : vector<2xf32>
    %114 = vector.multi_reduction <add>, %113, %cst_36 [1] : vector<2x512xf32> to vector<2xf32>
    %115 = vector.shape_cast %114 : vector<2xf32> to vector<2x1xf32>
    %cst_37 = arith.constant 0.001953125 : f32
    %116 = vector.broadcast %cst_37 : f32 to vector<2x1xf32>
    %117 = arith.mulf %115, %116 : vector<2x1xf32>
    %cst_38 = arith.constant 9.99999974E-6 : f32
    %118 = vector.broadcast %cst_38 : f32 to vector<2x1xf32>
    %119 = arith.addf %117, %118 : vector<2x1xf32>
    %120 = math.rsqrt %119 : vector<2x1xf32>
    %c0_39 = arith.constant 0 : index
    %c0_40 = arith.constant 0 : index
    %121 = vector.load %arg8[%c0_39, %c0_40] : memref<2x1xf32, #tpu.memory_space<vmem>>, vector<2x1xf32>
    %122 = arith.mulf %121, %120 : vector<2x1xf32>
    %123 = vector.broadcast %122 : vector<2x1xf32> to vector<2x512xf32>
    %124 = arith.mulf %112, %123 : vector<2x512xf32>
    %c0_41 = arith.constant 0 : index
    %c0_42 = arith.constant 0 : index
    %125 = vector.load %arg9[%c0_41, %c0_42] : memref<2x1xf32, #tpu.memory_space<vmem>>, vector<2x1xf32>
    %126 = vector.broadcast %125 : vector<2x1xf32> to vector<2x512xf32>
    %127 = arith.addf %124, %126 : vector<2x512xf32>
    %cst_43 = arith.constant 0.000000e+00 : f32
    %128 = vector.broadcast %cst_43 : f32 to vector<2x512xf32>
    %129 = arith.maximumf %127, %128 : vector<2x512xf32>
    %130 = arith.addf %129, %31 : vector<2x512xf32>
    %131 = arith.addf %130, %32 : vector<2x512xf32>
    %c34_i32 = arith.constant 34 : i32
    %132 = tpu.dynamic_rotate %131 by %c34_i32 dim 1 : vector<2x512xf32>, i32 -> vector<2x512xf32>
    %c2_i32 = arith.constant 2 : i32
    %133 = vector.broadcast %c2_i32 : i32 to vector<1x512xi32>
    %134 = arith.cmpi sge, %0, %133 : vector<1x512xi32>
    %c2_i32_44 = arith.constant 2 : i32
    %135 = vector.broadcast %c2_i32_44 : i32 to vector<1x512xi32>
    %136 = arith.cmpi sge, %1, %135 : vector<1x512xi32>
    %137 = arith.andi %134, %136 : vector<1x512xi1>
    %138 = arith.extui %137 : vector<1x512xi1> to vector<1x512xi32>
    %139 = arith.sitofp %138 : vector<1x512xi32> to vector<1x512xf32>
    %140 = vector.broadcast %139 : vector<1x512xf32> to vector<2x512xf32>
    %141 = arith.mulf %132, %140 : vector<2x512xf32>
    %c32_i32 = arith.constant 32 : i32
    %142 = tpu.dynamic_rotate %131 by %c32_i32 dim 1 : vector<2x512xf32>, i32 -> vector<2x512xf32>
    %c2_i32_45 = arith.constant 2 : i32
    %143 = vector.broadcast %c2_i32_45 : i32 to vector<1x512xi32>
    %144 = arith.cmpi sge, %0, %143 : vector<1x512xi32>
    %145 = arith.extui %144 : vector<1x512xi1> to vector<1x512xi32>
    %146 = arith.sitofp %145 : vector<1x512xi32> to vector<1x512xf32>
    %147 = vector.broadcast %146 : vector<1x512xf32> to vector<2x512xf32>
    %148 = arith.mulf %142, %147 : vector<2x512xf32>
    %c30_i32 = arith.constant 30 : i32
    %149 = tpu.dynamic_rotate %131 by %c30_i32 dim 1 : vector<2x512xf32>, i32 -> vector<2x512xf32>
    %c2_i32_46 = arith.constant 2 : i32
    %150 = vector.broadcast %c2_i32_46 : i32 to vector<1x512xi32>
    %151 = arith.cmpi sge, %0, %150 : vector<1x512xi32>
    %c14_i32 = arith.constant 14 : i32
    %152 = vector.broadcast %c14_i32 : i32 to vector<1x512xi32>
    %153 = arith.cmpi slt, %1, %152 : vector<1x512xi32>
    %154 = arith.andi %151, %153 : vector<1x512xi1>
    %155 = arith.extui %154 : vector<1x512xi1> to vector<1x512xi32>
    %156 = arith.sitofp %155 : vector<1x512xi32> to vector<1x512xf32>
    %157 = vector.broadcast %156 : vector<1x512xf32> to vector<2x512xf32>
    %158 = arith.mulf %149, %157 : vector<2x512xf32>
    %c2_i32_47 = arith.constant 2 : i32
    %159 = tpu.dynamic_rotate %131 by %c2_i32_47 dim 1 : vector<2x512xf32>, i32 -> vector<2x512xf32>
    %c2_i32_48 = arith.constant 2 : i32
    %160 = vector.broadcast %c2_i32_48 : i32 to vector<1x512xi32>
    %161 = arith.cmpi sge, %1, %160 : vector<1x512xi32>
    %162 = arith.extui %161 : vector<1x512xi1> to vector<1x512xi32>
    %163 = arith.sitofp %162 : vector<1x512xi32> to vector<1x512xf32>
    %164 = vector.broadcast %163 : vector<1x512xf32> to vector<2x512xf32>
    %165 = arith.mulf %159, %164 : vector<2x512xf32>
    %c510_i32 = arith.constant 510 : i32
    %166 = tpu.dynamic_rotate %131 by %c510_i32 dim 1 : vector<2x512xf32>, i32 -> vector<2x512xf32>
    %c14_i32_49 = arith.constant 14 : i32
    %167 = vector.broadcast %c14_i32_49 : i32 to vector<1x512xi32>
    %168 = arith.cmpi slt, %1, %167 : vector<1x512xi32>
    %169 = arith.extui %168 : vector<1x512xi1> to vector<1x512xi32>
    %170 = arith.sitofp %169 : vector<1x512xi32> to vector<1x512xf32>
    %171 = vector.broadcast %170 : vector<1x512xf32> to vector<2x512xf32>
    %172 = arith.mulf %166, %171 : vector<2x512xf32>
    %c482_i32 = arith.constant 482 : i32
    %173 = tpu.dynamic_rotate %131 by %c482_i32 dim 1 : vector<2x512xf32>, i32 -> vector<2x512xf32>
    %c14_i32_50 = arith.constant 14 : i32
    %174 = vector.broadcast %c14_i32_50 : i32 to vector<1x512xi32>
    %175 = arith.cmpi slt, %0, %174 : vector<1x512xi32>
    %c2_i32_51 = arith.constant 2 : i32
    %176 = vector.broadcast %c2_i32_51 : i32 to vector<1x512xi32>
    %177 = arith.cmpi sge, %1, %176 : vector<1x512xi32>
    %178 = arith.andi %175, %177 : vector<1x512xi1>
    %179 = arith.extui %178 : vector<1x512xi1> to vector<1x512xi32>
    %180 = arith.sitofp %179 : vector<1x512xi32> to vector<1x512xf32>
    %181 = vector.broadcast %180 : vector<1x512xf32> to vector<2x512xf32>
    %182 = arith.mulf %173, %181 : vector<2x512xf32>
    %c480_i32 = arith.constant 480 : i32
    %183 = tpu.dynamic_rotate %131 by %c480_i32 dim 1 : vector<2x512xf32>, i32 -> vector<2x512xf32>
    %c14_i32_52 = arith.constant 14 : i32
    %184 = vector.broadcast %c14_i32_52 : i32 to vector<1x512xi32>
    %185 = arith.cmpi slt, %0, %184 : vector<1x512xi32>
    %186 = arith.extui %185 : vector<1x512xi1> to vector<1x512xi32>
    %187 = arith.sitofp %186 : vector<1x512xi32> to vector<1x512xf32>
    %188 = vector.broadcast %187 : vector<1x512xf32> to vector<2x512xf32>
    %189 = arith.mulf %183, %188 : vector<2x512xf32>
    %c478_i32 = arith.constant 478 : i32
    %190 = tpu.dynamic_rotate %131 by %c478_i32 dim 1 : vector<2x512xf32>, i32 -> vector<2x512xf32>
    %c14_i32_53 = arith.constant 14 : i32
    %191 = vector.broadcast %c14_i32_53 : i32 to vector<1x512xi32>
    %192 = arith.cmpi slt, %0, %191 : vector<1x512xi32>
    %c14_i32_54 = arith.constant 14 : i32
    %193 = vector.broadcast %c14_i32_54 : i32 to vector<1x512xi32>
    %194 = arith.cmpi slt, %1, %193 : vector<1x512xi32>
    %195 = arith.andi %192, %194 : vector<1x512xi1>
    %196 = arith.extui %195 : vector<1x512xi1> to vector<1x512xi32>
    %197 = arith.sitofp %196 : vector<1x512xi32> to vector<1x512xf32>
    %198 = vector.broadcast %197 : vector<1x512xf32> to vector<2x512xf32>
    %199 = arith.mulf %190, %198 : vector<2x512xf32>
    %200 = tpu.concatenate %141, %148, %158, %165, %131, %172, %182, %189, %199 in 0 : vector<2x512xf32>, vector<2x512xf32>, vector<2x512xf32>, vector<2x512xf32>, vector<2x512xf32>, vector<2x512xf32>, vector<2x512xf32>, vector<2x512xf32>, vector<2x512xf32> -> vector<18x512xf32>
    %201 = arith.truncf %200 : vector<18x512xf32> to vector<18x512xbf16>
    %c0_55 = arith.constant 0 : index
    %c0_56 = arith.constant 0 : index
    %202 = vector.load %arg10[%c0_55, %c0_56] : memref<2x18xbf16, #tpu.memory_space<vmem>>, vector<2x18xbf16>
    %cst_57 = arith.constant dense<0.000000e+00> : vector<2x512xf32>
    %203 = tpu.matmul %202, %201, %cst_57 {dimension_numbers = #tpu.dot_dimension_numbers<[1], [0], [0], [1], [0, 0, 1, 1], [], []>} : vector<2x18xbf16>, vector<18x512xbf16>, vector<2x512xf32> -> vector<2x512xf32>
    %cst_58 = arith.constant dense<0.000000e+00> : vector<2xf32>
    %204 = vector.multi_reduction <add>, %203, %cst_58 [1] : vector<2x512xf32> to vector<2xf32>
    %205 = vector.shape_cast %204 : vector<2xf32> to vector<2x1xf32>
    %cst_59 = arith.constant 0.001953125 : f32
    %206 = vector.broadcast %cst_59 : f32 to vector<2x1xf32>
    %207 = arith.mulf %205, %206 : vector<2x1xf32>
    %208 = vector.broadcast %207 : vector<2x1xf32> to vector<2x512xf32>
    %209 = arith.subf %203, %208 : vector<2x512xf32>
    %210 = arith.mulf %209, %209 : vector<2x512xf32>
    %cst_60 = arith.constant dense<0.000000e+00> : vector<2xf32>
    %211 = vector.multi_reduction <add>, %210, %cst_60 [1] : vector<2x512xf32> to vector<2xf32>
    %212 = vector.shape_cast %211 : vector<2xf32> to vector<2x1xf32>
    %cst_61 = arith.constant 0.001953125 : f32
    %213 = vector.broadcast %cst_61 : f32 to vector<2x1xf32>
    %214 = arith.mulf %212, %213 : vector<2x1xf32>
    %cst_62 = arith.constant 9.99999974E-6 : f32
    %215 = vector.broadcast %cst_62 : f32 to vector<2x1xf32>
    %216 = arith.addf %214, %215 : vector<2x1xf32>
    %217 = math.rsqrt %216 : vector<2x1xf32>
    %c0_63 = arith.constant 0 : index
    %c0_64 = arith.constant 0 : index
    %218 = vector.load %arg11[%c0_63, %c0_64] : memref<2x1xf32, #tpu.memory_space<vmem>>, vector<2x1xf32>
    %219 = arith.mulf %218, %217 : vector<2x1xf32>
    %220 = vector.broadcast %219 : vector<2x1xf32> to vector<2x512xf32>
    %221 = arith.mulf %209, %220 : vector<2x512xf32>
    %c0_65 = arith.constant 0 : index
    %c0_66 = arith.constant 0 : index
    %222 = vector.load %arg12[%c0_65, %c0_66] : memref<2x1xf32, #tpu.memory_space<vmem>>, vector<2x1xf32>
    %223 = vector.broadcast %222 : vector<2x1xf32> to vector<2x512xf32>
    %224 = arith.addf %221, %223 : vector<2x512xf32>
    %cst_67 = arith.constant 0.000000e+00 : f32
    %225 = vector.broadcast %cst_67 : f32 to vector<2x512xf32>
    %226 = arith.maximumf %224, %225 : vector<2x512xf32>
    %227 = arith.addf %226, %32 : vector<2x512xf32>
    %228 = arith.addf %227, %33 : vector<2x512xf32>
    %c51_i32 = arith.constant 51 : i32
    %229 = tpu.dynamic_rotate %228 by %c51_i32 dim 1 : vector<2x512xf32>, i32 -> vector<2x512xf32>
    %c3_i32 = arith.constant 3 : i32
    %230 = vector.broadcast %c3_i32 : i32 to vector<1x512xi32>
    %231 = arith.cmpi sge, %0, %230 : vector<1x512xi32>
    %c3_i32_68 = arith.constant 3 : i32
    %232 = vector.broadcast %c3_i32_68 : i32 to vector<1x512xi32>
    %233 = arith.cmpi sge, %1, %232 : vector<1x512xi32>
    %234 = arith.andi %231, %233 : vector<1x512xi1>
    %235 = arith.extui %234 : vector<1x512xi1> to vector<1x512xi32>
    %236 = arith.sitofp %235 : vector<1x512xi32> to vector<1x512xf32>
    %237 = vector.broadcast %236 : vector<1x512xf32> to vector<2x512xf32>
    %238 = arith.mulf %229, %237 : vector<2x512xf32>
    %c48_i32 = arith.constant 48 : i32
    %239 = tpu.dynamic_rotate %228 by %c48_i32 dim 1 : vector<2x512xf32>, i32 -> vector<2x512xf32>
    %c3_i32_69 = arith.constant 3 : i32
    %240 = vector.broadcast %c3_i32_69 : i32 to vector<1x512xi32>
    %241 = arith.cmpi sge, %0, %240 : vector<1x512xi32>
    %242 = arith.extui %241 : vector<1x512xi1> to vector<1x512xi32>
    %243 = arith.sitofp %242 : vector<1x512xi32> to vector<1x512xf32>
    %244 = vector.broadcast %243 : vector<1x512xf32> to vector<2x512xf32>
    %245 = arith.mulf %239, %244 : vector<2x512xf32>
    %c45_i32 = arith.constant 45 : i32
    %246 = tpu.dynamic_rotate %228 by %c45_i32 dim 1 : vector<2x512xf32>, i32 -> vector<2x512xf32>
    %c3_i32_70 = arith.constant 3 : i32
    %247 = vector.broadcast %c3_i32_70 : i32 to vector<1x512xi32>
    %248 = arith.cmpi sge, %0, %247 : vector<1x512xi32>
    %c13_i32 = arith.constant 13 : i32
    %249 = vector.broadcast %c13_i32 : i32 to vector<1x512xi32>
    %250 = arith.cmpi slt, %1, %249 : vector<1x512xi32>
    %251 = arith.andi %248, %250 : vector<1x512xi1>
    %252 = arith.extui %251 : vector<1x512xi1> to vector<1x512xi32>
    %253 = arith.sitofp %252 : vector<1x512xi32> to vector<1x512xf32>
    %254 = vector.broadcast %253 : vector<1x512xf32> to vector<2x512xf32>
    %255 = arith.mulf %246, %254 : vector<2x512xf32>
    %c3_i32_71 = arith.constant 3 : i32
    %256 = tpu.dynamic_rotate %228 by %c3_i32_71 dim 1 : vector<2x512xf32>, i32 -> vector<2x512xf32>
    %c3_i32_72 = arith.constant 3 : i32
    %257 = vector.broadcast %c3_i32_72 : i32 to vector<1x512xi32>
    %258 = arith.cmpi sge, %1, %257 : vector<1x512xi32>
    %259 = arith.extui %258 : vector<1x512xi1> to vector<1x512xi32>
    %260 = arith.sitofp %259 : vector<1x512xi32> to vector<1x512xf32>
    %261 = vector.broadcast %260 : vector<1x512xf32> to vector<2x512xf32>
    %262 = arith.mulf %256, %261 : vector<2x512xf32>
    %c509_i32 = arith.constant 509 : i32
    %263 = tpu.dynamic_rotate %228 by %c509_i32 dim 1 : vector<2x512xf32>, i32 -> vector<2x512xf32>
    %c13_i32_73 = arith.constant 13 : i32
    %264 = vector.broadcast %c13_i32_73 : i32 to vector<1x512xi32>
    %265 = arith.cmpi slt, %1, %264 : vector<1x512xi32>
    %266 = arith.extui %265 : vector<1x512xi1> to vector<1x512xi32>
    %267 = arith.sitofp %266 : vector<1x512xi32> to vector<1x512xf32>
    %268 = vector.broadcast %267 : vector<1x512xf32> to vector<2x512xf32>
    %269 = arith.mulf %263, %268 : vector<2x512xf32>
    %c467_i32 = arith.constant 467 : i32
    %270 = tpu.dynamic_rotate %228 by %c467_i32 dim 1 : vector<2x512xf32>, i32 -> vector<2x512xf32>
    %c13_i32_74 = arith.constant 13 : i32
    %271 = vector.broadcast %c13_i32_74 : i32 to vector<1x512xi32>
    %272 = arith.cmpi slt, %0, %271 : vector<1x512xi32>
    %c3_i32_75 = arith.constant 3 : i32
    %273 = vector.broadcast %c3_i32_75 : i32 to vector<1x512xi32>
    %274 = arith.cmpi sge, %1, %273 : vector<1x512xi32>
    %275 = arith.andi %272, %274 : vector<1x512xi1>
    %276 = arith.extui %275 : vector<1x512xi1> to vector<1x512xi32>
    %277 = arith.sitofp %276 : vector<1x512xi32> to vector<1x512xf32>
    %278 = vector.broadcast %277 : vector<1x512xf32> to vector<2x512xf32>
    %279 = arith.mulf %270, %278 : vector<2x512xf32>
    %c464_i32 = arith.constant 464 : i32
    %280 = tpu.dynamic_rotate %228 by %c464_i32 dim 1 : vector<2x512xf32>, i32 -> vector<2x512xf32>
    %c13_i32_76 = arith.constant 13 : i32
    %281 = vector.broadcast %c13_i32_76 : i32 to vector<1x512xi32>
    %282 = arith.cmpi slt, %0, %281 : vector<1x512xi32>
    %283 = arith.extui %282 : vector<1x512xi1> to vector<1x512xi32>
    %284 = arith.sitofp %283 : vector<1x512xi32> to vector<1x512xf32>
    %285 = vector.broadcast %284 : vector<1x512xf32> to vector<2x512xf32>
    %286 = arith.mulf %280, %285 : vector<2x512xf32>
    %c461_i32 = arith.constant 461 : i32
    %287 = tpu.dynamic_rotate %228 by %c461_i32 dim 1 : vector<2x512xf32>, i32 -> vector<2x512xf32>
    %c13_i32_77 = arith.constant 13 : i32
    %288 = vector.broadcast %c13_i32_77 : i32 to vector<1x512xi32>
    %289 = arith.cmpi slt, %0, %288 : vector<1x512xi32>
    %c13_i32_78 = arith.constant 13 : i32
    %290 = vector.broadcast %c13_i32_78 : i32 to vector<1x512xi32>
    %291 = arith.cmpi slt, %1, %290 : vector<1x512xi32>
    %292 = arith.andi %289, %291 : vector<1x512xi1>
    %293 = arith.extui %292 : vector<1x512xi1> to vector<1x512xi32>
    %294 = arith.sitofp %293 : vector<1x512xi32> to vector<1x512xf32>
    %295 = vector.broadcast %294 : vector<1x512xf32> to vector<2x512xf32>
    %296 = arith.mulf %287, %295 : vector<2x512xf32>
    %297 = tpu.concatenate %238, %245, %255, %262, %228, %269, %279, %286, %296 in 0 : vector<2x512xf32>, vector<2x512xf32>, vector<2x512xf32>, vector<2x512xf32>, vector<2x512xf32>, vector<2x512xf32>, vector<2x512xf32>, vector<2x512xf32>, vector<2x512xf32> -> vector<18x512xf32>
    %298 = arith.truncf %297 : vector<18x512xf32> to vector<18x512xbf16>
    %c0_79 = arith.constant 0 : index
    %c0_80 = arith.constant 0 : index
    %299 = vector.load %arg13[%c0_79, %c0_80] : memref<2x18xbf16, #tpu.memory_space<vmem>>, vector<2x18xbf16>
    %cst_81 = arith.constant dense<0.000000e+00> : vector<2x512xf32>
    %300 = tpu.matmul %299, %298, %cst_81 {dimension_numbers = #tpu.dot_dimension_numbers<[1], [0], [0], [1], [0, 0, 1, 1], [], []>} : vector<2x18xbf16>, vector<18x512xbf16>, vector<2x512xf32> -> vector<2x512xf32>
    %cst_82 = arith.constant dense<0.000000e+00> : vector<2xf32>
    %301 = vector.multi_reduction <add>, %300, %cst_82 [1] : vector<2x512xf32> to vector<2xf32>
    %302 = vector.shape_cast %301 : vector<2xf32> to vector<2x1xf32>
    %cst_83 = arith.constant 0.001953125 : f32
    %303 = vector.broadcast %cst_83 : f32 to vector<2x1xf32>
    %304 = arith.mulf %302, %303 : vector<2x1xf32>
    %305 = vector.broadcast %304 : vector<2x1xf32> to vector<2x512xf32>
    %306 = arith.subf %300, %305 : vector<2x512xf32>
    %307 = arith.mulf %306, %306 : vector<2x512xf32>
    %cst_84 = arith.constant dense<0.000000e+00> : vector<2xf32>
    %308 = vector.multi_reduction <add>, %307, %cst_84 [1] : vector<2x512xf32> to vector<2xf32>
    %309 = vector.shape_cast %308 : vector<2xf32> to vector<2x1xf32>
    %cst_85 = arith.constant 0.001953125 : f32
    %310 = vector.broadcast %cst_85 : f32 to vector<2x1xf32>
    %311 = arith.mulf %309, %310 : vector<2x1xf32>
    %cst_86 = arith.constant 9.99999974E-6 : f32
    %312 = vector.broadcast %cst_86 : f32 to vector<2x1xf32>
    %313 = arith.addf %311, %312 : vector<2x1xf32>
    %314 = math.rsqrt %313 : vector<2x1xf32>
    %c0_87 = arith.constant 0 : index
    %c0_88 = arith.constant 0 : index
    %315 = vector.load %arg14[%c0_87, %c0_88] : memref<2x1xf32, #tpu.memory_space<vmem>>, vector<2x1xf32>
    %316 = arith.mulf %315, %314 : vector<2x1xf32>
    %317 = vector.broadcast %316 : vector<2x1xf32> to vector<2x512xf32>
    %318 = arith.mulf %306, %317 : vector<2x512xf32>
    %c0_89 = arith.constant 0 : index
    %c0_90 = arith.constant 0 : index
    %319 = vector.load %arg15[%c0_89, %c0_90] : memref<2x1xf32, #tpu.memory_space<vmem>>, vector<2x1xf32>
    %320 = vector.broadcast %319 : vector<2x1xf32> to vector<2x512xf32>
    %321 = arith.addf %318, %320 : vector<2x512xf32>
    %cst_91 = arith.constant 0.000000e+00 : f32
    %322 = vector.broadcast %cst_91 : f32 to vector<2x512xf32>
    %323 = arith.maximumf %321, %322 : vector<2x512xf32>
    %324 = arith.addf %323, %33 : vector<2x512xf32>
    %c68_i32 = arith.constant 68 : i32
    %325 = tpu.dynamic_rotate %324 by %c68_i32 dim 1 : vector<2x512xf32>, i32 -> vector<2x512xf32>
    %c4_i32 = arith.constant 4 : i32
    %326 = vector.broadcast %c4_i32 : i32 to vector<1x512xi32>
    %327 = arith.cmpi sge, %0, %326 : vector<1x512xi32>
    %c4_i32_92 = arith.constant 4 : i32
    %328 = vector.broadcast %c4_i32_92 : i32 to vector<1x512xi32>
    %329 = arith.cmpi sge, %1, %328 : vector<1x512xi32>
    %330 = arith.andi %327, %329 : vector<1x512xi1>
    %331 = arith.extui %330 : vector<1x512xi1> to vector<1x512xi32>
    %332 = arith.sitofp %331 : vector<1x512xi32> to vector<1x512xf32>
    %333 = vector.broadcast %332 : vector<1x512xf32> to vector<2x512xf32>
    %334 = arith.mulf %325, %333 : vector<2x512xf32>
    %c64_i32 = arith.constant 64 : i32
    %335 = tpu.dynamic_rotate %324 by %c64_i32 dim 1 : vector<2x512xf32>, i32 -> vector<2x512xf32>
    %c4_i32_93 = arith.constant 4 : i32
    %336 = vector.broadcast %c4_i32_93 : i32 to vector<1x512xi32>
    %337 = arith.cmpi sge, %0, %336 : vector<1x512xi32>
    %338 = arith.extui %337 : vector<1x512xi1> to vector<1x512xi32>
    %339 = arith.sitofp %338 : vector<1x512xi32> to vector<1x512xf32>
    %340 = vector.broadcast %339 : vector<1x512xf32> to vector<2x512xf32>
    %341 = arith.mulf %335, %340 : vector<2x512xf32>
    %c60_i32 = arith.constant 60 : i32
    %342 = tpu.dynamic_rotate %324 by %c60_i32 dim 1 : vector<2x512xf32>, i32 -> vector<2x512xf32>
    %c4_i32_94 = arith.constant 4 : i32
    %343 = vector.broadcast %c4_i32_94 : i32 to vector<1x512xi32>
    %344 = arith.cmpi sge, %0, %343 : vector<1x512xi32>
    %c12_i32 = arith.constant 12 : i32
    %345 = vector.broadcast %c12_i32 : i32 to vector<1x512xi32>
    %346 = arith.cmpi slt, %1, %345 : vector<1x512xi32>
    %347 = arith.andi %344, %346 : vector<1x512xi1>
    %348 = arith.extui %347 : vector<1x512xi1> to vector<1x512xi32>
    %349 = arith.sitofp %348 : vector<1x512xi32> to vector<1x512xf32>
    %350 = vector.broadcast %349 : vector<1x512xf32> to vector<2x512xf32>
    %351 = arith.mulf %342, %350 : vector<2x512xf32>
    %c4_i32_95 = arith.constant 4 : i32
    %352 = tpu.dynamic_rotate %324 by %c4_i32_95 dim 1 : vector<2x512xf32>, i32 -> vector<2x512xf32>
    %c4_i32_96 = arith.constant 4 : i32
    %353 = vector.broadcast %c4_i32_96 : i32 to vector<1x512xi32>
    %354 = arith.cmpi sge, %1, %353 : vector<1x512xi32>
    %355 = arith.extui %354 : vector<1x512xi1> to vector<1x512xi32>
    %356 = arith.sitofp %355 : vector<1x512xi32> to vector<1x512xf32>
    %357 = vector.broadcast %356 : vector<1x512xf32> to vector<2x512xf32>
    %358 = arith.mulf %352, %357 : vector<2x512xf32>
    %c508_i32 = arith.constant 508 : i32
    %359 = tpu.dynamic_rotate %324 by %c508_i32 dim 1 : vector<2x512xf32>, i32 -> vector<2x512xf32>
    %c12_i32_97 = arith.constant 12 : i32
    %360 = vector.broadcast %c12_i32_97 : i32 to vector<1x512xi32>
    %361 = arith.cmpi slt, %1, %360 : vector<1x512xi32>
    %362 = arith.extui %361 : vector<1x512xi1> to vector<1x512xi32>
    %363 = arith.sitofp %362 : vector<1x512xi32> to vector<1x512xf32>
    %364 = vector.broadcast %363 : vector<1x512xf32> to vector<2x512xf32>
    %365 = arith.mulf %359, %364 : vector<2x512xf32>
    %c452_i32 = arith.constant 452 : i32
    %366 = tpu.dynamic_rotate %324 by %c452_i32 dim 1 : vector<2x512xf32>, i32 -> vector<2x512xf32>
    %c12_i32_98 = arith.constant 12 : i32
    %367 = vector.broadcast %c12_i32_98 : i32 to vector<1x512xi32>
    %368 = arith.cmpi slt, %0, %367 : vector<1x512xi32>
    %c4_i32_99 = arith.constant 4 : i32
    %369 = vector.broadcast %c4_i32_99 : i32 to vector<1x512xi32>
    %370 = arith.cmpi sge, %1, %369 : vector<1x512xi32>
    %371 = arith.andi %368, %370 : vector<1x512xi1>
    %372 = arith.extui %371 : vector<1x512xi1> to vector<1x512xi32>
    %373 = arith.sitofp %372 : vector<1x512xi32> to vector<1x512xf32>
    %374 = vector.broadcast %373 : vector<1x512xf32> to vector<2x512xf32>
    %375 = arith.mulf %366, %374 : vector<2x512xf32>
    %c448_i32 = arith.constant 448 : i32
    %376 = tpu.dynamic_rotate %324 by %c448_i32 dim 1 : vector<2x512xf32>, i32 -> vector<2x512xf32>
    %c12_i32_100 = arith.constant 12 : i32
    %377 = vector.broadcast %c12_i32_100 : i32 to vector<1x512xi32>
    %378 = arith.cmpi slt, %0, %377 : vector<1x512xi32>
    %379 = arith.extui %378 : vector<1x512xi1> to vector<1x512xi32>
    %380 = arith.sitofp %379 : vector<1x512xi32> to vector<1x512xf32>
    %381 = vector.broadcast %380 : vector<1x512xf32> to vector<2x512xf32>
    %382 = arith.mulf %376, %381 : vector<2x512xf32>
    %c444_i32 = arith.constant 444 : i32
    %383 = tpu.dynamic_rotate %324 by %c444_i32 dim 1 : vector<2x512xf32>, i32 -> vector<2x512xf32>
    %c12_i32_101 = arith.constant 12 : i32
    %384 = vector.broadcast %c12_i32_101 : i32 to vector<1x512xi32>
    %385 = arith.cmpi slt, %0, %384 : vector<1x512xi32>
    %c12_i32_102 = arith.constant 12 : i32
    %386 = vector.broadcast %c12_i32_102 : i32 to vector<1x512xi32>
    %387 = arith.cmpi slt, %1, %386 : vector<1x512xi32>
    %388 = arith.andi %385, %387 : vector<1x512xi1>
    %389 = arith.extui %388 : vector<1x512xi1> to vector<1x512xi32>
    %390 = arith.sitofp %389 : vector<1x512xi32> to vector<1x512xf32>
    %391 = vector.broadcast %390 : vector<1x512xf32> to vector<2x512xf32>
    %392 = arith.mulf %383, %391 : vector<2x512xf32>
    %393 = tpu.concatenate %334, %341, %351, %358, %324, %365, %375, %382, %392 in 0 : vector<2x512xf32>, vector<2x512xf32>, vector<2x512xf32>, vector<2x512xf32>, vector<2x512xf32>, vector<2x512xf32>, vector<2x512xf32>, vector<2x512xf32>, vector<2x512xf32> -> vector<18x512xf32>
    %394 = arith.truncf %393 : vector<18x512xf32> to vector<18x512xbf16>
    %c0_103 = arith.constant 0 : index
    %c0_104 = arith.constant 0 : index
    %395 = vector.load %arg16[%c0_103, %c0_104] : memref<2x18xbf16, #tpu.memory_space<vmem>>, vector<2x18xbf16>
    %cst_105 = arith.constant dense<0.000000e+00> : vector<2x512xf32>
    %396 = tpu.matmul %395, %394, %cst_105 {dimension_numbers = #tpu.dot_dimension_numbers<[1], [0], [0], [1], [0, 0, 1, 1], [], []>} : vector<2x18xbf16>, vector<18x512xbf16>, vector<2x512xf32> -> vector<2x512xf32>
    %cst_106 = arith.constant dense<0.000000e+00> : vector<2xf32>
    %397 = vector.multi_reduction <add>, %396, %cst_106 [1] : vector<2x512xf32> to vector<2xf32>
    %398 = vector.shape_cast %397 : vector<2xf32> to vector<2x1xf32>
    %cst_107 = arith.constant 0.001953125 : f32
    %399 = vector.broadcast %cst_107 : f32 to vector<2x1xf32>
    %400 = arith.mulf %398, %399 : vector<2x1xf32>
    %401 = vector.broadcast %400 : vector<2x1xf32> to vector<2x512xf32>
    %402 = arith.subf %396, %401 : vector<2x512xf32>
    %403 = arith.mulf %402, %402 : vector<2x512xf32>
    %cst_108 = arith.constant dense<0.000000e+00> : vector<2xf32>
    %404 = vector.multi_reduction <add>, %403, %cst_108 [1] : vector<2x512xf32> to vector<2xf32>
    %405 = vector.shape_cast %404 : vector<2xf32> to vector<2x1xf32>
    %cst_109 = arith.constant 0.001953125 : f32
    %406 = vector.broadcast %cst_109 : f32 to vector<2x1xf32>
    %407 = arith.mulf %405, %406 : vector<2x1xf32>
    %cst_110 = arith.constant 9.99999974E-6 : f32
    %408 = vector.broadcast %cst_110 : f32 to vector<2x1xf32>
    %409 = arith.addf %407, %408 : vector<2x1xf32>
    %410 = math.rsqrt %409 : vector<2x1xf32>
    %c0_111 = arith.constant 0 : index
    %c0_112 = arith.constant 0 : index
    %411 = vector.load %arg17[%c0_111, %c0_112] : memref<2x1xf32, #tpu.memory_space<vmem>>, vector<2x1xf32>
    %412 = arith.mulf %411, %410 : vector<2x1xf32>
    %413 = vector.broadcast %412 : vector<2x1xf32> to vector<2x512xf32>
    %414 = arith.mulf %402, %413 : vector<2x512xf32>
    %c0_113 = arith.constant 0 : index
    %c0_114 = arith.constant 0 : index
    %415 = vector.load %arg18[%c0_113, %c0_114] : memref<2x1xf32, #tpu.memory_space<vmem>>, vector<2x1xf32>
    %416 = vector.broadcast %415 : vector<2x1xf32> to vector<2x512xf32>
    %417 = arith.addf %414, %416 : vector<2x512xf32>
    %cst_115 = arith.constant 0.000000e+00 : f32
    %418 = vector.broadcast %cst_115 : f32 to vector<2x512xf32>
    %419 = arith.maximumf %417, %418 : vector<2x512xf32>
    %420 = tpu.concatenate %129, %226, %323, %419 in 0 : vector<2x512xf32>, vector<2x512xf32>, vector<2x512xf32>, vector<2x512xf32> -> vector<8x512xf32>
    %421 = arith.truncf %420 : vector<8x512xf32> to vector<8x512xbf16>
    %c0_116 = arith.constant 0 : index
    %c0_117 = arith.constant 0 : index
    %422 = vector.load %arg19[%c0_116, %c0_117] : memref<8x8xbf16, #tpu.memory_space<vmem>>, vector<8x8xbf16>
    %cst_118 = arith.constant dense<0.000000e+00> : vector<8x512xf32>
    %423 = tpu.matmul %422, %421, %cst_118 {dimension_numbers = #tpu.dot_dimension_numbers<[1], [0], [0], [1], [0, 0, 1, 1], [], []>} : vector<8x8xbf16>, vector<8x512xbf16>, vector<8x512xf32> -> vector<8x512xf32>
    %cst_119 = arith.constant dense<0.000000e+00> : vector<8xf32>
    %424 = vector.multi_reduction <add>, %423, %cst_119 [1] : vector<8x512xf32> to vector<8xf32>
    %425 = vector.shape_cast %424 : vector<8xf32> to vector<8x1xf32>
    %cst_120 = arith.constant 0.001953125 : f32
    %426 = vector.broadcast %cst_120 : f32 to vector<8x1xf32>
    %427 = arith.mulf %425, %426 : vector<8x1xf32>
    %428 = vector.broadcast %427 : vector<8x1xf32> to vector<8x512xf32>
    %429 = arith.subf %423, %428 : vector<8x512xf32>
    %430 = arith.mulf %429, %429 : vector<8x512xf32>
    %cst_121 = arith.constant dense<0.000000e+00> : vector<8xf32>
    %431 = vector.multi_reduction <add>, %430, %cst_121 [1] : vector<8x512xf32> to vector<8xf32>
    %432 = vector.shape_cast %431 : vector<8xf32> to vector<8x1xf32>
    %cst_122 = arith.constant 0.001953125 : f32
    %433 = vector.broadcast %cst_122 : f32 to vector<8x1xf32>
    %434 = arith.mulf %432, %433 : vector<8x1xf32>
    %cst_123 = arith.constant 9.99999974E-6 : f32
    %435 = vector.broadcast %cst_123 : f32 to vector<8x1xf32>
    %436 = arith.addf %434, %435 : vector<8x1xf32>
    %437 = math.rsqrt %436 : vector<8x1xf32>
    %c0_124 = arith.constant 0 : index
    %c0_125 = arith.constant 0 : index
    %438 = vector.load %arg20[%c0_124, %c0_125] : memref<8x1xf32, #tpu.memory_space<vmem>>, vector<8x1xf32>
    %439 = arith.mulf %438, %437 : vector<8x1xf32>
    %440 = vector.broadcast %439 : vector<8x1xf32> to vector<8x512xf32>
    %441 = arith.mulf %429, %440 : vector<8x512xf32>
    %c0_126 = arith.constant 0 : index
    %c0_127 = arith.constant 0 : index
    %442 = vector.load %arg21[%c0_126, %c0_127] : memref<8x1xf32, #tpu.memory_space<vmem>>, vector<8x1xf32>
    %443 = vector.broadcast %442 : vector<8x1xf32> to vector<8x512xf32>
    %444 = arith.addf %441, %443 : vector<8x512xf32>
    %cst_128 = arith.constant 0.000000e+00 : f32
    %445 = vector.broadcast %cst_128 : f32 to vector<8x512xf32>
    %446 = arith.maximumf %444, %445 : vector<8x512xf32>
    %c17_i32_129 = arith.constant 17 : i32
    %447 = tpu.dynamic_rotate %446 by %c17_i32_129 dim 1 : vector<8x512xf32>, i32 -> vector<8x512xf32>
    %c1_i32_130 = arith.constant 1 : i32
    %448 = vector.broadcast %c1_i32_130 : i32 to vector<1x512xi32>
    %449 = arith.cmpi sge, %0, %448 : vector<1x512xi32>
    %c1_i32_131 = arith.constant 1 : i32
    %450 = vector.broadcast %c1_i32_131 : i32 to vector<1x512xi32>
    %451 = arith.cmpi sge, %1, %450 : vector<1x512xi32>
    %452 = arith.andi %449, %451 : vector<1x512xi1>
    %453 = arith.extui %452 : vector<1x512xi1> to vector<1x512xi32>
    %454 = arith.sitofp %453 : vector<1x512xi32> to vector<1x512xf32>
    %455 = vector.broadcast %454 : vector<1x512xf32> to vector<8x512xf32>
    %456 = arith.mulf %447, %455 : vector<8x512xf32>
    %c16_i32_132 = arith.constant 16 : i32
    %457 = tpu.dynamic_rotate %446 by %c16_i32_132 dim 1 : vector<8x512xf32>, i32 -> vector<8x512xf32>
    %c1_i32_133 = arith.constant 1 : i32
    %458 = vector.broadcast %c1_i32_133 : i32 to vector<1x512xi32>
    %459 = arith.cmpi sge, %0, %458 : vector<1x512xi32>
    %460 = arith.extui %459 : vector<1x512xi1> to vector<1x512xi32>
    %461 = arith.sitofp %460 : vector<1x512xi32> to vector<1x512xf32>
    %462 = vector.broadcast %461 : vector<1x512xf32> to vector<8x512xf32>
    %463 = arith.mulf %457, %462 : vector<8x512xf32>
    %c15_i32_134 = arith.constant 15 : i32
    %464 = tpu.dynamic_rotate %446 by %c15_i32_134 dim 1 : vector<8x512xf32>, i32 -> vector<8x512xf32>
    %c1_i32_135 = arith.constant 1 : i32
    %465 = vector.broadcast %c1_i32_135 : i32 to vector<1x512xi32>
    %466 = arith.cmpi sge, %0, %465 : vector<1x512xi32>
    %c15_i32_136 = arith.constant 15 : i32
    %467 = vector.broadcast %c15_i32_136 : i32 to vector<1x512xi32>
    %468 = arith.cmpi slt, %1, %467 : vector<1x512xi32>
    %469 = arith.andi %466, %468 : vector<1x512xi1>
    %470 = arith.extui %469 : vector<1x512xi1> to vector<1x512xi32>
    %471 = arith.sitofp %470 : vector<1x512xi32> to vector<1x512xf32>
    %472 = vector.broadcast %471 : vector<1x512xf32> to vector<8x512xf32>
    %473 = arith.mulf %464, %472 : vector<8x512xf32>
    %c1_i32_137 = arith.constant 1 : i32
    %474 = tpu.dynamic_rotate %446 by %c1_i32_137 dim 1 : vector<8x512xf32>, i32 -> vector<8x512xf32>
    %c1_i32_138 = arith.constant 1 : i32
    %475 = vector.broadcast %c1_i32_138 : i32 to vector<1x512xi32>
    %476 = arith.cmpi sge, %1, %475 : vector<1x512xi32>
    %477 = arith.extui %476 : vector<1x512xi1> to vector<1x512xi32>
    %478 = arith.sitofp %477 : vector<1x512xi32> to vector<1x512xf32>
    %479 = vector.broadcast %478 : vector<1x512xf32> to vector<8x512xf32>
    %480 = arith.mulf %474, %479 : vector<8x512xf32>
    %c511_i32_139 = arith.constant 511 : i32
    %481 = tpu.dynamic_rotate %446 by %c511_i32_139 dim 1 : vector<8x512xf32>, i32 -> vector<8x512xf32>
    %c15_i32_140 = arith.constant 15 : i32
    %482 = vector.broadcast %c15_i32_140 : i32 to vector<1x512xi32>
    %483 = arith.cmpi slt, %1, %482 : vector<1x512xi32>
    %484 = arith.extui %483 : vector<1x512xi1> to vector<1x512xi32>
    %485 = arith.sitofp %484 : vector<1x512xi32> to vector<1x512xf32>
    %486 = vector.broadcast %485 : vector<1x512xf32> to vector<8x512xf32>
    %487 = arith.mulf %481, %486 : vector<8x512xf32>
    %c497_i32_141 = arith.constant 497 : i32
    %488 = tpu.dynamic_rotate %446 by %c497_i32_141 dim 1 : vector<8x512xf32>, i32 -> vector<8x512xf32>
    %c15_i32_142 = arith.constant 15 : i32
    %489 = vector.broadcast %c15_i32_142 : i32 to vector<1x512xi32>
    %490 = arith.cmpi slt, %0, %489 : vector<1x512xi32>
    %c1_i32_143 = arith.constant 1 : i32
    %491 = vector.broadcast %c1_i32_143 : i32 to vector<1x512xi32>
    %492 = arith.cmpi sge, %1, %491 : vector<1x512xi32>
    %493 = arith.andi %490, %492 : vector<1x512xi1>
    %494 = arith.extui %493 : vector<1x512xi1> to vector<1x512xi32>
    %495 = arith.sitofp %494 : vector<1x512xi32> to vector<1x512xf32>
    %496 = vector.broadcast %495 : vector<1x512xf32> to vector<8x512xf32>
    %497 = arith.mulf %488, %496 : vector<8x512xf32>
    %c496_i32_144 = arith.constant 496 : i32
    %498 = tpu.dynamic_rotate %446 by %c496_i32_144 dim 1 : vector<8x512xf32>, i32 -> vector<8x512xf32>
    %c15_i32_145 = arith.constant 15 : i32
    %499 = vector.broadcast %c15_i32_145 : i32 to vector<1x512xi32>
    %500 = arith.cmpi slt, %0, %499 : vector<1x512xi32>
    %501 = arith.extui %500 : vector<1x512xi1> to vector<1x512xi32>
    %502 = arith.sitofp %501 : vector<1x512xi32> to vector<1x512xf32>
    %503 = vector.broadcast %502 : vector<1x512xf32> to vector<8x512xf32>
    %504 = arith.mulf %498, %503 : vector<8x512xf32>
    %c495_i32_146 = arith.constant 495 : i32
    %505 = tpu.dynamic_rotate %446 by %c495_i32_146 dim 1 : vector<8x512xf32>, i32 -> vector<8x512xf32>
    %c15_i32_147 = arith.constant 15 : i32
    %506 = vector.broadcast %c15_i32_147 : i32 to vector<1x512xi32>
    %507 = arith.cmpi slt, %0, %506 : vector<1x512xi32>
    %c15_i32_148 = arith.constant 15 : i32
    %508 = vector.broadcast %c15_i32_148 : i32 to vector<1x512xi32>
    %509 = arith.cmpi slt, %1, %508 : vector<1x512xi32>
    %510 = arith.andi %507, %509 : vector<1x512xi1>
    %511 = arith.extui %510 : vector<1x512xi1> to vector<1x512xi32>
    %512 = arith.sitofp %511 : vector<1x512xi32> to vector<1x512xf32>
    %513 = vector.broadcast %512 : vector<1x512xf32> to vector<8x512xf32>
    %514 = arith.mulf %505, %513 : vector<8x512xf32>
    %515 = tpu.concatenate %456, %463, %473, %480, %446, %487, %497, %504, %514 in 0 : vector<8x512xf32>, vector<8x512xf32>, vector<8x512xf32>, vector<8x512xf32>, vector<8x512xf32>, vector<8x512xf32>, vector<8x512xf32>, vector<8x512xf32>, vector<8x512xf32> -> vector<72x512xf32>
    %516 = arith.truncf %515 : vector<72x512xf32> to vector<72x512xbf16>
    %c0_149 = arith.constant 0 : index
    %c0_150 = arith.constant 0 : index
    %517 = vector.load %arg22[%c0_149, %c0_150] : memref<8x72xbf16, #tpu.memory_space<vmem>>, vector<8x72xbf16>
    %cst_151 = arith.constant dense<0.000000e+00> : vector<8x512xf32>
    %518 = tpu.matmul %517, %516, %cst_151 {dimension_numbers = #tpu.dot_dimension_numbers<[1], [0], [0], [1], [0, 0, 1, 1], [], []>} : vector<8x72xbf16>, vector<72x512xbf16>, vector<8x512xf32> -> vector<8x512xf32>
    %c1_i32_152 = arith.constant 1 : i32
    %519 = vector.broadcast %c1_i32_152 : i32 to vector<1x512xi32>
    %520 = arith.cmpi sge, %0, %519 : vector<1x512xi32>
    %c14_i32_153 = arith.constant 14 : i32
    %521 = vector.broadcast %c14_i32_153 : i32 to vector<1x512xi32>
    %522 = arith.cmpi sle, %0, %521 : vector<1x512xi32>
    %523 = arith.andi %520, %522 : vector<1x512xi1>
    %c1_i32_154 = arith.constant 1 : i32
    %524 = vector.broadcast %c1_i32_154 : i32 to vector<1x512xi32>
    %525 = arith.cmpi sge, %1, %524 : vector<1x512xi32>
    %526 = arith.andi %523, %525 : vector<1x512xi1>
    %c14_i32_155 = arith.constant 14 : i32
    %527 = vector.broadcast %c14_i32_155 : i32 to vector<1x512xi32>
    %528 = arith.cmpi sle, %1, %527 : vector<1x512xi32>
    %529 = arith.andi %526, %528 : vector<1x512xi1>
    %530 = arith.extui %529 : vector<1x512xi1> to vector<1x512xi32>
    %531 = arith.sitofp %530 : vector<1x512xi32> to vector<1x512xf32>
    %532 = vector.broadcast %531 : vector<1x512xf32> to vector<8x512xf32>
    %533 = arith.mulf %518, %532 : vector<8x512xf32>
    %cst_156 = arith.constant dense<0.000000e+00> : vector<8xf32>
    %534 = vector.multi_reduction <add>, %533, %cst_156 [1] : vector<8x512xf32> to vector<8xf32>
    %535 = vector.shape_cast %534 : vector<8xf32> to vector<8x1xf32>
    %cst_157 = arith.constant 0.00255102036 : f32
    %536 = vector.broadcast %cst_157 : f32 to vector<8x1xf32>
    %537 = arith.mulf %535, %536 : vector<8x1xf32>
    %538 = vector.broadcast %537 : vector<8x1xf32> to vector<8x512xf32>
    %539 = arith.subf %518, %538 : vector<8x512xf32>
    %540 = vector.broadcast %531 : vector<1x512xf32> to vector<8x512xf32>
    %541 = arith.mulf %539, %540 : vector<8x512xf32>
    %542 = arith.mulf %541, %541 : vector<8x512xf32>
    %cst_158 = arith.constant dense<0.000000e+00> : vector<8xf32>
    %543 = vector.multi_reduction <add>, %542, %cst_158 [1] : vector<8x512xf32> to vector<8xf32>
    %544 = vector.shape_cast %543 : vector<8xf32> to vector<8x1xf32>
    %cst_159 = arith.constant 0.00255102036 : f32
    %545 = vector.broadcast %cst_159 : f32 to vector<8x1xf32>
    %546 = arith.mulf %544, %545 : vector<8x1xf32>
    %cst_160 = arith.constant 9.99999974E-6 : f32
    %547 = vector.broadcast %cst_160 : f32 to vector<8x1xf32>
    %548 = arith.addf %546, %547 : vector<8x1xf32>
    %549 = math.rsqrt %548 : vector<8x1xf32>
    %c0_161 = arith.constant 0 : index
    %c0_162 = arith.constant 0 : index
    %550 = vector.load %arg23[%c0_161, %c0_162] : memref<8x1xf32, #tpu.memory_space<vmem>>, vector<8x1xf32>
    %551 = arith.mulf %550, %549 : vector<8x1xf32>
    %552 = vector.broadcast %551 : vector<8x1xf32> to vector<8x512xf32>
    %553 = arith.mulf %539, %552 : vector<8x512xf32>
    %c0_163 = arith.constant 0 : index
    %c0_164 = arith.constant 0 : index
    %554 = vector.load %arg24[%c0_163, %c0_164] : memref<8x1xf32, #tpu.memory_space<vmem>>, vector<8x1xf32>
    %555 = vector.broadcast %554 : vector<8x1xf32> to vector<8x512xf32>
    %556 = arith.addf %553, %555 : vector<8x512xf32>
    %cst_165 = arith.constant 0.000000e+00 : f32
    %557 = vector.broadcast %cst_165 : f32 to vector<8x512xf32>
    %558 = arith.maximumf %556, %557 : vector<8x512xf32>
    %c0_166 = arith.constant 0 : index
    %c0_167 = arith.constant 0 : index
    %559 = vector.load %arg25[%c0_166, %c0_167] : memref<8x512xf32, #tpu.memory_space<vmem>>, vector<8x512xf32>
    tpu.vector_store %arg25[%c0_166, %c0_167], %558 {strides = array<i32>} : memref<8x512xf32, #tpu.memory_space<vmem>>, vector<8x512xf32>,
    return
  }
}

</mosaic_0001>

<bundles_post_ra>
// kernel: cam_forward.1
= control target key start
LH: loop header
LB: loop body
LE: loop exit
PB: predicated region body
PF: predicated region fallthrough
CT: control target
= control target key end

     0   :  { %v91_v0 = vlaneseq  ;;  %v3290_v3 = vmov 1983009808   ;;  %v5489_v9 = vmov 0   ;;  %vm118_vm0 = vcmask 1041408   ;;  %s3293_s30 = smov 127   ;;  %s3296_s26 = smov 15   ;;  %s5456_s2 = inlined_call_operand.vmem [shape: bf16[4,512], index: 2, kind: input, shape index: {}]   ;;  %s5457_s3 = inlined_call_operand.vmem [shape: bf16[8,512], index: 3, kind: input, shape index: {}]   ;;  %s5458_s4 = inlined_call_operand.vmem [shape: bf16[8,12], index: 4, kind: input, shape index: {}]   ;;  %s5459_s5 = inlined_call_operand.vmem [shape: f32[8,1], index: 5, kind: input, shape index: {}]   ;;  %s5460_s6 = inlined_call_operand.vmem [shape: f32[8,1], index: 6, kind: input, shape index: {}]   ;;  %s5461_s0 = inlined_call_operand.vmem [shape: s32[1,512], index: 0, kind: input, shape index: {}]   ;;  %s5462_s1 = inlined_call_operand.vmem [shape: s32[1,512], index: 1, kind: input, shape index: {}]   ;;  %s5463_s7 = inlined_call_operand.vmem [shape: bf16[2,18], index: 7, kind: input, shape index: {}]   ;;  %s5464_s9 = inlined_call_operand.vmem [shape: f32[2,1], index: 9, kind: input, shape index: {}]   ;;  %s5465_s8 = inlined_call_operand.vmem [shape: f32[2,1], index: 8, kind: input, shape index: {}]   ;;  %s5466_s10 = inlined_call_operand.vmem [shape: bf16[2,18], index: 10, kind: input, shape index: {}]   ;;  %s5467_s12 = inlined_call_operand.vmem [shape: f32[2,1], index: 12, kind: input, shape index: {}]   ;;  %s5468_s11 = inlined_call_operand.vmem [shape: f32[2,1], index: 11, kind: input, shape index: {}]   ;;  %s5469_s13 = inlined_call_operand.vmem [shape: bf16[2,18], index: 13, kind: input, shape index: {}]   ;;  %s5470_s15 = inlined_call_operand.vmem [shape: f32[2,1], index: 15, kind: input, shape index: {}]   ;;  %s5471_s14 = inlined_call_operand.vmem [shape: f32[2,1], index: 14, kind: input, shape index: {}]   ;;  %s5472_s16 = inlined_call_operand.vmem [shape: bf16[2,18], index: 16, kind: input, shape index: {}]   ;;  %s5473_s18 = inlined_call_operand.vmem [shape: f32[2,1], index: 18, kind: input, shape index: {}]   ;;  %s5474_s17 = inlined_call_operand.vmem [shape: f32[2,1], index: 17, kind: input, shape index: {}]   ;;  %s5475_s19 = inlined_call_operand.vmem [shape: bf16[8,8], index: 19, kind: input, shape index: {}]   ;;  %s5476_s21 = inlined_call_operand.vmem [shape: f32[8,1], index: 21, kind: input, shape index: {}]   ;;  %s5477_s20 = inlined_call_operand.vmem [shape: f32[8,1], index: 20, kind: input, shape index: {}]   ;;  %s5478_s22 = inlined_call_operand.vmem [shape: bf16[8,72], index: 22, kind: input, shape index: {}]   ;;  %s5479_s24 = inlined_call_operand.vmem [shape: f32[8,1], index: 24, kind: input, shape index: {}]   ;;  %s5480_s23 = inlined_call_operand.vmem [shape: f32[8,1], index: 23, kind: input, shape index: {}]   ;;  %s5481_s25 = inlined_call_operand.vmem [shape: f32[8,512], index: 25, kind: output, shape index: {}]  }
   0x1   :  { %5590 = sst [smem:[#allocation49_spill]] %s5456_s2  ;;  %v89_v4 = vunpack.c.l.s4 %v3290_v3  ;;  %177 = vmatprep.mubr.bf16.mxu0 %v5489_v9  ;;  %218 = vmatprep.mubr.bf16.mxu1 %v5489_v9  ;;  %vm136_vm1 = vcmask 1045504   ;;  %vm132_vm2 = vcmask 97280   ;;  %s5516_s27 = smov 111   ;;  %vm696_vm15 = vcmask 1043456  }
   0x2   :  { %5591 = sst [smem:[#allocation50_spill]] %s5457_s3  ;;  %v3462_v6 = vshrl.u32 %v91_v0, 7  ;;  %3265 = vset.pattern.permute.xlu1 %v5489_v9  ;;  %3266 = vset.pattern.permute.xlu0 %v5489_v9  ;;  %s3297_s3 = smov 1  }
   0x3   :  { %5592 = sst [smem:[#allocation51_spill]] %s5458_s4  ;;  %s5600_s4 = sld [smem:[#allocation49_spill]]  ;;  %v90_v10 = vunpack.c.0.s8 %v89_v4 }
   0x4   :  { %5593 = sst [smem:[#allocation52_spill]] %s5459_s5  ;;  %s5601_s5 = sld [smem:[#allocation50_spill]] }
   0x5   :  { %5594 = sst [smem:[#allocation53_spill]] %s5460_s6  ;;  %v93_v14 = vsub.s32 %v90_v10, %v3462_v6  ;;  %s5602_s6 = sld [smem:[#allocation51_spill]] }
   0x6   :  { %5595 = sst [smem:[#allocation54_spill]] %s5461_s0  ;;  %s5603_s0 = sld [smem:[#allocation52_spill]] }
   0x7   :  { %5596 = sst [smem:[#allocation55_spill]] %s5462_s1  ;;  %s5604_s29 = sld [smem:[#allocation53_spill]] }
   0x8   :  { %5597 = sst [smem:[#allocation56_spill]] %s5463_s7  ;;  %s5520_s7 = smov 113  }
   0x9   :  { %5598 = sst [smem:[#allocation57_spill]] %s5464_s9  ;;  %v83_v1 = vld [vmem:[%s5600_s4] sm:$0xff]  ;;  %s3292_s4 = smov 16  }
   0xa   :  { %5599 = sst [smem:[#allocation58_spill]] %s5465_s8  ;;  %v84_v2 = vld [vmem:[%s5601_s5] sm:$0xff]  ;;  %v85_v5 = vld [vmem:[%s5601_s5 + $0x8] sm:$0xff]  ;;  %v87_v8 = vcombine.high %v83_v1, %v83_v1  ;;  %v94_v17 = vrot.slane %v83_v1, %v93_v14  ;;  %s3295_s5 = smov 17  }
   0xb   :  { %v3169_v7 = vcombine.high %v84_v2, %v84_v2  ;;  %v3171_v11 = vcombine.high %v85_v5, %v85_v5  ;;  %v3168_v12 = vcombine.low %v84_v2, %v84_v2  ;;  %v3170_v13 = vcombine.low %v85_v5, %v85_v5  ;;  %v131_v29 = vld [vmem:[%s5602_s6] sm:$0xf]  ;;  %s5518_s9 = smov 112   ;;  %s5609_s8 = sld [smem:[#allocation54_spill]] }
   0xc   :  { %v101_v19 = vrot.slane %v87_v8, %v93_v14  ;;  %v102_v21 = vcombine.high %v94_v17, %v94_v17  ;;  %v249_v57 = vld [vmem:[%s5603_s0] sm:$0xff]  ;;  %s5611_s1 = sld [smem:[#allocation55_spill]]  ;;  %s5648_s28 = sld [smem:[#allocation56_spill]] }
   0xd   :  { %v114_v15 = vrot.slane %v3168_v12, 6  ;;  %v116_v16 = vrot.slane %v3170_v13, 6  ;;  %v115_v18 = vrot.slane %v3169_v7, 6  ;;  %v117_v20 = vrot.slane %v3171_v11, 6  ;;  %v260_v60 = vld [vmem:[%s5604_s29] sm:$0xff]  ;;  %s5650_s29 = sld [smem:[#allocation57_spill]] }
   0xe   :  { %v103_v22 = vcombine.high %v101_v19, %v101_v19  ;;  %s5651_s0 = sld [smem:[#allocation58_spill]]  ;;  %s3301_s2 = smov 30  }
   0xf   :  { %v121_v23 = vsel %vm118_vm0, %v94_v17, %v114_v15  ;;  %v127_v24 = vsel %vm118_vm0, %v101_v19, %v116_v16  ;;  %v124_v27 = vsel %vm118_vm0, %v102_v21, %v115_v18  ;;  %s3303_s6 = smov 98  }
  0x10   :  { %v137_v25 = vsel %vm136_vm1, %v121_v23, 0  ;;  %v141_v26 = vsel %vm136_vm1, %v127_v24, 0  ;;  %v130_v28 = vsel %vm118_vm0, %v103_v22, %v117_v20  ;;  %3172 = vmatprep.subr.msk.bf16.mxu0 %vm136_vm1, %v124_v27 }
  0x11   :  { %3174 = vmatprep.subr.msk.bf16.mxu1 %vm136_vm1, %v130_v28  ;;  %146 = vmatpush1.bf16.msra.mxu0 %v137_v25 }
  0x12   :  { %187 = vmatpush1.bf16.msra.mxu1 %v141_v26 }
  0x14   :  { %3173 = vmatmul.mubr.msk.bf16.vlgmr.msra.gmra.mrb[0].mxu0 %vm132_vm2, %v131_v29 }
  0x15   :  { %3175 = vmatmul.mubr.msk.bf16.vlgmr.msra.gmra.mrb[0].mxu1 %vm132_vm2, %v131_v29  ;;  %775 = vmatprep.mubr.bf16.mxu0 %v5489_v9 }
  0x16   :  { %816 = vmatprep.mubr.bf16.mxu1 %v5489_v9 }
  0xe7   :  { %v179_v30 = vpop.f32.mrb[0].mxu0 }
  0xe8   :  { %v220_v31 = vpop.f32.mrb[0].mxu1  ;;  %v181_v32 = vpop.f32.mrb[1].mxu0 }
  0xe9   :  { %v222_v33 = vpop.f32.mrb[1].mxu1  ;;  %v227_v34 = vadd.f32 %v181_v32, %v179_v30  ;;  %v183_v35 = vpop.f32.mrb[2].mxu0 }
  0xea   :  { %v224_v36 = vpop.f32.mrb[2].mxu1  ;;  %v184_v37 = vpop.f32.mrb[3].mxu0 }
  0xeb   :  { %v225_v38 = vpop.f32.mrb[3].mxu1  ;;  %v228_v39 = vadd.f32 %v227_v34, %v220_v31  ;;  %v3623_v36 = vand.u32 127, %v91_v0  ;;  %v5491_v0 = vmov 0.0  }
  0xed   :  { %v229_v40 = vadd.f32 %v228_v39, %v222_v33  ;;  %v3634_v39 = vsub.s32 0, %v3462_v6  ;;  %vm5575_vm10 = vcmp.lt.s32.totalorder %v3623_v36, 16  ;;  %vm5532_vm11 = vcmp.lt.s32.totalorder %v3623_v36, 127 }
  0xee   :  { %vm5545_vm12 = vcmp.lt.s32.totalorder %v3623_v36, 15  ;;  %vm5529_vm13 = vcmp.lt.s32.totalorder %v3623_v36, 113  ;;  %vm300_vm14 = vcmp.lt.s32.totalorder %v3623_v36, 17  ;;  %vm5534_vm2 = vcmp.lt.s32.totalorder %v3623_v36, 1 }
  0xef   :  { %230 = vadd.xlane.f32.xlu0 %v229_v40  ;;  %v3637_v40 = vsub.s32 1, %v3462_v6 }
  0xf1   :  { %5613 = vst [vmem:[#allocation8_spill] sm:$0xff] %v3637_v40 }
 0x17c   :  { %v231_v41 = vpop.xlane.xlu0 %230 }
 0x17d   :  { %v232_v42 = vmul.f32 0.001953125, %v231_v41 }
 0x17f   :  { %v233_v43 = vsub.f32 %v179_v30, %v232_v42  ;;  %v234_v44 = vsub.f32 %v181_v32, %v232_v42  ;;  %v235_v45 = vsub.f32 %v220_v31, %v232_v42  ;;  %v236_v46 = vsub.f32 %v222_v33, %v232_v42  ;;  %v3607_v32 = vld [vmem:[%s5609_s8] sm:$0xf] }
 0x180   :  { %5610 = vst [vmem:[#allocation6_spill] sm:$0xff] %v3607_v32  ;;  %v3612_v33 = vld [vmem:[%s5611_s1] sm:$0xf]  ;;  %vm510_vm4 = vcmp.lt.s32.totalorder %v3607_v32, 15  ;;  %vm5525_vm5 = vcmp.ge.s32.totalorder %v3607_v32, 1 }
 0x181   :  { %v237_v47 = vmul.f32 %v233_v43, %v233_v43  ;;  %v238_v48 = vmul.f32 %v234_v44, %v234_v44  ;;  %v239_v49 = vmul.f32 %v235_v45, %v235_v45  ;;  %v240_v51 = vmul.f32 %v236_v46, %v236_v46  ;;  %5612 = vst [vmem:[#allocation7_spill] sm:$0xff] %v3612_v33 }
 0x182   :  { %vm5523_vm3 = vcmp.ge.s32.totalorder %v3612_v33, 1  ;;  %vm388_vm6 = vcmp.lt.s32.totalorder %v3612_v33, 15  ;;  %v3177_v41 = vsel %vm5525_vm5, 1.0, %v5491_v0 }
 0x183   :  { %v241_v50 = vadd.f32 %v238_v48, %v237_v47  ;;  %vm389_vm7 = vmand %vm5525_vm5, %vm388_vm6  ;;  %v3180_v42 = vsel %vm388_vm6, 1.0, %v5491_v0 }
 0x184   :  { %vm511_vm8 = vmand %vm510_vm4, %vm5523_vm3 }
 0x185   :  { %v242_v52 = vadd.f32 %v241_v50, %v239_v49  ;;  %vm307_vm9 = vmand %vm5525_vm5, %vm5523_vm3  ;;  %v3669_v49 = vrot.slane %v3177_v41, %v3637_v40  ;;  %v3673_v50 = vrot.slane %v3180_v42, %v3634_v39 }
 0x187   :  { %v243_v53 = vadd.f32 %v242_v52, %v240_v51  ;;  %5614 = vst [vmem:[#allocation9_spill] sm:$0xff] %v3669_v49  ;;  %5615 = vst [vmem:[#allocation10_spill] sm:$0xff] %v3673_v50  ;;  %v3677_v51 = vrot.slane %v3180_v42, %v3637_v40  ;;  %v3680_v52 = vrot.slane %v3177_v41, %v3634_v39 }
 0x189   :  { %244 = vadd.xlane.f32.xlu0 %v243_v53  ;;  %5616 = vst [vmem:[#allocation11_spill] sm:$0xff] %v3677_v51  ;;  %5617 = vst [vmem:[#allocation12_spill] sm:$0xff] %v3680_v52 }
 0x216   :  { %v245_v54 = vpop.xlane.xlu0 %244 }
 0x217   :  { %v246_v55 = vmul.f32 0.001953125, %v245_v54 }
 0x219   :  { %v247_v56 = vadd.f32 1e-05, %v246_v55 }
 0x21b   :  { %3272 = vrsqrt.f32 %v247_v56  ;;  %v3698_v56 = vsel %vm5523_vm3, 1.0, %v5491_v0 }
 0x225   :  { %v3273_v58 = vpop.eup %3272 }
 0x226   :  { %v250_v59 = vmul.f32 %v3273_v58, %v249_v57 }
 0x228   :  { %253 = vperm.xlu1 %3265, %v250_v59  }
 0x22c   :  { %263 = vperm.xlu1 %3265, %v260_v60  }
 0x2a7   :  { %v254_v61 = vpop.permute.xlu1 %253 }
 0x2a8   :  { %v256_v62 = vmul.f32 %v254_v61, %v233_v43  ;;  %v257_v63 = vmul.f32 %v254_v61, %v234_v44  ;;  %v258_v2 = vmul.f32 %v254_v61, %v235_v45  ;;  %v259_v10 = vmul.f32 %v254_v61, %v236_v46 }
 0x2a9   :  { %v3178_v43 = vsel %vm389_vm7, 1.0, %v5491_v0  ;;  %v3655_v44 = vsub.s32 2, %v3462_v6  ;;  %v3658_v45 = vsub.s32 3, %v3462_v6  ;;  %v3662_v46 = vsel %vm511_vm8, 1.0, %v5491_v0  ;;  %vm592_vm8 = vmand %vm510_vm4, %vm388_vm6 }
 0x2aa   :  { %v3176_v6 = vsel %vm307_vm9, 1.0, %v5491_v0  ;;  %v3684_v53 = vrot.slane %v3178_v43, %v3637_v40  ;;  %v3689_v54 = vrot.slane %v3662_v46, %v3634_v39  ;;  %v3693_v55 = vrot.slane %v3662_v46, %v3637_v40 }
 0x2ab   :  { %v264_v1 = vpop.permute.xlu1 %263  ;;  %v3702_v57 = vrot.slane %v3176_v6, %v3637_v40  ;;  %v3705_v58 = vrot.slane %v3177_v41, %v3655_v44  ;;  %v3708_v59 = vrot.slane %v3177_v41, %v3658_v45  ;;  %v3748_v41 = vrot.slane %v3178_v43, %v3655_v44 }
 0x2ac   :  { %v266_v3 = vadd.f32 %v264_v1, %v256_v62  ;;  %v267_v4 = vadd.f32 %v264_v1, %v257_v63  ;;  %v268_v5 = vadd.f32 %v264_v1, %v258_v2  ;;  %v269_v13 = vadd.f32 %v264_v1, %v259_v10  ;;  %5618 = vst [vmem:[#allocation13_spill] sm:$0xff] %v3684_v53 }
 0x2ad   :  { %5619 = vst [vmem:[#allocation14_spill] sm:$0xff] %v3689_v54  ;;  %5620 = vst [vmem:[#allocation15_spill] sm:$0xff] %v3693_v55  ;;  %v3721_v63 = vrot.slane %v3178_v43, %v3634_v39  ;;  %v3724_v1 = vrot.slane %v3180_v42, %v3655_v44  ;;  %vm5527_vm7 = vcmp.lt.s32.totalorder %v3623_v36, 112  ;;  %v3815_v32 = vrot.slane %v3662_v46, %v3655_v44 }
 0x2ae   :  { %v3488_v7 = vmax.f32 %v266_v3, 0.0  ;;  %v3490_v8 = vmax.f32 %v267_v4, 0.0  ;;  %v3494_v14 = vmax.f32 %v268_v5, 0.0  ;;  %v3510_v17 = vmax.f32 %v269_v13, 0.0  ;;  %5621 = vst [vmem:[#allocation16_spill] sm:$0xff] %v3702_v57  ;;  %5622 = vst [vmem:[#allocation17_spill] sm:$0xff] %v3705_v58 }
 0x2af   :  { %5623 = vst [vmem:[#allocation18_spill] sm:$0xff] %v3708_v59  ;;  %5624 = vst [vmem:[#allocation19_spill] sm:$0xff] %v3721_v63  ;;  %v3735_v4 = vrot.slane %v3698_v56, %v3637_v40  ;;  %v3182_v5 = vsel %vm510_vm4, 1.0, %v5491_v0  ;;  %v3745_v13 = vrot.slane %v3180_v42, %v3658_v45  ;;  %vm5526_vm4 = vcmp.lt.s32.totalorder %v3623_v36, 111 }
 0x2b0   :  { %5605 = vst [vmem:[#allocation2_spill] sm:$0xff] %v3488_v7  ;;  %5606 = vst [vmem:[#allocation3_spill] sm:$0xff] %v3490_v8  ;;  %v5488_v11 = vrot.slane %v3488_v7, 2  ;;  %v5487_v12 = vrot.slane %v3490_v8, 2  ;;  %v5486_v18 = vrot.slane %v3494_v14, 2  ;;  %v5485_v19 = vrot.slane %v3510_v17, 2 }
 0x2b1   :  { %5607 = vst [vmem:[#allocation4_spill] sm:$0xff] %v3494_v14  ;;  %5608 = vst [vmem:[#allocation5_spill] sm:$0xff] %v3510_v17  ;;  %vm730_vm6 = vcmask 1040384   ;;  %vm726_vm9 = vcmask 146432  }
 0x2b2   :  { %v3499_v15 = vadd.f32 %v5488_v11, %v3488_v7  ;;  %v3504_v16 = vadd.f32 %v5487_v12, %v3490_v8  ;;  %v3521_v20 = vadd.f32 %v5486_v18, %v3494_v14  ;;  %v3530_v21 = vadd.f32 %v5485_v19, %v3510_v17  ;;  %5625 = vst [vmem:[#allocation20_spill] sm:$0xff] %v3724_v1 }
 0x2b3   :  { %5626 = vst [vmem:[#allocation21_spill] sm:$0xff] %v3735_v4  ;;  %5627 = vst [vmem:[#allocation22_spill] sm:$0xff] %v3745_v13  ;;  %v3751_v19 = vrot.slane %v3178_v43, %v3658_v45  ;;  %v3784_v17 = vrot.slane %v3176_v6, %v3658_v45  ;;  %v3787_v14 = vrot.slane %v3182_v5, %v3655_v44 }
 0x2b4   :  { %337 = vrot.lane.b32.xlu1 %v3504_v16, %s3292_s4  ;;  %335 = vrot.lane.b32.xlu0 %v3499_v15, %s3292_s4  ;;  %5628 = vst [vmem:[#allocation23_spill] sm:$0xff] %v3748_v41  ;;  %v3791_v8 = vrot.slane %v3698_v56, %v3634_v39  ;;  %5638 = vst [vmem:[#allocation33_spill] sm:$0xff] %v3815_v32 }
 0x2b5   :  { %5629 = vst [vmem:[#allocation24_spill] sm:$0xff] %v3751_v19  ;;  %5633 = vst [vmem:[#allocation28_spill] sm:$0xff] %v3784_v17 }
 0x2b6   :  { %5634 = vst [vmem:[#allocation29_spill] sm:$0xff] %v3787_v14  ;;  %5635 = vst [vmem:[#allocation30_spill] sm:$0xff] %v3791_v8 }
 0x2b8   :  { %459 = vrot.lane.b32.xlu1 %v3504_v16, %s3293_s30  ;;  %457 = vrot.lane.b32.xlu0 %v3499_v15, %s3293_s30 }
 0x2bc   :  { %461 = vrot.lane.b32.xlu1 %v3521_v20, %s3293_s30  ;;  %501 = vrot.lane.b32.xlu0 %v3521_v20, %s5520_s7 }
 0x2c0   :  { %341 = vrot.lane.b32.xlu1 %v3530_v21, %s3292_s4  ;;  %292 = vrot.lane.b32.xlu0 %v3504_v16, %s3295_s5 }
 0x2c4   :  { %375 = vrot.lane.b32.xlu1 %v3499_v15, %s3296_s26  ;;  %417 = vrot.lane.b32.xlu0 %v3499_v15, %s3297_s3 }
 0x2c8   :  { %377 = vrot.lane.b32.xlu1 %v3504_v16, %s3296_s26  ;;  %497 = vrot.lane.b32.xlu0 %v3499_v15, %s5520_s7 }
 0x2cc   :  { %499 = vrot.lane.b32.xlu1 %v3504_v16, %s5520_s7  ;;  %543 = vrot.lane.b32.xlu0 %v3521_v20, %s5518_s9 }
 0x2d0   :  { %290 = vrot.lane.b32.xlu1 %v3499_v15, %s3295_s5  ;;  %339 = vrot.lane.b32.xlu0 %v3521_v20, %s3292_s4 }
 0x2d4   :  { %381 = vrot.lane.b32.xlu1 %v3530_v21, %s3296_s26  ;;  %463 = vrot.lane.b32.xlu0 %v3530_v21, %s3293_s30 }
 0x2d8   :  { %419 = vrot.lane.b32.xlu1 %v3504_v16, %s3297_s3  ;;  %379 = vrot.lane.b32.xlu0 %v3521_v20, %s3296_s26 }
 0x2dc   :  { %541 = vrot.lane.b32.xlu1 %v3504_v16, %s5518_s9  ;;  %294 = vrot.lane.b32.xlu0 %v3521_v20, %s3295_s5 }
 0x2e0   :  { %296 = vrot.lane.b32.xlu1 %v3530_v21, %s3295_s5  ;;  %545 = vrot.lane.b32.xlu0 %v3530_v21, %s5518_s9 }
 0x2e4   :  { %423 = vrot.lane.b32.xlu1 %v3530_v21, %s3297_s3  ;;  %581 = vrot.lane.b32.xlu0 %v3504_v16, %s5516_s27 }
 0x2e8   :  { %539 = vrot.lane.b32.xlu1 %v3499_v15, %s5518_s9  ;;  %585 = vrot.lane.b32.xlu0 %v3530_v21, %s5516_s27  ;;  %s3307_s9 = smov 96  }
 0x2ec   :  { %503 = vrot.lane.b32.xlu1 %v3530_v21, %s5520_s7  ;;  %s3308_s7 = smov 94  }
 0x2f0   :  { %421 = vrot.lane.b32.xlu1 %v3521_v20, %s3297_s3 }
 0x2f4   :  { %579 = vrot.lane.b32.xlu1 %v3499_v15, %s5516_s27 }
 0x2f8   :  { %583 = vrot.lane.b32.xlu1 %v3521_v20, %s5516_s27  ;;  %s3306_s27 = smov 2  }
 0x326   :  { %v3584_v22 = vpop.permute.xlu1 %337  ;;  %v3586_v23 = vpop.permute.xlu0 %335 }
 0x327   :  { %v346_v61 = vsel %vm5575_vm10, %v3586_v23, %v3584_v22 }
 0x328   :  { %v372_v18 = vmul.f32 %v3669_v49, %v346_v61  ;;  %v3768_v61 = vrot.slane %v3182_v5, %v3637_v40 }
 0x32a   :  { %v3588_v24 = vpop.permute.xlu1 %459  ;;  %v3590_v25 = vpop.permute.xlu0 %457  ;;  %5630 = vst [vmem:[#allocation25_spill] sm:$0xff] %v3768_v61 }
 0x32b   :  { %v468_v0 = vsel %vm5532_vm11, %v3590_v25, %v3588_v24 }
 0x32e   :  { %v3592_v26 = vpop.permute.xlu1 %461  ;;  %v3594_v27 = vpop.permute.xlu0 %501 }
 0x32f   :  { %v467_v62 = vsel %vm5532_vm11, %v3588_v24, %v3592_v26  ;;  %v625_v24 = vrot.slane %v372_v18, 6 }
 0x330   :  { %v494_v12 = vmul.f32 %v3677_v51, %v467_v62  ;;  %v3771_v62 = vrot.slane %v3176_v6, %v3655_v44 }
 0x332   :  { %v3596_v28 = vpop.permute.xlu1 %341  ;;  %v3598_v29 = vpop.permute.xlu0 %292  ;;  %5631 = vst [vmem:[#allocation26_spill] sm:$0xff] %v3771_v62  ;;  %v661_v7 = vrot.slane %v494_v12, 6 }
 0x336   :  { %v3600_v30 = vpop.permute.xlu1 %375  ;;  %v3602_v31 = vpop.permute.xlu0 %417 }
 0x33a   :  { %v3614_v34 = vpop.permute.xlu1 %377  ;;  %v3616_v35 = vpop.permute.xlu0 %497 }
 0x33b   :  { %v386_v11 = vsel %vm5545_vm12, %v3600_v30, %v3614_v34 }
 0x33c   :  { %v414_v49 = vmul.f32 %v3684_v53, %v386_v11  ;;  %v493_v11 = vmul.f32 %v3673_v50, %v468_v0  ;;  %v347_v0 = vsel %vm5575_vm10, %v3596_v28, %v3586_v23  ;;  %v5640_v50 = vmov 0.0  }
 0x33d   :  { %v3826_v40 = vsel %vm592_vm8, 1.0, %v5640_v50  ;;  %v706_v23 = vsel %vm118_vm0, %v3504_v16, %v661_v7 }
 0x33e   :  { %v3629_v37 = vpop.permute.xlu1 %499  ;;  %v3631_v38 = vpop.permute.xlu0 %543 }
 0x33f   :  { %v507_v2 = vsel %vm5529_vm13, %v3629_v37, %v3594_v27  ;;  %v508_v12 = vsel %vm5529_vm13, %v3616_v35, %v3629_v37  ;;  %v637_v37 = vrot.slane %v414_v49, 4  ;;  %v660_v49 = vrot.slane %v493_v11, 6 }
 0x340   :  { %v536_v42 = vmul.f32 %v3693_v55, %v507_v2  ;;  %v3780_v55 = vrot.slane %v3176_v6, %v3634_v39 }
 0x342   :  { %v3664_v47 = vpop.permute.xlu1 %290  ;;  %v3666_v48 = vpop.permute.xlu0 %339  ;;  %5632 = vst [vmem:[#allocation27_spill] sm:$0xff] %v3780_v55  ;;  %v673_v18 = vrot.slane %v536_v42, 4  ;;  %v3823_v42 = vrot.slane %v3662_v46, %v3658_v45 }
 0x343   :  { %v303_v10 = vsel %vm300_vm14, %v3664_v47, %v3598_v29  ;;  %v345_v46 = vsel %vm5575_vm10, %v3584_v22, %v3666_v48  ;;  %v371_v22 = vmul.f32 %v3680_v52, %v347_v0 }
 0x344   :  { %v332_v51 = vmul.f32 %v3702_v57, %v303_v10  ;;  %5639 = vst [vmem:[#allocation34_spill] sm:$0xff] %v3823_v42 }
 0x346   :  { %v3710_v60 = vpop.permute.xlu1 %381  ;;  %v3730_v3 = vpop.permute.xlu0 %463 }
 0x347   :  { %v387_v7 = vsel %vm5545_vm12, %v3710_v60, %v3600_v30  ;;  %v469_v30 = vsel %vm5532_vm11, %v3730_v3, %v3590_v25 }
 0x34a   :  { %v3759_v9 = vpop.permute.xlu1 %419  ;;  %v380_v10 = vpop.permute.xlu0 %379 }
 0x34b   :  { %v428_v43 = vsel %vm5534_vm2, %v3602_v31, %v3759_v9 }
 0x34c   :  { %v454_v2 = vmul.f32 %v3735_v4, %v428_v43  ;;  %v3794_v43 = vrot.slane %v3182_v5, %v3634_v39  ;;  %v3797_v4 = vrot.slane %v3182_v5, %v3658_v45  ;;  %v693_v5 = vsel %vm118_vm0, %v332_v51, %v625_v24 }
 0x34d   :  { %v535_v51 = vmul.f32 %v3689_v54, %v508_v12  ;;  %v710_v12 = vsel %vm696_vm15, %v706_v23, %v673_v18  ;;  %v3882_v23 = vrot.slane %v3826_v40, %v3658_v45 }
 0x34e   :  { %v542_v57 = vpop.permute.xlu1 %541  ;;  %5636 = vst [vmem:[#allocation31_spill] sm:$0xff] %v3794_v43  ;;  %5637 = vst [vmem:[#allocation32_spill] sm:$0xff] %v3797_v4  ;;  %v649_v53 = vrot.slane %v454_v2, 2  ;;  %v466_v2 = vsel %vm5532_vm11, %v3592_v26, %v3730_v3  ;;  %v344_v26 = vsel %vm5575_vm10, %v3666_v48, %v3596_v28  ;;  %v295_v16 = vpop.permute.xlu0 %294  ;;  %v373_v48 = vmul.f32 %v3705_v58, %v345_v46 }
 0x34f   :  { %v549_v6 = vsel %vm5527_vm7, %v542_v57, %v3631_v38  ;;  %v672_v28 = vrot.slane %v535_v51, 4  ;;  %v374_v0 = vmul.f32 %v3708_v59, %v344_v26  ;;  %v3872_v51 = vrot.slane %v3698_v56, %v3658_v45  ;;  %5644 = vst [vmem:[#allocation38_spill] sm:$0xff] %v3882_v23 }
 0x350   :  { %v576_v33 = vmul.f32 %v3768_v61, %v549_v6  ;;  %v698_v61 = vsel %vm696_vm15, %v693_v5, %v637_v37  ;;  %v495_v5 = vmul.f32 %v3724_v1, %v466_v2  ;;  %v413_v2 = vmul.f32 %v3721_v63, %v387_v7 }
 0x351   :  { %5642 = vst [vmem:[#allocation36_spill] sm:$0xff] %v3872_v51  ;;  %v624_v46 = vrot.slane %v371_v22, 6  ;;  %v626_v7 = vrot.slane %v373_v48, 6 }
 0x352   :  { %v685_v24 = vrot.slane %v576_v33, 2  ;;  %v297_v6 = vpop.permute.xlu1 %296  ;;  %v702_v33 = vsel %vm136_vm1, %v698_v61, %v649_v53  ;;  %v3863_v61 = vrot.slane %v3698_v56, %v3655_v44  ;;  %v662_v56 = vrot.slane %v495_v5, 6 }
 0x353   :  { %v304_v18 = vsel %vm300_vm14, %v297_v6, %v3664_v47  ;;  %v636_v54 = vrot.slane %v413_v2, 4  ;;  %v301_v22 = vsel %vm300_vm14, %v295_v16, %v297_v6 }
 0x354   :  { %v714_v11 = vsel %vm136_vm1, %v710_v12, %v685_v24  ;;  %5641 = vst [vmem:[#allocation35_spill] sm:$0xff] %v3863_v61  ;;  %v331_v25 = vmul.f32 %v3780_v55, %v304_v18  ;;  %v3878_v24 = vrot.slane %v3826_v40, %v3634_v39  ;;  %v496_v12 = vmul.f32 %v3745_v13, %v469_v30  ;;  %v546_v18 = vpop.permute.xlu0 %545 }
 0x355   :  { %v718_v37 = vpack.c.bf16 %v714_v11, %v702_v33  ;;  %v384_v33 = vsel %vm5545_vm12, %v380_v10, %v3710_v60  ;;  %v385_v11 = vsel %vm5545_vm12, %v3614_v34, %v380_v10  ;;  %v707_v10 = vsel %vm118_vm0, %v3521_v20, %v662_v56 }
 0x356   :  { %v424_v53 = vpop.permute.xlu1 %423  ;;  %5643 = vst [vmem:[#allocation37_spill] sm:$0xff] %v3878_v24  ;;  %v692_v60 = vsel %vm118_vm0, %v331_v25, %v624_v46  ;;  %v663_v34 = vrot.slane %v496_v12, 6  ;;  %v415_v48 = vmul.f32 %v3748_v41, %v385_v11  ;;  %v548_v6 = vsel %vm5527_vm7, %v3631_v38, %v546_v18 }
 0x357   :  { %v429_v47 = vsel %vm5534_vm2, %v424_v53, %v3602_v31  ;;  %743 = vmatprep.subr.bf16.mxu0 %v718_v37  ;;  %v705_v31 = vsel %vm118_vm0, %v3499_v15, %v660_v49  ;;  %v302_v15 = vsel %vm300_vm14, %v3598_v29, %v295_v16  ;;  %v416_v29 = vmul.f32 %v3751_v19, %v384_v33 }
 0x358   :  { %v453_v3 = vmul.f32 %v3791_v8, %v429_v47  ;;  %v709_v26 = vsel %vm696_vm15, %v705_v31, %v672_v28  ;;  %v627_v47 = vrot.slane %v374_v0, 6  ;;  %v334_v2 = vmul.f32 %v3784_v17, %v301_v22  ;;  %v582_v31 = vpop.permute.xlu0 %581 }
 0x359   :  { %v577_v33 = vmul.f32 %v3787_v14, %v548_v6  ;;  %vm904_vm12 = vcmp.lt.s32.totalorder %v3623_v36, 34 }
 0x35a   :  { %v540_v37 = vpop.permute.xlu1 %539  ;;  %v648_v5 = vrot.slane %v453_v3, 2  ;;  %v697_v3 = vsel %vm696_vm15, %v692_v60, %v636_v54  ;;  %v695_v60 = vsel %vm118_vm0, %v334_v2, %v627_v47 }
 0x35b   :  { %v550_v49 = vsel %vm5527_vm7, %v540_v37, %v542_v57  ;;  %v333_v57 = vmul.f32 %v3771_v62, %v302_v15  ;;  %v551_v16 = vsel %vm5527_vm7, %v546_v18, %v540_v37  ;;  %v708_v18 = vsel %vm118_vm0, %v3530_v21, %v663_v34 }
 0x35c   :  { %v575_v28 = vmul.f32 %v3794_v43, %v550_v49  ;;  %v701_v12 = vsel %vm136_vm1, %v697_v3, %v648_v5  ;;  %v578_v11 = vmul.f32 %v3797_v4, %v551_v16  ;;  %v639_v37 = vrot.slane %v416_v29, 4 }
 0x35d   :  { %v694_v22 = vsel %vm118_vm0, %v333_v57, %v626_v7  ;;  %v686_v29 = vrot.slane %v577_v33, 2  ;;  %v5645_v57 = vld [vmem:[#allocation8_spill] sm:$0xff] }
 0x35e   :  { %v684_v30 = vrot.slane %v575_v28, 2  ;;  %v504_v0 = vpop.permute.xlu1 %503  ;;  %v687_v7 = vrot.slane %v578_v11, 2  ;;  %v3943_v47 = vrot.slane %v3826_v40, %v5645_v57 }
 0x35f   :  { %v506_v20 = vsel %vm5529_vm13, %v3594_v27, %v504_v0  ;;  %v509_v25 = vsel %vm5529_vm13, %v504_v0, %v3616_v35  ;;  %v638_v35 = vrot.slane %v415_v48, 4 }
 0x360   :  { %v537_v38 = vmul.f32 %v3815_v32, %v506_v20  ;;  %v538_v46 = vmul.f32 %v3823_v42, %v509_v25  ;;  %v713_v56 = vsel %vm136_vm1, %v709_v26, %v684_v30  ;;  %5646 = vst [vmem:[#allocation8_spill] sm:$0xff] %v3943_v47  ;;  %v700_v30 = vsel %vm696_vm15, %v695_v60, %v639_v37 }
 0x361   :  { %v717_v27 = vpack.c.bf16 %v713_v56, %v701_v12  ;;  %v699_v0 = vsel %vm696_vm15, %v694_v22, %v638_v35 }
 0x362   :  { %v674_v54 = vrot.slane %v537_v38, 4  ;;  %v675_v15 = vrot.slane %v538_v46, 4  ;;  %v422_v49 = vpop.permute.xlu1 %421 }
 0x363   :  { %v426_v26 = vsel %vm5534_vm2, %v422_v49, %v424_v53  ;;  %v427_v5 = vsel %vm5534_vm2, %v3759_v9, %v422_v49  ;;  %744 = vmatpush1.bf16.msra.mxu0 %v717_v27  ;;  %v3947_v53 = vrot.slane %v3826_v40, %v3655_v44  ;;  %v586_v9 = vpop.permute.xlu0 %585  ;;  %vm947_vm2 = vcmp.lt.s32.totalorder %v3623_v36, 32 }
 0x364   :  { %v711_v28 = vsel %vm696_vm15, %v707_v10, %v674_v54  ;;  %v455_v21 = vmul.f32 %v3863_v61, %v427_v5  ;;  %v456_v34 = vmul.f32 %v3872_v51, %v426_v26  ;;  %v712_v48 = vsel %vm696_vm15, %v708_v18, %v675_v15 }
 0x365   :  { %5647 = vst [vmem:[#allocation39_spill] sm:$0xff] %v3947_v53  ;;  %v716_v25 = vsel %vm136_vm1, %v712_v48, %v687_v7  ;;  %v715_v3 = vsel %vm136_vm1, %v711_v28, %v686_v29  ;;  %v5649_v5 = vmov 0  }
 0x366   :  { %v650_v6 = vrot.slane %v455_v21, 2  ;;  %v651_v16 = vrot.slane %v456_v34, 2  ;;  %v580_v10 = vpop.permute.xlu1 %579 }
 0x367   :  { %v590_v2 = vsel %vm5526_vm4, %v580_v10, %v582_v31  ;;  %v591_v20 = vsel %vm5526_vm4, %v586_v9, %v580_v10 }
 0x368   :  { %v616_v40 = vmul.f32 %v3878_v24, %v590_v2  ;;  %v619_v38 = vmul.f32 %v3882_v23, %v591_v20  ;;  %v704_v46 = vsel %vm136_vm1, %v700_v30, %v651_v16  ;;  %v703_v12 = vsel %vm136_vm1, %v699_v0, %v650_v6 }
 0x369   :  { %v720_v56 = vpack.c.bf16 %v716_v25, %v704_v46  ;;  %v719_v33 = vpack.c.bf16 %v715_v3, %v703_v12  ;;  %v866_v3 = vld [vmem:[%s5650_s29] sm:$0x3]  ;;  %s3302_s29 = smov 32  }
 0x36a   :  { %v724_v11 = vpack.c.bf16 %v619_v38, %v619_v38  ;;  %v584_v27 = vpop.permute.xlu1 %583  ;;  %v721_v37 = vpack.c.bf16 %v616_v40, %v616_v40 }
 0x36b   :  { %v588_v18 = vsel %vm5526_vm4, %v584_v27, %v586_v9  ;;  %v589_v35 = vsel %vm5526_vm4, %v582_v31, %v584_v27  ;;  %784 = vmatprep.subr.bf16.mxu1 %v720_v56  ;;  %v725_v31 = vld [vmem:[%s5648_s28] sm:$0x1]  ;;  %s3304_s28 = smov 34  }
 0x36c   :  { %v617_v54 = vmul.f32 %v3943_v47, %v589_v35  ;;  %v618_v15 = vmul.f32 %v3947_v53, %v588_v18  ;;  %785 = vmatpush1.bf16.msra.mxu1 %v719_v33  ;;  %v732_v60 = vsel %vm730_vm6, %v721_v37, 0 }
 0x36d   :  { %3186 = vmatprep.subr.msk.bf16.mxu1 %vm730_vm6, %v724_v11 }
 0x36e   :  { %v722_v49 = vpack.c.bf16 %v617_v54, %v617_v54  ;;  %v723_v22 = vpack.c.bf16 %v618_v15, %v618_v15 }
 0x370   :  { %3184 = vmatprep.subr.msk.bf16.mxu0 %vm730_vm6, %v722_v49  ;;  %v738_v26 = vsel %vm730_vm6, %v723_v22, 0 }
 0x371   :  { %746 = vmatpush1.bf16.msra.mxu0 %v732_v60  ;;  %787 = vmatpush1.bf16.msra.mxu1 %v738_v26 }
 0x374   :  { %3185 = vmatmul.mubr.msk.bf16.vlgmr.msra.gmra.mrb[4].mxu0 %vm726_vm9, %v725_v31  ;;  %3187 = vmatmul.mubr.msk.bf16.vlgmr.msra.gmra.mrb[4].mxu1 %vm726_vm9, %v725_v31 }
 0x375   :  { %1376 = vmatprep.mubr.bf16.mxu0 %v5649_v5  ;;  %1417 = vmatprep.mubr.bf16.mxu1 %v5649_v5 }
 0x447   :  { %v777_v28 = vpop.f32.mrb[4].mxu0  ;;  %v818_v21 = vpop.f32.mrb[4].mxu1 }
 0x448   :  { %v825_v34 = vsel %vm118_vm0, %v777_v28, 0.0  ;;  %v779_v48 = vpop.f32.mrb[5].mxu0  ;;  %v820_v29 = vpop.f32.mrb[5].mxu1  ;;  %v828_v7 = vsel %vm118_vm0, %v818_v21, 0.0 }
 0x449   :  { %v826_v9 = vsel %vm118_vm0, %v779_v48, 0.0  ;;  %v781_v6 = vpop.f32.mrb[6].mxu0  ;;  %v822_v16 = vpop.f32.mrb[6].mxu1  ;;  %v830_v20 = vsel %vm118_vm0, %v820_v29, 0.0 }
 0x44a   :  { %v827_v10 = vadd.f32 %v826_v9, %v825_v34  ;;  %v782_v30 = vpop.f32.mrb[7].mxu0  ;;  %v823_v0 = vpop.f32.mrb[7].mxu1  ;;  %v855_v34 = vld [vmem:[%s5651_s0] sm:$0x3]  ;;  %s3305_s0 = smov 126  }
 0x44c   :  { %v829_v2 = vadd.f32 %v828_v7, %v827_v10 }
 0x44e   :  { %v831_v25 = vadd.f32 %v830_v20, %v829_v2 }
 0x450   :  { %832 = vadd.xlane.f32.xlu1 %v831_v25 }
 0x461   :  { %869 = vperm.xlu1 %3265, %v866_v3   ;;  %v5654_v3 = vld [vmem:[#allocation2_spill] sm:$0xff] }
 0x4dd   :  { %v833_v40 = vpop.xlane.xlu1 %832 }
 0x4de   :  { %v834_v38 = vmul.f32 0.001953125, %v833_v40  ;;  %v5536_v40 = vrot.slane %v5654_v3, 4 }
 0x4e0   :  { %v835_v46 = vsub.f32 %v777_v28, %v834_v38  ;;  %v836_v12 = vsub.f32 %v779_v48, %v834_v38  ;;  %v837_v56 = vsub.f32 %v818_v21, %v834_v38  ;;  %v838_v33 = vsub.f32 %v820_v29, %v834_v38  ;;  %v5655_v38 = vld [vmem:[#allocation3_spill] sm:$0xff] }
 0x4e1   :  { %v870_v16 = vpop.permute.xlu1 %869 }
 0x4e2   :  { %v839_v11 = vmul.f32 %v835_v46, %v835_v46  ;;  %v840_v27 = vmul.f32 %v836_v12, %v836_v12  ;;  %v841_v18 = vmul.f32 %v837_v56, %v837_v56  ;;  %v842_v35 = vmul.f32 %v838_v33, %v838_v33 }
 0x4e4   :  { %v843_v37 = vsel %vm118_vm0, %v839_v11, 0.0  ;;  %v844_v54 = vsel %vm118_vm0, %v840_v27, 0.0  ;;  %v846_v49 = vsel %vm118_vm0, %v841_v18, 0.0  ;;  %v848_v60 = vsel %vm118_vm0, %v842_v35, 0.0 }
 0x4e5   :  { %v845_v15 = vadd.f32 %v844_v54, %v843_v37  ;;  %v5535_v11 = vrot.slane %v5655_v38, 4  ;;  %v5656_v27 = vrot.slane %v5654_v3, 2 }
 0x4e7   :  { %v847_v22 = vadd.f32 %v846_v49, %v845_v15  ;;  %v5660_v49 = vld [vmem:[#allocation4_spill] sm:$0xff] }
 0x4e9   :  { %v849_v26 = vadd.f32 %v848_v60, %v847_v22  ;;  %v5661_v22 = vrot.slane %v5660_v49, 2 }
 0x4eb   :  { %850 = vadd.xlane.f32.xlu0 %v849_v26  ;;  %v5662_v26 = vld [vmem:[#allocation5_spill] sm:$0xff] }
 0x578   :  { %v851_v31 = vpop.xlane.xlu0 %850 }
 0x579   :  { %v852_v28 = vmul.f32 0.001953125, %v851_v31  ;;  %v5663_v31 = vrot.slane %v5662_v26, 2 }
 0x57b   :  { %v853_v21 = vadd.f32 1e-05, %v852_v28 }
 0x57d   :  { %3274 = vrsqrt.f32 %v853_v21  ;;  %v5533_v21 = vrot.slane %v5660_v49, 4 }
 0x587   :  { %v3275_v48 = vpop.eup %3274 }
 0x588   :  { %v856_v29 = vmul.f32 %v3275_v48, %v855_v34  ;;  %v5531_v34 = vrot.slane %v5662_v26, 4 }
 0x58a   :  { %859 = vperm.xlu0 %3266, %v856_v29  }
 0x609   :  { %v860_v7 = vpop.permute.xlu0 %859 }
 0x60a   :  { %v862_v9 = vmul.f32 %v860_v7, %v835_v46  ;;  %v863_v6 = vmul.f32 %v860_v7, %v836_v12  ;;  %v864_v0 = vmul.f32 %v860_v7, %v837_v56  ;;  %v865_v2 = vmul.f32 %v860_v7, %v838_v33 }
 0x60b   :  { %v5657_v12 = vrot.slane %v5655_v38, 2 }
 0x60c   :  { %v3992_v10 = vadd.f32 %v870_v16, %v862_v9  ;;  %v3994_v30 = vadd.f32 %v870_v16, %v863_v6  ;;  %v4008_v56 = vadd.f32 %v870_v16, %v864_v0  ;;  %v4010_v33 = vadd.f32 %v870_v16, %v865_v2 }
 0x60e   :  { %5652 = vst [vmem:[#allocation40_spill] sm:$0xff] %v3992_v10  ;;  %5653 = vst [vmem:[#allocation41_spill] sm:$0xff] %v3994_v30  ;;  %v5524_v20 = vmax.f32 %v3992_v10, 0.0  ;;  %v5530_v25 = vmax.f32 %v3994_v30, 0.0  ;;  %v5522_v54 = vmax.f32 %v4008_v56, 0.0  ;;  %v5528_v15 = vmax.f32 %v4010_v33, 0.0 }
 0x60f   :  { %5658 = vst [vmem:[#allocation42_spill] sm:$0xff] %v4008_v56  ;;  %5659 = vst [vmem:[#allocation43_spill] sm:$0xff] %v4010_v33 }
 0x610   :  { %v880_v46 = vadd.f32 %v5524_v20, %v5656_v27  ;;  %v881_v18 = vadd.f32 %v5530_v25, %v5657_v12  ;;  %v882_v60 = vadd.f32 %v5522_v54, %v5661_v22  ;;  %v883_v28 = vadd.f32 %v5528_v15, %v5663_v31  ;;  %v5667_v54 = vld [vmem:[#allocation7_spill] sm:$0xff] }
 0x611   :  { %vm910_vm3 = vcmp.ge.s32.totalorder %v5667_v54, 2  ;;  %vm992_vm5 = vcmp.lt.s32.totalorder %v5667_v54, 14 }
 0x612   :  { %v4014_v35 = vadd.f32 %v5536_v40, %v880_v46  ;;  %v4018_v37 = vadd.f32 %v5535_v11, %v881_v18  ;;  %v4045_v48 = vadd.f32 %v5533_v21, %v882_v60  ;;  %v4049_v29 = vadd.f32 %v5531_v34, %v883_v28  ;;  %v5666_v28 = vld [vmem:[#allocation6_spill] sm:$0xff] }
 0x613   :  { %vm909_vm8 = vcmp.ge.s32.totalorder %v5666_v28, 2  ;;  %vm1114_vm4 = vcmp.lt.s32.totalorder %v5666_v28, 14  ;;  %v4124_v34 = vsel %vm992_vm5, 1.0, %v5640_v50  ;;  %v4170_v1 = vsel %vm910_vm3, 1.0, %v5640_v50 }
 0x614   :  { %981 = vrot.lane.b32.xlu0 %v4018_v37, %s3301_s2  ;;  %939 = vrot.lane.b32.xlu1 %v4014_v35, %s3302_s29  ;;  %5664 = vst [vmem:[#allocation44_spill] sm:$0xff] %v4045_v48  ;;  %5665 = vst [vmem:[#allocation45_spill] sm:$0xff] %v4049_v29  ;;  %v4115_v15 = vsel %vm909_vm8, 1.0, %v5640_v50  ;;  %v1084_v53 = vrot.slane %v4124_v34, %v5645_v57  ;;  %v1080_v14 = vrot.slane %v4124_v34, %v3634_v39 }
 0x615   :  { %vm993_vm7 = vmand %vm909_vm8, %vm992_vm5  ;;  %v962_v11 = vrot.slane %v4115_v15, %v5645_v57  ;;  %v958_v47 = vrot.slane %v4115_v15, %v3634_v39  ;;  %v4165_v13 = vsel %vm1114_vm4, 1.0, %v5640_v50 }
 0x616   :  { %vm911_vm13 = vmand %vm909_vm8, %vm910_vm3  ;;  %v4131_v21 = vsel %vm993_vm7, 1.0, %v5640_v50  ;;  %vm1069_vm8 = vcmp.lt.s32.totalorder %v3623_v36, 126  ;;  %vm987_vm7 = vcmp.lt.s32.totalorder %v3623_v36, 30  ;;  %v1162_v62 = vrot.slane %v4165_v13, %v3634_v39 }
 0x617   :  { %vm1115_vm11 = vmand %vm1114_vm4, %vm910_vm3  ;;  %v4144_v23 = vsel %vm911_vm13, 1.0, %v5640_v50  ;;  %v1000_v32 = vrot.slane %v4131_v21, %v3634_v39  ;;  %v1004_v4 = vrot.slane %v4131_v21, %v5645_v57  ;;  %vm1151_vm3 = vcmp.lt.s32.totalorder %v3623_v36, 96 }
 0x618   :  { %1103 = vrot.lane.b32.xlu0 %v4018_v37, %s3303_s6  ;;  %941 = vrot.lane.b32.xlu1 %v4018_v37, %s3302_s29  ;;  %v4147_v24 = vsel %vm1115_vm11, 1.0, %v5640_v50  ;;  %v918_v41 = vrot.slane %v4144_v23, %v3634_v39  ;;  %vm1109_vm11 = vcmp.lt.s32.totalorder %v3623_v36, 98  ;;  %vm1029_vm13 = vcmp.lt.s32.totalorder %v3623_v36, 2  ;;  %vm1196_vm10 = vmand %vm1114_vm4, %vm992_vm5 }
 0x619   :  { %v1126_v51 = vrot.slane %v4147_v24, %v5645_v57  ;;  %v922_v58 = vrot.slane %v4144_v23, %v5645_v57  ;;  %v1166_v5 = vrot.slane %v4165_v13, %v5645_v57  ;;  %vm1191_vm5 = vcmp.lt.s32.totalorder %v3623_v36, 94 }
 0x61c   :  { %896 = vrot.lane.b32.xlu0 %v4014_v35, %s3304_s28  ;;  %1063 = vrot.lane.b32.xlu1 %v4018_v37, %s3305_s0 }
 0x620   :  { %985 = vrot.lane.b32.xlu0 %v4049_v29, %s3301_s2  ;;  %1065 = vrot.lane.b32.xlu1 %v4045_v48, %s3305_s0 }
 0x624   :  { %1023 = vrot.lane.b32.xlu0 %v4018_v37, %s3306_s27  ;;  %945 = vrot.lane.b32.xlu1 %v4049_v29, %s3302_s29 }
 0x628   :  { %1145 = vrot.lane.b32.xlu0 %v4018_v37, %s3307_s9  ;;  %979 = vrot.lane.b32.xlu1 %v4014_v35, %s3301_s2 }
 0x62c   :  { %902 = vrot.lane.b32.xlu0 %v4049_v29, %s3304_s28  ;;  %1061 = vrot.lane.b32.xlu1 %v4014_v35, %s3305_s0 }
 0x630   :  { %1027 = vrot.lane.b32.xlu0 %v4049_v29, %s3306_s27  ;;  %1105 = vrot.lane.b32.xlu1 %v4045_v48, %s3303_s6 }
 0x634   :  { %1143 = vrot.lane.b32.xlu0 %v4014_v35, %s3307_s9  ;;  %898 = vrot.lane.b32.xlu1 %v4018_v37, %s3304_s28 }
 0x638   :  { %1107 = vrot.lane.b32.xlu0 %v4049_v29, %s3303_s6  ;;  %1021 = vrot.lane.b32.xlu1 %v4014_v35, %s3306_s27 }
 0x63c   :  { %1025 = vrot.lane.b32.xlu0 %v4045_v48, %s3306_s27  ;;  %1101 = vrot.lane.b32.xlu1 %v4014_v35, %s3303_s6  ;;  %s3311_s6 = smov 45   ;;  %s3321_s27 = smov 4  }
 0x640   :  { %1183 = vrot.lane.b32.xlu0 %v4014_v35, %s3308_s7  ;;  %1147 = vrot.lane.b32.xlu1 %v4045_v48, %s3307_s9 }
 0x644   :  { %1187 = vrot.lane.b32.xlu0 %v4045_v48, %s3308_s7  ;;  %943 = vrot.lane.b32.xlu1 %v4045_v48, %s3302_s29 }
 0x648   :  { %1067 = vrot.lane.b32.xlu1 %v4049_v29, %s3305_s0  ;;  %s3313_s0 = smov 51  }
 0x64c   :  { %983 = vrot.lane.b32.xlu1 %v4045_v48, %s3301_s2 }
 0x650   :  { %900 = vrot.lane.b32.xlu1 %v4045_v48, %s3304_s28  ;;  %s3312_s28 = smov 83  }
 0x654   :  { %1149 = vrot.lane.b32.xlu1 %v4049_v29, %s3307_s9  ;;  %s3315_s9 = smov 80  }
 0x658   :  { %1185 = vrot.lane.b32.xlu1 %v4018_v37, %s3308_s7 }
 0x65c   :  { %1189 = vrot.lane.b32.xlu1 %v4049_v29, %s3308_s7  ;;  %s3314_s7 = smov 3  }
 0x686   :  { %v4088_v7 = vpop.permute.xlu0 %981  ;;  %v940_v9 = vpop.permute.xlu1 %939 }
 0x68a   :  { %v4090_v6 = vpop.permute.xlu0 %1103  ;;  %v4092_v16 = vpop.permute.xlu1 %941 }
 0x68b   :  { %v950_v19 = vsel %vm947_vm2, %v940_v9, %v4092_v16 }
 0x68c   :  { %v976_v55 = vmul.f32 %v962_v11, %v950_v19 }
 0x68e   :  { %v897_v0 = vpop.permute.xlu0 %896  ;;  %v1064_v2 = vpop.permute.xlu1 %1063 }
 0x692   :  { %v4094_v27 = vpop.permute.xlu0 %985  ;;  %v4096_v46 = vpop.permute.xlu1 %1065 }
 0x693   :  { %v1071_v61 = vsel %vm1069_vm8, %v1064_v2, %v4096_v46 }
 0x694   :  { %v1098_v52 = vmul.f32 %v1084_v53, %v1071_v61 }
 0x696   :  { %v4098_v12 = vpop.permute.xlu0 %1023  ;;  %v4100_v18 = vpop.permute.xlu1 %945 }
 0x697   :  { %v951_v63 = vsel %vm947_vm2, %v4100_v18, %v940_v9 }
 0x698   :  { %v975_v56 = vmul.f32 %v958_v47, %v951_v63 }
 0x69a   :  { %v4102_v22 = vpop.permute.xlu0 %1145  ;;  %v980_v60 = vpop.permute.xlu1 %979 }
 0x69b   :  { %v990_v11 = vsel %vm987_vm7, %v980_v60, %v4088_v7  ;;  %v991_v53 = vsel %vm987_vm7, %v4094_v27, %v980_v60 }
 0x69c   :  { %v1017_v60 = vmul.f32 %v1000_v32, %v991_v53  ;;  %v1088_v53 = vrot.slane %v4124_v34, %v3655_v44 }
 0x69e   :  { %v4104_v31 = vpop.permute.xlu1 %1061  ;;  %v4108_v20 = vpop.permute.xlu0 %902 }
 0x69f   :  { %5668 = vst [vmem:[#allocation46_spill] sm:$0xff] %v4108_v20  ;;  %v1072_v43 = vsel %vm1069_vm8, %v4104_v31, %v1064_v2  ;;  %v1040_v2 = vrot.slane %v4170_v1, %v3634_v39  ;;  %v908_v33 = vsel %vm904_vm12, %v4108_v20, %v897_v0  ;;  %v1265_v20 = vrot.slane %v1098_v52, 6 }
 0x6a0   :  { %v1097_v17 = vmul.f32 %v1080_v14, %v1072_v43  ;;  %v1044_v14 = vrot.slane %v4170_v1, %v5645_v57  ;;  %v1122_v43 = vrot.slane %v4147_v24, %v3634_v39  ;;  %v935_v29 = vmul.f32 %v918_v41, %v908_v33 }
 0x6a1   :  { %v1240_v33 = vrot.slane %v1017_v60, 4 }
 0x6a2   :  { %v4119_v25 = vpop.permute.xlu1 %1105  ;;  %v4137_v40 = vpop.permute.xlu0 %1027  ;;  %v1264_v30 = vrot.slane %v1097_v17, 6 }
 0x6a3   :  { %v1111_v9 = vsel %vm1109_vm11, %v4090_v6, %v4119_v25 }
 0x6a4   :  { %v1140_v26 = vmul.f32 %v1126_v51, %v1111_v9  ;;  %v1228_v9 = vrot.slane %v975_v56, 6 }
 0x6a6   :  { %v4149_v42 = vpop.permute.xlu1 %898  ;;  %v4190_v59 = vpop.permute.xlu0 %1143 }
 0x6a7   :  { %5669 = vst [vmem:[#allocation47_spill] sm:$0xff] %v4149_v42  ;;  %5670 = vst [vmem:[#allocation48_spill] sm:$0xff] %v4190_v59  ;;  %v907_v10 = vsel %vm904_vm12, %v897_v0, %v4149_v42  ;;  %v1154_v63 = vsel %vm1151_vm3, %v4190_v59, %v4102_v22  ;;  %v1229_v42 = vrot.slane %v976_v55, 6 }
 0x6a8   :  { %v936_v49 = vmul.f32 %v922_v58, %v907_v10  ;;  %v1179_v59 = vmul.f32 %v1162_v62, %v1154_v63  ;;  %v1277_v58 = vrot.slane %v1140_v26, 4  ;;  %v1296_v62 = vsel %vm118_vm0, %v935_v29, %v1228_v9 }
 0x6a9   :  { %v966_v63 = vrot.slane %v4115_v15, %v3655_v44 }
 0x6aa   :  { %v1022_v8 = vpop.permute.xlu1 %1021 }
 0x6ab   :  { %v1032_v19 = vsel %vm1029_vm13, %v1022_v8, %v4098_v12  ;;  %v1033_v61 = vsel %vm1029_vm13, %v4137_v40, %v1022_v8  ;;  %v1018_v8 = vmul.f32 %v1004_v4, %v990_v11  ;;  %v1297_v4 = vsel %vm118_vm0, %v936_v49, %v1229_v42 }
 0x6ac   :  { %v1058_v38 = vmul.f32 %v1044_v14, %v1032_v19  ;;  %v1057_v48 = vmul.f32 %v1040_v2, %v1033_v61  ;;  %v970_v61 = vrot.slane %v4115_v15, %v3658_v45  ;;  %v1008_v15 = vrot.slane %v4131_v21, %v3655_v44 }
 0x6ad   :  { %v1241_v32 = vrot.slane %v1018_v8, 4 }
 0x6ae   :  { %v4223_v47 = vpop.permute.xlu1 %1101  ;;  %v1253_v41 = vrot.slane %v1058_v38, 2  ;;  %v1252_v56 = vrot.slane %v1057_v48, 2  ;;  %v1108_v38 = vpop.permute.xlu0 %1107  ;;  %v1130_v48 = vrot.slane %v4147_v24, %v3655_v44 }
 0x6af   :  { %v1112_v0 = vsel %vm1109_vm11, %v4223_v47, %v4090_v6  ;;  %v1308_v6 = vsel %vm118_vm0, %v4014_v35, %v1264_v30  ;;  %v1309_v35 = vsel %vm118_vm0, %v4018_v37, %v1265_v20  ;;  %v1301_v26 = vsel %vm696_vm15, %v1297_v4, %v1241_v32 }
 0x6b0   :  { %v1139_v3 = vmul.f32 %v1122_v43, %v1112_v0  ;;  %v1048_v20 = vrot.slane %v4170_v1, %v3655_v44  ;;  %v1052_v37 = vrot.slane %v4170_v1, %v3658_v45  ;;  %v1134_v43 = vrot.slane %v4147_v24, %v3658_v45 }
 0x6b1   :  { %v1092_v0 = vrot.slane %v4124_v34, %v3658_v45  ;;  %v1012_v34 = vrot.slane %v4131_v21, %v3658_v45  ;;  %v1113_v21 = vsel %vm1109_vm11, %v1108_v38, %v4223_v47  ;;  %v1174_v47 = vrot.slane %v4165_v13, %v3658_v45 }
 0x6b2   :  { %v1276_v17 = vrot.slane %v1139_v3, 4  ;;  %v4234_v51 = vpop.permute.xlu1 %1147  ;;  %v1288_v3 = vrot.slane %v1179_v59, 2  ;;  %v1300_v59 = vsel %vm696_vm15, %v1296_v62, %v1240_v33  ;;  %v1026_v9 = vpop.permute.xlu0 %1025 }
 0x6b3   :  { %v1153_v10 = vsel %vm1151_vm3, %v4102_v22, %v4234_v51  ;;  %v1313_v22 = vsel %vm696_vm15, %v1309_v35, %v1277_v58  ;;  %v1304_v14 = vsel %vm136_vm1, %v1300_v59, %v1252_v56 }
 0x6b4   :  { %v1312_v55 = vsel %vm696_vm15, %v1308_v6, %v1276_v17  ;;  %v1180_v52 = vmul.f32 %v1166_v5, %v1153_v10  ;;  %v1305_v5 = vsel %vm136_vm1, %v1301_v26, %v1253_v41  ;;  %v1110_v17 = vsel %vm1109_vm11, %v4119_v25, %v1108_v38  ;;  %v5672_v26 = vld [vmem:[#allocation47_spill] sm:$0xff] }
 0x6b5   :  { %v1316_v42 = vsel %vm136_vm1, %v1312_v55, %v1288_v3  ;;  %v1170_v6 = vrot.slane %v4165_v13, %v3655_v44  ;;  %v1141_v55 = vmul.f32 %v1130_v48, %v1110_v17 }
 0x6b6   :  { %v1289_v2 = vrot.slane %v1180_v52, 2  ;;  %v944_v30 = vpop.permute.xlu1 %943  ;;  %v1320_v11 = vpack.c.bf16 %v1316_v42, %v1304_v14  ;;  %v1142_v52 = vmul.f32 %v1134_v43, %v1113_v21  ;;  %v1184_v42 = vpop.permute.xlu0 %1183 }
 0x6b7   :  { %v948_v8 = vsel %vm947_vm2, %v944_v30, %v4100_v18  ;;  %v949_v60 = vsel %vm947_vm2, %v4092_v16, %v944_v30  ;;  %v4303_v16 = vsel %vm1196_vm10, 1.0, %v5640_v50  ;;  %v5671_v30 = vld [vmem:[#allocation46_spill] sm:$0xff]  ;;  %v1278_v59 = vrot.slane %v1141_v55, 4 }
 0x6b8   :  { %v1317_v49 = vsel %vm136_vm1, %v1313_v22, %v1289_v2  ;;  %v977_v4 = vmul.f32 %v966_v63, %v949_v60  ;;  %v978_v41 = vmul.f32 %v970_v61, %v948_v8  ;;  %v1203_v32 = vrot.slane %v4303_v16, %v3634_v39  ;;  %v5673_v61 = vld [vmem:[#allocation44_spill] sm:$0xff] }
 0x6b9   :  { %v1321_v29 = vpack.c.bf16 %v1317_v49, %v1305_v5  ;;  %v1207_v62 = vrot.slane %v4303_v16, %v5645_v57  ;;  %v1211_v17 = vrot.slane %v4303_v16, %v3655_v44 }
 0x6ba   :  { %v1068_v19 = vpop.permute.xlu1 %1067  ;;  %v1230_v38 = vrot.slane %v977_v4, 6 }
 0x6bb   :  { %1344 = vmatprep.subr.bf16.mxu0 %v1321_v29  ;;  %v1070_v1 = vsel %vm1069_vm8, %v4096_v46, %v1068_v19  ;;  %v1073_v24 = vsel %vm1069_vm8, %v1068_v19, %v4104_v31  ;;  %v926_v46 = vrot.slane %v4144_v23, %v3655_v44  ;;  %v930_v31 = vrot.slane %v4144_v23, %v3658_v45 }
 0x6bc   :  { %1345 = vmatpush1.bf16.msra.mxu0 %v1320_v11  ;;  %v1099_v58 = vmul.f32 %v1088_v53, %v1070_v1  ;;  %v1100_v10 = vmul.f32 %v1092_v0, %v1073_v24  ;;  %v1279_v29 = vrot.slane %v1142_v52, 4  ;;  %v5674_v1 = vld [vmem:[#allocation48_spill] sm:$0xff] }
 0x6be   :  { %v984_v18 = vpop.permute.xlu1 %983  ;;  %v1266_v33 = vrot.slane %v1099_v58, 6  ;;  %v1267_v2 = vrot.slane %v1100_v10, 6 }
 0x6bf   :  { %v988_v23 = vsel %vm987_vm7, %v984_v18, %v4094_v27  ;;  %v989_v25 = vsel %vm987_vm7, %v4088_v7, %v984_v18  ;;  %v1030_v27 = vsel %vm1029_vm13, %v1026_v9, %v4137_v40  ;;  %v1031_v7 = vsel %vm1029_vm13, %v4098_v12, %v1026_v9  ;;  %v1188_v9 = vpop.permute.xlu0 %1187 }
 0x6c0   :  { %v1019_v3 = vmul.f32 %v1008_v15, %v989_v25  ;;  %v1020_v13 = vmul.f32 %v1012_v34, %v988_v23  ;;  %v1231_v40 = vrot.slane %v978_v41, 6  ;;  %v1059_v12 = vmul.f32 %v1048_v20, %v1031_v7 }
 0x6c1   :  { %v1060_v48 = vmul.f32 %v1052_v37, %v1030_v27  ;;  %v1310_v53 = vsel %vm118_vm0, %v5673_v61, %v1266_v33  ;;  %v5675_v37 = vld [vmem:[#allocation45_spill] sm:$0xff]  ;;  %vm1670_vm13 = vcmp.lt.s32.totalorder %v3623_v36, 125 }
 0x6c2   :  { %v901_v56 = vpop.permute.xlu1 %900  ;;  %v1242_v14 = vrot.slane %v1019_v3, 4  ;;  %v1243_v43 = vrot.slane %v1020_v13, 4  ;;  %v1311_v24 = vsel %vm118_vm0, %v5675_v37, %v1267_v2 }
 0x6c3   :  { %v905_v35 = vsel %vm904_vm12, %v901_v56, %v5671_v30  ;;  %v906_v22 = vsel %vm904_vm12, %v5672_v26, %v901_v56  ;;  %v1315_v10 = vsel %vm696_vm15, %v1311_v24, %v1279_v29 }
 0x6c4   :  { %v937_v5 = vmul.f32 %v926_v46, %v906_v22  ;;  %v938_v49 = vmul.f32 %v930_v31, %v905_v35  ;;  %v1254_v46 = vrot.slane %v1059_v12, 2  ;;  %v1255_v31 = vrot.slane %v1060_v48, 2 }
 0x6c6   :  { %v1298_v19 = vsel %vm118_vm0, %v937_v5, %v1230_v38  ;;  %v1299_v11 = vsel %vm118_vm0, %v938_v49, %v1231_v40  ;;  %v1150_v63 = vpop.permute.xlu1 %1149  ;;  %v5676_v38 = vmov 0  }
 0x6c7   :  { %v1152_v0 = vsel %vm1151_vm3, %v4234_v51, %v1150_v63  ;;  %v1155_v20 = vsel %vm1151_vm3, %v1150_v63, %v5674_v1  ;;  %v1303_v8 = vsel %vm696_vm15, %v1299_v11, %v1243_v43  ;;  %v1302_v60 = vsel %vm696_vm15, %v1298_v19, %v1242_v14 }
 0x6c8   :  { %v1181_v15 = vmul.f32 %v1170_v6, %v1152_v0  ;;  %v1182_v34 = vmul.f32 %v1174_v47, %v1155_v20  ;;  %v1215_v51 = vrot.slane %v4303_v16, %v3658_v45  ;;  %v1314_v6 = vsel %vm696_vm15, %v1310_v53, %v1278_v59 }
 0x6c9   :  { %v1307_v4 = vsel %vm136_vm1, %v1303_v8, %v1255_v31  ;;  %v1306_v41 = vsel %vm136_vm1, %v1302_v60, %v1254_v46  ;;  %vm1548_vm3 = vcmp.lt.s32.totalorder %v3623_v36, 48 }
 0x6ca   :  { %v1290_v21 = vrot.slane %v1181_v15, 2  ;;  %v1291_v18 = vrot.slane %v1182_v34, 2  ;;  %v1186_v58 = vpop.permute.xlu1 %1185 }
 0x6cb   :  { %v1193_v23 = vsel %vm1191_vm5, %v1186_v58, %v1188_v9  ;;  %v1194_v25 = vsel %vm1191_vm5, %v1184_v42, %v1186_v58 }
 0x6cc   :  { %v1220_v47 = vmul.f32 %v1203_v32, %v1194_v25  ;;  %v1221_v16 = vmul.f32 %v1207_v62, %v1193_v23  ;;  %v1319_v55 = vsel %vm136_vm1, %v1315_v10, %v1291_v18  ;;  %v1318_v52 = vsel %vm136_vm1, %v1314_v6, %v1290_v21  ;;  %v1328_v62 = vld [vmem:[%s5466_s10] sm:$0x1]  ;;  %s3316_s10 = smov 77  }
 0x6cd   :  { %v1323_v27 = vpack.c.bf16 %v1319_v55, %v1307_v4  ;;  %v1322_v7 = vpack.c.bf16 %v1318_v52, %v1306_v41  ;;  %v1467_v6 = vld [vmem:[%s5467_s12] sm:$0x3]  ;;  %s3310_s12 = smov 125  }
 0x6ce   :  { %v1324_v3 = vpack.c.bf16 %v1220_v47, %v1220_v47  ;;  %v1325_v13 = vpack.c.bf16 %v1221_v16, %v1221_v16  ;;  %v1190_v56 = vpop.permute.xlu1 %1189  ;;  %v1456_v41 = vld [vmem:[%s5468_s11] sm:$0x3]  ;;  %s3309_s11 = smov 48  }
 0x6cf   :  { %v1192_v33 = vsel %vm1191_vm5, %v1188_v9, %v1190_v56  ;;  %v1195_v2 = vsel %vm1191_vm5, %v1190_v56, %v1184_v42  ;;  %1385 = vmatprep.subr.bf16.mxu1 %v1323_v27  ;;  %vm1710_vm5 = vcmp.lt.s32.totalorder %v3623_v36, 83 }
 0x6d0   :  { %v1222_v30 = vmul.f32 %v1211_v17, %v1192_v33  ;;  %v1223_v35 = vmul.f32 %v1215_v51, %v1195_v2  ;;  %3196 = vmatprep.subr.msk.bf16.mxu0 %vm730_vm6, %v1325_v13  ;;  %1386 = vmatpush1.bf16.msra.mxu1 %v1322_v7  ;;  %v1333_v32 = vsel %vm730_vm6, %v1324_v3, 0 }
 0x6d1   :  { %1347 = vmatpush1.bf16.msra.mxu0 %v1333_v32 }
 0x6d2   :  { %v1326_v26 = vpack.c.bf16 %v1222_v30, %v1222_v30  ;;  %v1327_v22 = vpack.c.bf16 %v1223_v35, %v1223_v35 }
 0x6d4   :  { %3197 = vmatmul.mubr.msk.bf16.vlgmr.msra.gmra.mrb[8].mxu0 %vm726_vm9, %v1328_v62  ;;  %3198 = vmatprep.subr.msk.bf16.mxu1 %vm730_vm6, %v1327_v22  ;;  %v1339_v42 = vsel %vm730_vm6, %v1326_v26, 0  ;;  %v5677_v26 = vld [vmem:[#allocation2_spill] sm:$0xff] }
 0x6d5   :  { %1388 = vmatpush1.bf16.msra.mxu1 %v1339_v42  ;;  %1977 = vmatprep.mubr.bf16.mxu0 %v5676_v38  ;;  %v5579_v22 = vrot.slane %v5677_v26, 6  ;;  %v5678_v42 = vld [vmem:[#allocation3_spill] sm:$0xff] }
 0x6d8   :  { %3199 = vmatmul.mubr.msk.bf16.vlgmr.msra.gmra.mrb[8].mxu1 %vm726_vm9, %v1328_v62 }
 0x6d9   :  { %2018 = vmatprep.mubr.bf16.mxu1 %v5676_v38 }
 0x7a7   :  { %v1378_v40 = vpop.f32.mrb[8].mxu0 }
 0x7a8   :  { %v1426_v5 = vsel %vm118_vm0, %v1378_v40, 0.0  ;;  %v1380_v49 = vpop.f32.mrb[9].mxu0 }
 0x7a9   :  { %v1427_v59 = vsel %vm118_vm0, %v1380_v49, 0.0  ;;  %v1382_v12 = vpop.f32.mrb[10].mxu0 }
 0x7aa   :  { %v1428_v48 = vadd.f32 %v1427_v59, %v1426_v5  ;;  %v1383_v29 = vpop.f32.mrb[11].mxu0  ;;  %v5679_v5 = vrot.slane %v5677_v26, 4  ;;  %v5680_v59 = vrot.slane %v5678_v42, 4 }
 0x7ab   :  { %v1419_v14 = vpop.f32.mrb[8].mxu1  ;;  %v5681_v29 = vld [vmem:[#allocation4_spill] sm:$0xff] }
 0x7ac   :  { %v1429_v43 = vsel %vm118_vm0, %v1419_v14, 0.0  ;;  %v1421_v19 = vpop.f32.mrb[9].mxu1 }
 0x7ad   :  { %v1430_v11 = vadd.f32 %v1429_v43, %v1428_v48  ;;  %v1431_v63 = vsel %vm118_vm0, %v1421_v19, 0.0  ;;  %v1423_v61 = vpop.f32.mrb[10].mxu1 }
 0x7ae   :  { %v1424_v53 = vpop.f32.mrb[11].mxu1  ;;  %v5683_v61 = vld [vmem:[#allocation5_spill] sm:$0xff] }
 0x7af   :  { %v1432_v0 = vadd.f32 %v1431_v63, %v1430_v11  ;;  %v5577_v63 = vrot.slane %v5681_v29, 6  ;;  %v5684_v53 = vrot.slane %v5683_v61, 4 }
 0x7b1   :  { %1433 = vadd.xlane.f32.xlu0 %v1432_v0 }
 0x83e   :  { %v1434_v1 = vpop.xlane.xlu0 %1433 }
 0x83f   :  { %v1435_v20 = vmul.f32 0.001953125, %v1434_v1 }
 0x841   :  { %v1436_v37 = vsub.f32 %v1378_v40, %v1435_v20  ;;  %v1437_v24 = vsub.f32 %v1380_v49, %v1435_v20  ;;  %v1438_v15 = vsub.f32 %v1419_v14, %v1435_v20  ;;  %v1439_v34 = vsub.f32 %v1421_v19, %v1435_v20 }
 0x842   :  { %v5578_v40 = vrot.slane %v5678_v42, 6  ;;  %v5682_v14 = vrot.slane %v5681_v29, 4  ;;  %v5576_v20 = vrot.slane %v5683_v61, 6 }
 0x843   :  { %v1440_v8 = vmul.f32 %v1436_v37, %v1436_v37  ;;  %v1441_v60 = vmul.f32 %v1437_v24, %v1437_v24  ;;  %v1442_v46 = vmul.f32 %v1438_v15, %v1438_v15  ;;  %v1443_v31 = vmul.f32 %v1439_v34, %v1439_v34 }
 0x845   :  { %v1444_v17 = vsel %vm118_vm0, %v1440_v8, 0.0  ;;  %v1445_v51 = vsel %vm118_vm0, %v1441_v60, 0.0  ;;  %v1447_v21 = vsel %vm118_vm0, %v1442_v46, 0.0  ;;  %v1449_v58 = vsel %vm118_vm0, %v1443_v31, 0.0 }
 0x846   :  { %v1446_v9 = vadd.f32 %v1445_v51, %v1444_v17  ;;  %v4486_v51 = vld [vmem:[%s5609_s8] sm:$0xf] }
 0x847   :  { %vm1510_vm10 = vcmp.ge.s32.totalorder %v4486_v51, 3  ;;  %vm1715_vm4 = vcmp.lt.s32.totalorder %v4486_v51, 13 }
 0x848   :  { %v1448_v18 = vadd.f32 %v1447_v21, %v1446_v9  ;;  %v4492_v9 = vld [vmem:[%s5611_s1] sm:$0xf] }
 0x849   :  { %vm1593_vm12 = vcmp.lt.s32.totalorder %v4492_v9, 13  ;;  %vm1511_vm2 = vcmp.ge.s32.totalorder %v4492_v9, 3 }
 0x84a   :  { %v1450_v10 = vadd.f32 %v1449_v58, %v1448_v18  ;;  %vm1594_vm8 = vmand %vm1510_vm10, %vm1593_vm12  ;;  %v4504_v58 = vsel %vm1510_vm10, 1.0, %v5640_v50 }
 0x84b   :  { %vm1716_vm7 = vmand %vm1715_vm4, %vm1511_vm2 }
 0x84c   :  { %1451 = vadd.xlane.f32.xlu1 %v1450_v10  ;;  %v4509_v10 = vsel %vm1593_vm12, 1.0, %v5640_v50  ;;  %vm1512_vm11 = vmand %vm1510_vm10, %vm1511_vm2  ;;  %vm1588_vm10 = vcmp.lt.s32.totalorder %v3623_v36, 45 }
 0x84d   :  { %v1689_v54 = vrot.slane %v4509_v10, %v3655_v44 }
 0x85d   :  { %1470 = vperm.xlu1 %3265, %v1467_v6  }
 0x8d9   :  { %v1452_v23 = vpop.xlane.xlu1 %1451 }
 0x8da   :  { %v1453_v25 = vmul.f32 0.001953125, %v1452_v23 }
 0x8dc   :  { %v1454_v4 = vadd.f32 1e-05, %v1453_v25  ;;  %v4523_v25 = vsel %vm1594_vm8, 1.0, %v5640_v50  ;;  %vm1505_vm8 = vcmp.lt.s32.totalorder %v3623_v36, 51 }
 0x8dd   :  { %v1471_v13 = vpop.permute.xlu1 %1470 }
 0x8de   :  { %3276 = vrsqrt.f32 %v1454_v4  ;;  %v1563_v4 = vrot.slane %v4504_v58, %v5645_v57 }
 0x8e8   :  { %v3277_v47 = vpop.eup %3276 }
 0x8e9   :  { %v1457_v16 = vmul.f32 %v3277_v47, %v1456_v41  ;;  %v1685_v41 = vrot.slane %v4509_v10, %v5645_v57  ;;  %v4531_v47 = vsel %vm1716_vm7, 1.0, %v5640_v50  ;;  %vm1752_vm7 = vcmp.lt.s32.totalorder %v3623_v36, 80 }
 0x8ea   :  { %v1735_v26 = vrot.slane %v4531_v47, %v3658_v45 }
 0x8eb   :  { %1460 = vperm.xlu0 %3266, %v1457_v16  }
 0x96a   :  { %v1461_v55 = vpop.permute.xlu0 %1460 }
 0x96b   :  { %v1463_v52 = vmul.f32 %v1461_v55, %v1436_v37  ;;  %v1464_v27 = vmul.f32 %v1461_v55, %v1437_v24  ;;  %v1465_v7 = vmul.f32 %v1461_v55, %v1438_v15  ;;  %v1466_v3 = vmul.f32 %v1461_v55, %v1439_v34 }
 0x96c   :  { %v4537_v55 = vsel %vm1512_vm11, 1.0, %v5640_v50  ;;  %vm1797_vm11 = vmand %vm1715_vm4, %vm1593_vm12  ;;  %vm1792_vm12 = vcmp.lt.s32.totalorder %v3623_v36, 77 }
 0x96d   :  { %v4387_v56 = vadd.f32 %v1471_v13, %v1463_v52  ;;  %v4389_v33 = vadd.f32 %v1471_v13, %v1464_v27  ;;  %v4391_v2 = vadd.f32 %v1471_v13, %v1465_v7  ;;  %v4393_v30 = vadd.f32 %v1471_v13, %v1466_v3 }
 0x96e   :  { %v4542_v52 = vsel %vm1511_vm2, 1.0, %v5640_v50  ;;  %v1605_v7 = vrot.slane %v4523_v25, %v5645_v57  ;;  %vm1630_vm2 = vcmp.lt.s32.totalorder %v3623_v36, 3  ;;  %v1519_v27 = vrot.slane %v4537_v55, %v3634_v39 }
 0x96f   :  { %v5583_v35 = vmax.f32 %v4387_v56, 0.0  ;;  %v5582_v32 = vmax.f32 %v4389_v33, 0.0  ;;  %v5580_v62 = vmax.f32 %v4391_v2, 0.0  ;;  %v5581_v48 = vmax.f32 %v4393_v30, 0.0 }
 0x970   :  { %v1641_v28 = vrot.slane %v4542_v52, %v3634_v39 }
 0x971   :  { %v1481_v49 = vadd.f32 %v5583_v35, %v5679_v5  ;;  %v1482_v12 = vadd.f32 %v5582_v32, %v5680_v59  ;;  %v1483_v43 = vadd.f32 %v5580_v62, %v5682_v14  ;;  %v1484_v0 = vadd.f32 %v5581_v48, %v5684_v53 }
 0x972   :  { %v1727_v59 = vrot.slane %v4531_v47, %v5645_v57  ;;  %v1645_v53 = vrot.slane %v4542_v52, %v5645_v57 }
 0x973   :  { %v4415_v19 = vadd.f32 %v5579_v22, %v1481_v49  ;;  %v4419_v11 = vadd.f32 %v5578_v40, %v1482_v12  ;;  %v4430_v1 = vadd.f32 %v5577_v63, %v1483_v43  ;;  %v4437_v37 = vadd.f32 %v5576_v20, %v1484_v0 }
 0x974   :  { %v4567_v12 = vsel %vm1715_vm4, 1.0, %v5640_v50  ;;  %v1523_v43 = vrot.slane %v4537_v55, %v5645_v57  ;;  %v1723_v63 = vrot.slane %v4531_v47, %v3634_v39  ;;  %vm2100_vm4 = vcmp.ge.s32.totalorder %v4492_v9, 4 }
 0x975   :  { %1542 = vrot.lane.b32.xlu1 %v4419_v11, %s3309_s11  ;;  %1540 = vrot.lane.b32.xlu0 %v4415_v19, %s3309_s11  ;;  %v1767_v35 = vrot.slane %v4567_v12, %v5645_v57 }
 0x979   :  { %1666 = vrot.lane.b32.xlu1 %v4430_v1, %s3310_s12  ;;  %1664 = vrot.lane.b32.xlu0 %v4419_v11, %s3310_s12 }
 0x97d   :  { %1580 = vrot.lane.b32.xlu1 %v4415_v19, %s3311_s6  ;;  %1546 = vrot.lane.b32.xlu0 %v4437_v37, %s3309_s11 }
 0x981   :  { %1662 = vrot.lane.b32.xlu1 %v4415_v19, %s3310_s12  ;;  %1582 = vrot.lane.b32.xlu0 %v4419_v11, %s3311_s6 }
 0x985   :  { %1706 = vrot.lane.b32.xlu1 %v4430_v1, %s3312_s28  ;;  %1704 = vrot.lane.b32.xlu0 %v4419_v11, %s3312_s28 }
 0x989   :  { %1499 = vrot.lane.b32.xlu1 %v4419_v11, %s3313_s0  ;;  %1497 = vrot.lane.b32.xlu0 %v4415_v19, %s3313_s0 }
 0x98d   :  { %1622 = vrot.lane.b32.xlu1 %v4415_v19, %s3314_s7  ;;  %1586 = vrot.lane.b32.xlu0 %v4437_v37, %s3311_s6 }
 0x991   :  { %1702 = vrot.lane.b32.xlu1 %v4415_v19, %s3312_s28  ;;  %1624 = vrot.lane.b32.xlu0 %v4419_v11, %s3314_s7 }
 0x995   :  { %1748 = vrot.lane.b32.xlu1 %v4430_v1, %s3315_s9  ;;  %1746 = vrot.lane.b32.xlu0 %v4419_v11, %s3315_s9 }
 0x999   :  { %1544 = vrot.lane.b32.xlu1 %v4430_v1, %s3309_s11  ;;  %1503 = vrot.lane.b32.xlu0 %v4437_v37, %s3313_s0 }
 0x99d   :  { %1668 = vrot.lane.b32.xlu1 %v4437_v37, %s3310_s12  ;;  %1628 = vrot.lane.b32.xlu0 %v4437_v37, %s3314_s7 }
 0x9a1   :  { %1584 = vrot.lane.b32.xlu1 %v4430_v1, %s3311_s6  ;;  %1744 = vrot.lane.b32.xlu0 %v4415_v19, %s3315_s9 }
 0x9a5   :  { %1501 = vrot.lane.b32.xlu1 %v4430_v1, %s3313_s0  ;;  %1708 = vrot.lane.b32.xlu0 %v4437_v37, %s3312_s28 }
 0x9a9   :  { %1750 = vrot.lane.b32.xlu1 %v4437_v37, %s3315_s9  ;;  %1626 = vrot.lane.b32.xlu0 %v4430_v1, %s3314_s7  ;;  %s3319_s9 = smov 68  }
 0x9ad   :  { %1786 = vrot.lane.b32.xlu1 %v4419_v11, %s3316_s10  ;;  %1784 = vrot.lane.b32.xlu0 %v4415_v19, %s3316_s10 }
 0x9b1   :  { %1790 = vrot.lane.b32.xlu1 %v4437_v37, %s3316_s10  ;;  %1788 = vrot.lane.b32.xlu0 %v4430_v1, %s3316_s10  ;;  %s3320_s10 = smov 60  }
 0x9e7   :  { %v4467_v24 = vpop.permute.xlu1 %1542  ;;  %v4469_v15 = vpop.permute.xlu0 %1540 }
 0x9e8   :  { %v1551_v5 = vsel %vm1548_vm3, %v4469_v15, %v4467_v24 }
 0x9e9   :  { %v1577_v40 = vmul.f32 %v1563_v4, %v1551_v5 }
 0x9eb   :  { %v4471_v34 = vpop.permute.xlu1 %1666  ;;  %v4473_v8 = vpop.permute.xlu0 %1664  ;;  %v1830_v61 = vrot.slane %v1577_v40, 6 }
 0x9ec   :  { %v1672_v49 = vsel %vm1670_vm13, %v4473_v8, %v4471_v34 }
 0x9ed   :  { %v1699_v22 = vmul.f32 %v1685_v41, %v1672_v49 }
 0x9ef   :  { %v4475_v60 = vpop.permute.xlu1 %1580  ;;  %v4477_v46 = vpop.permute.xlu0 %1546  ;;  %v1866_v41 = vrot.slane %v1699_v22, 6  ;;  %v1531_v22 = vrot.slane %v4537_v55, %v3658_v45 }
 0x9f3   :  { %v4479_v31 = vpop.permute.xlu1 %1662  ;;  %v4481_v17 = vpop.permute.xlu0 %1582 }
 0x9f4   :  { %v1591_v62 = vsel %vm1588_vm10, %v4475_v60, %v4481_v17 }
 0x9f7   :  { %v4495_v21 = vpop.permute.xlu1 %1706  ;;  %v4499_v18 = vpop.permute.xlu0 %1704 }
 0x9f8   :  { %v1712_v14 = vsel %vm1710_vm5, %v4499_v18, %v4495_v21 }
 0x9f9   :  { %v1741_v20 = vmul.f32 %v1727_v59, %v1712_v14  ;;  %v1619_v59 = vmul.f32 %v1605_v7, %v1591_v62  ;;  %v1693_v14 = vrot.slane %v4509_v10, %v3658_v45 }
 0x9fb   :  { %v4515_v6 = vpop.permute.xlu1 %1499  ;;  %v4519_v23 = vpop.permute.xlu0 %1497  ;;  %v1878_v7 = vrot.slane %v1741_v20, 4  ;;  %v1673_v20 = vsel %vm1670_vm13, %v4479_v31, %v4473_v8  ;;  %v1842_v62 = vrot.slane %v1619_v59, 4 }
 0x9fc   :  { %v1508_v0 = vsel %vm1505_vm8, %v4519_v23, %v4515_v6 }
 0x9fd   :  { %v1537_v5 = vmul.f32 %v1523_v43, %v1508_v0 }
 0x9ff   :  { %v4550_v3 = vpop.permute.xlu1 %1622  ;;  %v4552_v13 = vpop.permute.xlu0 %1586  ;;  %v1898_v4 = vsel %vm118_vm0, %v1537_v5, %v1830_v61  ;;  %v1910_v61 = vsel %vm118_vm0, %v4419_v11, %v1866_v41 }
 0xa00   :  { %v1914_v40 = vsel %vm696_vm15, %v1910_v61, %v1878_v7  ;;  %v5686_v7 = vrot.slane %v4504_v58, %v3634_v39  ;;  %v1592_v41 = vsel %vm1588_vm10, %v4552_v13, %v4475_v60 }
 0xa03   :  { %v4591_v48 = vpop.permute.xlu1 %1702  ;;  %v4593_v32 = vpop.permute.xlu0 %1624 }
 0xa04   :  { %v1633_v16 = vsel %vm1630_vm2, %v4550_v3, %v4593_v32  ;;  %v1713_v8 = vsel %vm1710_vm5, %v4591_v48, %v4499_v18 }
 0xa05   :  { %v1659_v49 = vmul.f32 %v1645_v53, %v1633_v16  ;;  %v1731_v53 = vrot.slane %v4531_v47, %v3655_v44  ;;  %v1740_v11 = vmul.f32 %v1723_v63, %v1713_v8 }
 0xa07   :  { %v4615_v43 = vpop.permute.xlu1 %1748  ;;  %v4617_v16 = vpop.permute.xlu0 %1746  ;;  %v1854_v29 = vrot.slane %v1659_v49, 2 }
 0xa08   :  { %v1754_v0 = vsel %vm1752_vm7, %v4617_v16, %v4615_v43 }
 0xa09   :  { %v1781_v42 = vmul.f32 %v1767_v35, %v1754_v0  ;;  %v1552_v35 = vsel %vm1548_vm3, %v4477_v46, %v4469_v15  ;;  %v1902_v0 = vsel %vm696_vm15, %v1898_v4, %v1842_v62 }
 0xa0a   :  { %v1906_v4 = vsel %vm136_vm1, %v1902_v0, %v1854_v29  ;;  %v1576_v61 = vmul.f32 %v5686_v7, %v1552_v35  ;;  %v1653_v35 = vrot.slane %v4542_v52, %v3658_v45 }
 0xa0b   :  { %v1890_v5 = vrot.slane %v1781_v42, 2  ;;  %v1545_v49 = vpop.permute.xlu1 %1544  ;;  %v1504_v59 = vpop.permute.xlu0 %1503  ;;  %v5685_v42 = vrot.slane %v4509_v10, %v3634_v39 }
 0xa0c   :  { %v1509_v18 = vsel %vm1505_vm8, %v1504_v59, %v4519_v23  ;;  %v1550_v29 = vsel %vm1548_vm3, %v4467_v24, %v1545_v49 }
 0xa0d   :  { %v1698_v15 = vmul.f32 %v5685_v42, %v1673_v20  ;;  %v1918_v62 = vsel %vm136_vm1, %v1914_v40, %v1890_v5  ;;  %v1549_v20 = vsel %vm1548_vm3, %v1545_v49, %v4477_v46  ;;  %v4688_v5 = vsel %vm1797_vm11, 1.0, %v5640_v50 }
 0xa0e   :  { %v1922_v10 = vpack.c.bf16 %v1918_v62, %v1906_v4  ;;  %v1536_v60 = vmul.f32 %v1519_v27, %v1509_v18  ;;  %v5687_v49 = vrot.slane %v4523_v25, %v3634_v39  ;;  %v1829_v18 = vrot.slane %v1576_v61, 6 }
 0xa0f   :  { %v1669_v23 = vpop.permute.xlu1 %1668  ;;  %v4683_v40 = vpop.permute.xlu0 %1628  ;;  %v1865_v8 = vrot.slane %v1698_v15, 6  ;;  %v1877_v4 = vrot.slane %v1740_v11, 4  ;;  %v1804_v15 = vrot.slane %v4688_v5, %v3634_v39  ;;  %vm2099_vm3 = vcmp.ge.s32.totalorder %v4486_v51, 4 }
 0xa10   :  { %v1671_v63 = vsel %vm1670_vm13, %v4471_v34, %v1669_v23  ;;  %v1674_v46 = vsel %vm1670_vm13, %v1669_v23, %v4479_v31  ;;  %v1634_v24 = vsel %vm1630_vm2, %v4683_v40, %v4550_v3  ;;  %1945 = vmatprep.subr.bf16.mxu0 %v1922_v10  ;;  %v1618_v0 = vmul.f32 %v5687_v49, %v1592_v41 }
 0xa11   :  { %v1700_v27 = vmul.f32 %v1689_v54, %v1671_v63  ;;  %v1658_v42 = vmul.f32 %v1641_v28, %v1634_v24  ;;  %v5688_v34 = vrot.slane %v4504_v58, %v3655_v44  ;;  %v5689_v31 = vrot.slane %v4504_v58, %v3658_v45 }
 0xa12   :  { %v1701_v23 = vmul.f32 %v1693_v14, %v1674_v46  ;;  %v1816_v54 = vrot.slane %v4688_v5, %v3658_v45  ;;  %v1808_v28 = vrot.slane %v4688_v5, %v5645_v57  ;;  %v1897_v11 = vsel %vm118_vm0, %v1536_v60, %v1829_v18 }
 0xa13   :  { %v1578_v62 = vmul.f32 %v5688_v34, %v1550_v29  ;;  %v1579_v7 = vmul.f32 %v5689_v31, %v1549_v20  ;;  %v1585_v3 = vpop.permute.xlu1 %1584  ;;  %v1745_v10 = vpop.permute.xlu0 %1744  ;;  %v1867_v41 = vrot.slane %v1700_v27, 6  ;;  %v1909_v61 = vsel %vm118_vm0, %v4415_v19, %v1865_v8 }
 0xa14   :  { %v1590_v58 = vsel %vm1588_vm10, %v4481_v17, %v1585_v3  ;;  %v1755_v14 = vsel %vm1752_vm7, %v1745_v10, %v4617_v16  ;;  %v1841_v20 = vrot.slane %v1618_v0, 4  ;;  %v1853_v29 = vrot.slane %v1658_v42, 2 }
 0xa15   :  { %v1812_v63 = vrot.slane %v4688_v5, %v3655_v44  ;;  %v1913_v60 = vsel %vm696_vm15, %v1909_v61, %v1877_v4  ;;  %v1831_v46 = vrot.slane %v1578_v62, 6  ;;  %v1832_v24 = vrot.slane %v1579_v7, 6  ;;  %v1929_v5 = vld [vmem:[%s5469_s13] sm:$0x1] }
 0xa16   :  { %v5690_v17 = vrot.slane %v4567_v12, %v3634_v39  ;;  %v1901_v16 = vsel %vm696_vm15, %v1897_v11, %v1841_v20  ;;  %v1868_v27 = vrot.slane %v1701_v23, 6  ;;  %v1589_v19 = vsel %vm1588_vm10, %v1585_v3, %v4552_v13 }
 0xa17   :  { %v5691_v8 = vrot.slane %v4523_v25, %v3655_v44  ;;  %v1502_v42 = vpop.permute.xlu1 %1501  ;;  %v1709_v18 = vpop.permute.xlu0 %1708  ;;  %v1911_v4 = vsel %vm118_vm0, %v4430_v1, %v1867_v41  ;;  %v1905_v7 = vsel %vm136_vm1, %v1901_v16, %v1853_v29  ;;  %v5692_v13 = vrot.slane %v4537_v55, %v3655_v44 }
 0xa18   :  { %v1780_v49 = vmul.f32 %v5690_v17, %v1755_v14  ;;  %v1506_v62 = vsel %vm1505_vm8, %v1502_v42, %v1504_v59  ;;  %v1507_v31 = vsel %vm1505_vm8, %v4515_v6, %v1502_v42  ;;  %v1711_v3 = vsel %vm1710_vm5, %v4495_v21, %v1709_v18 }
 0xa19   :  { %v1620_v0 = vmul.f32 %v5691_v8, %v1590_v58  ;;  %v1538_v23 = vmul.f32 %v5692_v13, %v1507_v31  ;;  %v1714_v1 = vsel %vm1710_vm5, %v1709_v18, %v4591_v48  ;;  %v1539_v6 = vmul.f32 %v1531_v22, %v1506_v62  ;;  %vm2101_vm5 = vmand %vm2099_vm3, %vm2100_vm4 }
 0xa1a   :  { %v1889_v34 = vrot.slane %v1780_v49, 2  ;;  %v1742_v11 = vmul.f32 %v1731_v53, %v1711_v3  ;;  %v1743_v41 = vmul.f32 %v1735_v26, %v1714_v1  ;;  %v1912_v21 = vsel %vm118_vm0, %v4437_v37, %v1868_v27 }
 0xa1b   :  { %v5693_v48 = vrot.slane %v4523_v25, %v3658_v45  ;;  %v1843_v14 = vrot.slane %v1620_v0, 4  ;;  %v1751_v61 = vpop.permute.xlu1 %1750  ;;  %v1627_v20 = vpop.permute.xlu0 %1626  ;;  %v1899_v22 = vsel %vm118_vm0, %v1538_v23, %v1831_v46  ;;  %v5694_v37 = vrot.slane %v4567_v12, %v3655_v44 }
 0xa1c   :  { %v1917_v59 = vsel %vm136_vm1, %v1913_v60, %v1889_v34  ;;  %v1879_v29 = vrot.slane %v1742_v11, 4  ;;  %v1880_v60 = vrot.slane %v1743_v41, 4  ;;  %v1753_v47 = vsel %vm1752_vm7, %v4615_v43, %v1751_v61 }
 0xa1d   :  { %v1621_v58 = vmul.f32 %v5693_v48, %v1589_v19  ;;  %v1921_v55 = vpack.c.bf16 %v1917_v59, %v1905_v7  ;;  %v1756_v26 = vsel %vm1752_vm7, %v1751_v61, %v1745_v10  ;;  %v1782_v25 = vmul.f32 %v5694_v37, %v1753_v47 }
 0xa1e   :  { %v1631_v53 = vsel %vm1630_vm2, %v1627_v20, %v4683_v40  ;;  %v1632_v46 = vsel %vm1630_vm2, %v4593_v32, %v1627_v20  ;;  %v1900_v17 = vsel %vm118_vm0, %v1539_v6, %v1832_v24  ;;  %v5695_v43 = vrot.slane %v4567_v12, %v3658_v45 }
 0xa1f   :  { %1946 = vmatpush1.bf16.msra.mxu0 %v1921_v55  ;;  %v5696_v10 = vrot.slane %v4542_v52, %v3655_v44  ;;  %v1661_v27 = vmul.f32 %v1653_v35, %v1631_v53  ;;  %v1844_v40 = vrot.slane %v1621_v58, 4  ;;  %v1903_v19 = vsel %vm696_vm15, %v1899_v22, %v1843_v14  ;;  %v1787_v0 = vpop.permute.xlu1 %1786  ;;  %v1785_v24 = vpop.permute.xlu0 %1784 }
 0xa20   :  { %v1783_v49 = vmul.f32 %v5695_v43, %v1756_v26  ;;  %v1915_v32 = vsel %vm696_vm15, %v1911_v4, %v1879_v29  ;;  %v1891_v8 = vrot.slane %v1782_v25, 2  ;;  %v1795_v34 = vsel %vm1792_vm12, %v1785_v24, %v1787_v0 }
 0xa21   :  { %v1660_v16 = vmul.f32 %v5696_v10, %v1632_v46  ;;  %v1856_v12 = vrot.slane %v1661_v27, 2  ;;  %v1821_v52 = vmul.f32 %v1804_v15, %v1795_v34  ;;  %v1904_v35 = vsel %vm696_vm15, %v1900_v17, %v1844_v40 }
 0xa22   :  { %v1892_v42 = vrot.slane %v1783_v49, 2  ;;  %v1919_v62 = vsel %vm136_vm1, %v1915_v32, %v1891_v8  ;;  %v1916_v31 = vsel %vm696_vm15, %v1912_v21, %v1880_v60  ;;  %vm2291_vm13 = vcmp.lt.s32.totalorder %v4486_v51, 12 }
 0xa23   :  { %v1855_v18 = vrot.slane %v1660_v16, 2  ;;  %v1908_v7 = vsel %vm136_vm1, %v1904_v35, %v1856_v12  ;;  %v1791_v23 = vpop.permute.xlu1 %1790  ;;  %v1789_v3 = vpop.permute.xlu0 %1788  ;;  %v1925_v41 = vpack.c.bf16 %v1821_v52, %v1821_v52  ;;  %vm2182_vm10 = vcmp.lt.s32.totalorder %v4492_v9, 12  ;;  %vm2292_vm8 = vmand %vm2291_vm13, %vm2100_vm4 }
 0xa24   :  { %v1920_v13 = vsel %vm136_vm1, %v1916_v31, %v1892_v42  ;;  %v1796_v6 = vsel %vm1792_vm12, %v1791_v23, %v1785_v24  ;;  %v1793_v15 = vsel %vm1792_vm12, %v1789_v3, %v1791_v23  ;;  %v1794_v11 = vsel %vm1792_vm12, %v1787_v0, %v1789_v3  ;;  %vm2183_vm2 = vmand %vm2099_vm3, %vm2182_vm10 }
 0xa25   :  { %v1907_v4 = vsel %vm136_vm1, %v1903_v19, %v1855_v18  ;;  %v1924_v1 = vpack.c.bf16 %v1920_v13, %v1908_v7  ;;  %v1824_v21 = vmul.f32 %v1816_v54, %v1796_v6  ;;  %v1822_v48 = vmul.f32 %v1808_v28, %v1794_v11  ;;  %v2068_v7 = vld [vmem:[%s5470_s15] sm:$0x3]  ;;  %s3318_s15 = smov 124   ;;  %vm2347_vm7 = vmand %vm2291_vm13, %vm2182_vm10 }
 0xa26   :  { %v1923_v59 = vpack.c.bf16 %v1919_v62, %v1907_v4  ;;  %v1823_v58 = vmul.f32 %v1812_v63, %v1793_v15  ;;  %v1934_v55 = vsel %vm730_vm6, %v1925_v41, 0  ;;  %v4937_v51 = vsel %vm2182_vm10, 1.0, %v5640_v50 }
 0xa27   :  { %1986 = vmatprep.subr.bf16.mxu1 %v1924_v1  ;;  %v1928_v14 = vpack.c.bf16 %v1824_v21, %v1824_v21  ;;  %v1926_v61 = vpack.c.bf16 %v1822_v48, %v1822_v48  ;;  %v2057_v1 = vld [vmem:[%s5471_s14] sm:$0x3]  ;;  %s3317_s14 = smov 64   ;;  %vm2137_vm11 = vcmp.lt.s32.totalorder %v3623_v36, 64  ;;  %vm2259_vm12 = vcmp.lt.s32.totalorder %v3623_v36, 124 }
 0xa28   :  { %1987 = vmatpush1.bf16.msra.mxu1 %v1923_v59  ;;  %v1927_v20 = vpack.c.bf16 %v1823_v58, %v1823_v58  ;;  %vm5747_vm10 = vcmp.lt.s32.totalorder %v3623_v36, 15 }
 0xa29   :  { %3208 = vmatprep.subr.msk.bf16.mxu0 %vm730_vm6, %v1926_v61  ;;  %3210 = vmatprep.subr.msk.bf16.mxu1 %vm730_vm6, %v1928_v14 }
 0xa2a   :  { %v1940_v54 = vsel %vm730_vm6, %v1927_v20, 0  ;;  %1948 = vmatpush1.bf16.msra.mxu0 %v1934_v55 }
 0xa2c   :  { %1989 = vmatpush1.bf16.msra.mxu1 %v1940_v54  ;;  %v5697_v54 = vmax.f32 %v4387_v56, 0.0 }
 0xa2d   :  { %3209 = vmatmul.mubr.msk.bf16.vlgmr.msra.gmra.mrb[12].mxu0 %vm726_vm9, %v1929_v5 }
 0xa2e   :  { %2527 = vmatprep.mubr.bf16.mxu0 %v5676_v38 }
 0xa2f   :  { %3211 = vmatmul.mubr.msk.bf16.vlgmr.msra.gmra.mrb[12].mxu1 %vm726_vm9, %v1929_v5  ;;  %v2636_v5 = vrot.slane %v5697_v54, 6 }
 0xa30   :  { %2568 = vmatprep.mubr.bf16.mxu1 %v5676_v38 }
 0xb00   :  { %v1979_v28 = vpop.f32.mrb[12].mxu0 }
 0xb01   :  { %v2027_v22 = vsel %vm118_vm0, %v1979_v28, 0.0  ;;  %v1981_v29 = vpop.f32.mrb[13].mxu0 }
 0xb02   :  { %v2020_v63 = vpop.f32.mrb[12].mxu1  ;;  %v2028_v26 = vsel %vm118_vm0, %v1981_v29, 0.0  ;;  %v1983_v37 = vpop.f32.mrb[14].mxu0 }
 0xb03   :  { %v2022_v60 = vpop.f32.mrb[13].mxu1  ;;  %v2030_v47 = vsel %vm118_vm0, %v2020_v63, 0.0  ;;  %v2029_v53 = vadd.f32 %v2028_v26, %v2027_v22  ;;  %v1984_v46 = vpop.f32.mrb[15].mxu0  ;;  %v5699_v22 = vmax.f32 %v4393_v30, 0.0 }
 0xb04   :  { %v2024_v25 = vpop.f32.mrb[14].mxu1  ;;  %v2032_v49 = vsel %vm118_vm0, %v2022_v60, 0.0  ;;  %v5701_v46 = vld [vmem:[#allocation2_spill] sm:$0xff] }
 0xb05   :  { %v2025_v17 = vpop.f32.mrb[15].mxu1  ;;  %v2031_v43 = vadd.f32 %v2030_v47, %v2029_v53  ;;  %v5700_v25 = vmax.f32 %v4391_v2, 0.0 }
 0xb06   :  { %v5702_v17 = vrot.slane %v5701_v46, 6 }
 0xb07   :  { %v2033_v10 = vadd.f32 %v2032_v49, %v2031_v43  ;;  %v2638_v53 = vrot.slane %v5700_v25, 6  ;;  %v5703_v49 = vld [vmem:[#allocation3_spill] sm:$0xff]  ;;  %v2270_v25 = vrot.slane %v4937_v51, %v3634_v39 }
 0xb08   :  { %v5704_v56 = vrot.slane %v5703_v49, 6 }
 0xb09   :  { %2034 = vadd.xlane.f32.xlu0 %v2033_v10 }
 0xb96   :  { %v2035_v16 = vpop.xlane.xlu0 %2034 }
 0xb97   :  { %v2036_v27 = vmul.f32 0.001953125, %v2035_v16 }
 0xb99   :  { %v2037_v40 = vsub.f32 %v1979_v28, %v2036_v27  ;;  %v2038_v19 = vsub.f32 %v1981_v29, %v2036_v27  ;;  %v2039_v32 = vsub.f32 %v2020_v63, %v2036_v27  ;;  %v2040_v8 = vsub.f32 %v2022_v60, %v2036_v27 }
 0xb9a   :  { %v5698_v28 = vmax.f32 %v4389_v33, 0.0  ;;  %v2639_v29 = vrot.slane %v5699_v22, 6 }
 0xb9b   :  { %v2041_v0 = vmul.f32 %v2037_v40, %v2037_v40  ;;  %v2042_v24 = vmul.f32 %v2038_v19, %v2038_v19  ;;  %v2043_v42 = vmul.f32 %v2039_v32, %v2039_v32  ;;  %v2044_v18 = vmul.f32 %v2040_v8, %v2040_v8 }
 0xb9c   :  { %v2637_v63 = vrot.slane %v5698_v28, 6  ;;  %v4957_v28 = vsel %vm2347_vm7, 1.0, %v5640_v50 }
 0xb9d   :  { %v2045_v12 = vsel %vm118_vm0, %v2041_v0, 0.0  ;;  %v2046_v34 = vsel %vm118_vm0, %v2042_v24, 0.0  ;;  %v2048_v52 = vsel %vm118_vm0, %v2043_v42, 0.0  ;;  %v2050_v31 = vsel %vm118_vm0, %v2044_v18, 0.0  ;;  %v5709_v24 = vld [vmem:[#allocation40_spill] sm:$0xff] }
 0xb9e   :  { %v2047_v62 = vadd.f32 %v2046_v34, %v2045_v12  ;;  %v5710_v42 = vmax.f32 %v5709_v24, 0.0 }
 0xba0   :  { %v2049_v35 = vadd.f32 %v2048_v52, %v2047_v62  ;;  %v2668_v18 = vsel %vm118_vm0, %v5710_v42, %v2636_v5  ;;  %v5711_v52 = vld [vmem:[#allocation42_spill] sm:$0xff]  ;;  %v4954_v5 = vsel %vm2183_vm2, 1.0, %v5640_v50  ;;  %vm5752_vm2 = vmmov %vm5747_vm10 }
 0xba1   :  { %v2194_v46 = vrot.slane %v4954_v5, %v5645_v57 }
 0xba2   :  { %v2051_v4 = vadd.f32 %v2050_v31, %v2049_v35  ;;  %v5712_v35 = vmax.f32 %v5711_v52, 0.0 }
 0xba4   :  { %2052 = vadd.xlane.f32.xlu1 %v2051_v4  ;;  %v2670_v31 = vsel %vm118_vm0, %v5712_v35, %v2638_v53  ;;  %v5713_v4 = vld [vmem:[#allocation4_spill] sm:$0xff] }
 0xbb5   :  { %2071 = vperm.xlu1 %3265, %v2068_v7   ;;  %v5714_v7 = vrot.slane %v5713_v4, 6 }
 0xc31   :  { %v2053_v13 = vpop.xlane.xlu1 %2052 }
 0xc32   :  { %v2054_v23 = vmul.f32 0.001953125, %v2053_v13 }
 0xc34   :  { %v2055_v3 = vadd.f32 1e-05, %v2054_v23 }
 0xc35   :  { %v2072_v58 = vpop.permute.xlu1 %2071 }
 0xc36   :  { %3278 = vrsqrt.f32 %v2055_v3  ;;  %v5715_v3 = vld [vmem:[#allocation5_spill] sm:$0xff] }
 0xc40   :  { %v3279_v59 = vpop.eup %3278 }
 0xc41   :  { %v2058_v6 = vmul.f32 %v3279_v59, %v2057_v1  ;;  %v5716_v1 = vrot.slane %v5715_v3, 6 }
 0xc43   :  { %2061 = vperm.xlu0 %3266, %v2058_v6  }
 0xcc2   :  { %v2062_v15 = vpop.permute.xlu0 %2061 }
 0xcc3   :  { %v2064_v11 = vmul.f32 %v2062_v15, %v2037_v40  ;;  %v2065_v41 = vmul.f32 %v2062_v15, %v2038_v19  ;;  %v2066_v21 = vmul.f32 %v2062_v15, %v2039_v32  ;;  %v2067_v48 = vmul.f32 %v2062_v15, %v2040_v8  ;;  %v5705_v40 = vld [vmem:[#allocation41_spill] sm:$0xff]  ;;  %v5707_v32 = vld [vmem:[#allocation43_spill] sm:$0xff] }
 0xcc4   :  { %v5706_v2 = vmax.f32 %v5705_v40, 0.0  ;;  %v5708_v8 = vmax.f32 %v5707_v32, 0.0 }
 0xcc5   :  { %v2074_v14 = vadd.f32 %v2072_v58, %v2064_v11  ;;  %v2075_v61 = vadd.f32 %v2072_v58, %v2065_v41  ;;  %v2076_v20 = vadd.f32 %v2072_v58, %v2066_v21  ;;  %v2077_v55 = vadd.f32 %v2072_v58, %v2067_v48 }
 0xcc6   :  { %v2669_v19 = vsel %vm118_vm0, %v5706_v2, %v2637_v63  ;;  %v2671_v0 = vsel %vm118_vm0, %v5708_v8, %v2639_v29  ;;  %v4931_v21 = vsel %vm2099_vm3, 1.0, %v5640_v50  ;;  %v4934_v48 = vsel %vm2291_vm13, 1.0, %v5640_v50 }
 0xcc7   :  { %v2078_v60 = vmax.f32 %v2074_v14, 0.0  ;;  %v2079_v47 = vmax.f32 %v2075_v61, 0.0  ;;  %v2080_v26 = vmax.f32 %v2076_v20, 0.0  ;;  %v2081_v37 = vmax.f32 %v2077_v55, 0.0 }
 0xcc8   :  { %v4942_v14 = vsel %vm2101_vm5, 1.0, %v5640_v50  ;;  %v2152_v20 = vrot.slane %v4931_v21, %v5645_v57  ;;  %v4948_v55 = vsel %vm2292_vm8, 1.0, %v5640_v50  ;;  %v2326_v54 = vrot.slane %v4934_v48, %v3634_v39 }
 0xcc9   :  { %v4858_v43 = vadd.f32 %v2078_v60, %v5702_v17  ;;  %v4862_v10 = vadd.f32 %v2079_v47, %v5704_v56  ;;  %v2648_v33 = vrot.slane %v2078_v60, 4  ;;  %v2649_v16 = vrot.slane %v2079_v47, 4 }
 0xcca   :  { %v2650_v27 = vrot.slane %v2080_v26, 4  ;;  %v2651_v30 = vrot.slane %v2081_v37, 4  ;;  %v4889_v13 = vadd.f32 %v2080_v26, %v5714_v7  ;;  %v4900_v59 = vadd.f32 %v2081_v37, %v5716_v1 }
 0xccb   :  { %2131 = vrot.lane.b32.xlu1 %v4862_v10, %s3317_s14  ;;  %2129 = vrot.lane.b32.xlu0 %v4858_v43, %s3317_s14  ;;  %v4876_v12 = vsel %vm696_vm15, %v2669_v19, %v2649_v16  ;;  %v4882_v62 = vsel %vm696_vm15, %v2668_v18, %v2648_v33  ;;  %v2274_v63 = vrot.slane %v4937_v51, %v5645_v57  ;;  %vm2094_vm3 = vcmp.lt.s32.totalorder %v3623_v36, 68 }
 0xccc   :  { %v4879_v34 = vsel %vm696_vm15, %v2671_v0, %v2651_v30  ;;  %v4892_v23 = vsel %vm696_vm15, %v2670_v31, %v2650_v27  ;;  %v2148_v29 = vrot.slane %v4931_v21, %v3634_v39  ;;  %v2303_v60 = vrot.slane %v4948_v55, %v5645_v57 }
 0xccd   :  { %v2338_v26 = vrot.slane %v4934_v48, %v3658_v45  ;;  %vm2177_vm13 = vcmp.lt.s32.totalorder %v3623_v36, 60  ;;  %v2354_v17 = vrot.slane %v4957_v28, %v3634_v39  ;;  %v2156_v49 = vrot.slane %v4931_v21, %v3655_v44 }
 0xcce   :  { %v2160_v56 = vrot.slane %v4931_v21, %v3658_v45  ;;  %v2330_v33 = vrot.slane %v4934_v48, %v5645_v57  ;;  %v2334_v16 = vrot.slane %v4934_v48, %v3655_v44  ;;  %v4993_v27 = vsel %vm2100_vm4, 1.0, %v5640_v50 }
 0xccf   :  { %2255 = vrot.lane.b32.xlu1 %v4889_v13, %s3318_s15  ;;  %2253 = vrot.lane.b32.xlu0 %v4862_v10, %s3318_s15  ;;  %v2112_v40 = vrot.slane %v4942_v14, %v5645_v57  ;;  %v2299_v2 = vrot.slane %v4948_v55, %v3634_v39  ;;  %v2190_v19 = vrot.slane %v4954_v5, %v3634_v39  ;;  %vm2219_vm4 = vcmp.lt.s32.totalorder %v3623_v36, 4 }
 0xcd3   :  { %2090 = vrot.lane.b32.xlu1 %v4889_v13, %s3319_s9  ;;  %2088 = vrot.lane.b32.xlu0 %v4862_v10, %s3319_s9 }
 0xcd7   :  { %2169 = vrot.lane.b32.xlu1 %v4858_v43, %s3320_s10  ;;  %2135 = vrot.lane.b32.xlu0 %v4900_v59, %s3317_s14 }
 0xcdb   :  { %2251 = vrot.lane.b32.xlu1 %v4858_v43, %s3318_s15  ;;  %2171 = vrot.lane.b32.xlu0 %v4862_v10, %s3320_s10 }
 0xcdf   :  { %2133 = vrot.lane.b32.xlu1 %v4889_v13, %s3317_s14  ;;  %2086 = vrot.lane.b32.xlu0 %v4858_v43, %s3319_s9 }
 0xce3   :  { %2211 = vrot.lane.b32.xlu1 %v4858_v43, %s3321_s27  ;;  %2175 = vrot.lane.b32.xlu0 %v4900_v59, %s3320_s10 }
 0xce7   :  { %2092 = vrot.lane.b32.xlu1 %v4900_v59, %s3319_s9  ;;  %2213 = vrot.lane.b32.xlu0 %v4862_v10, %s3321_s27 }
 0xceb   :  { %2257 = vrot.lane.b32.xlu1 %v4900_v59, %s3318_s15  ;;  %2217 = vrot.lane.b32.xlu0 %v4900_v59, %s3321_s27 }
 0xcef   :  { %2215 = vrot.lane.b32.xlu1 %v4889_v13, %s3321_s27  ;;  %2173 = vrot.lane.b32.xlu0 %v4889_v13, %s3320_s10 }
 0xd3d   :  { %v4916_v6 = vpop.permute.xlu1 %2131  ;;  %v4918_v15 = vpop.permute.xlu0 %2129 }
 0xd3e   :  { %v2140_v30 = vsel %vm2137_vm11, %v4918_v15, %v4916_v6 }
 0xd3f   :  { %v2166_v4 = vmul.f32 %v2152_v20, %v2140_v30 }
 0xd41   :  { %v4923_v11 = vpop.permute.xlu1 %2255  ;;  %v2254_v41 = vpop.permute.xlu0 %2253 }
 0xd42   :  { %v2261_v53 = vsel %vm2259_vm12, %v2254_v41, %v4923_v11 }
 0xd43   :  { %v2288_v32 = vmul.f32 %v2274_v63, %v2261_v53  ;;  %v5038_v53 = vmul.f32 %v2326_v54, %v2140_v30 }
 0xd45   :  { %v4939_v58 = vpop.permute.xlu1 %2090  ;;  %v2089_v61 = vpop.permute.xlu0 %2088 }
 0xd46   :  { %v2096_v9 = vsel %vm2094_vm3, %v2089_v61, %v4939_v58 }
 0xd47   :  { %v2317_v21 = vmul.f32 %v2303_v60, %v2096_v9 }
 0xd49   :  { %v4968_v47 = vpop.permute.xlu1 %2169  ;;  %v2136_v37 = vpop.permute.xlu0 %2135 }
 0xd4a   :  { %v2141_v24 = vsel %vm2137_vm11, %v2136_v37, %v4918_v15 }
 0xd4b   :  { %v2165_v20 = vmul.f32 %v2148_v29, %v2141_v24  ;;  %v5063_v35 = vmul.f32 %v2338_v26, %v2141_v24 }
 0xd4d   :  { %v5008_v8 = vpop.permute.xlu1 %2251  ;;  %v5010_v0 = vpop.permute.xlu0 %2171 }
 0xd4e   :  { %v2262_v7 = vsel %vm2259_vm12, %v5008_v8, %v2254_v41  ;;  %v2416_v41 = vrot.slane %v2288_v32, 6  ;;  %v2180_v63 = vsel %vm2177_vm13, %v4968_v47, %v5010_v0  ;;  %v2380_v32 = vrot.slane %v2166_v4, 6 }
 0xd4f   :  { %v2287_v1 = vmul.f32 %v2270_v25, %v2262_v7  ;;  %v2362_v25 = vrot.slane %v4957_v28, %v3655_v44  ;;  %v2428_v7 = vrot.slane %v2317_v21, 4 }
 0xd50   :  { %v2460_v60 = vsel %vm118_vm0, %v4862_v10, %v2416_v41  ;;  %v2379_v10 = vrot.slane %v2165_v20, 6 }
 0xd51   :  { %v2134_v52 = vpop.permute.xlu1 %2133  ;;  %v2087_v3 = vpop.permute.xlu0 %2086  ;;  %v2415_v42 = vrot.slane %v2287_v1, 6 }
 0xd52   :  { %v2139_v54 = vsel %vm2137_vm11, %v4916_v6, %v2134_v52  ;;  %v2097_v30 = vsel %vm2094_vm3, %v2087_v3, %v2089_v61  ;;  %v2138_v48 = vsel %vm2137_vm11, %v2134_v52, %v2136_v37  ;;  %v2439_v6 = vrot.slane %v5038_v53, 2 }
 0xd53   :  { %v2316_v18 = vmul.f32 %v2299_v2, %v2097_v30  ;;  %v2208_v61 = vmul.f32 %v2194_v46, %v2180_v63  ;;  %v2344_v4 = vmul.f32 %v2330_v33, %v2139_v54  ;;  %v2126_v22 = vmul.f32 %v2112_v40, %v2097_v30 }
 0xd54   :  { %v5072_v37 = vmul.f32 %v2354_v17, %v2180_v63  ;;  %v5074_v2 = vmul.f32 %v2156_v49, %v2139_v54  ;;  %v5076_v26 = vmul.f32 %v2160_v56, %v2138_v48  ;;  %v5717_v33 = vrot.slane %v4942_v14, %v3655_v44 }
 0xd55   :  { %v2212_v31 = vpop.permute.xlu1 %2211  ;;  %v2176_v15 = vpop.permute.xlu0 %2175  ;;  %v2427_v46 = vrot.slane %v2316_v18, 4  ;;  %v5083_v52 = vmul.f32 %v2334_v16, %v2138_v48  ;;  %v2464_v40 = vsel %vm696_vm15, %v2460_v60, %v2428_v7  ;;  %v2392_v1 = vrot.slane %v2208_v61, 4 }
 0xd56   :  { %v5070_v29 = vsel %vm2177_vm13, %v2176_v15, %v4968_v47  ;;  %v5081_v24 = vmul.f32 %v5717_v33, %v2096_v9  ;;  %v2442_v47 = vrot.slane %v5063_v35, 2  ;;  %v2440_v17 = vrot.slane %v2344_v4, 2  ;;  %v2479_v35 = vld [vmem:[%s5472_s16] sm:$0x1] }
 0xd57   :  { %v2207_v49 = vmul.f32 %v2190_v19, %v5070_v29  ;;  %v2459_v18 = vsel %vm118_vm0, %v4858_v43, %v2415_v42  ;;  %v2448_v63 = vsel %vm118_vm0, %v2126_v22, %v2380_v32  ;;  %v2475_v48 = vpack.c.bf16 %v5072_v37, %v5072_v37 }
 0xd58   :  { %v2381_v20 = vrot.slane %v5074_v2, 6  ;;  %v2382_v19 = vrot.slane %v5076_v26, 6  ;;  %v2463_v53 = vsel %vm696_vm15, %v2459_v18, %v2427_v46  ;;  %v2441_v41 = vrot.slane %v5083_v52, 2 }
 0xd59   :  { %v2093_v21 = vpop.permute.xlu1 %2092  ;;  %v2214_v56 = vpop.permute.xlu0 %2213  ;;  %v5718_v22 = vrot.slane %v4942_v14, %v3634_v39  ;;  %v2391_v54 = vrot.slane %v2207_v49, 4  ;;  %v5720_v30 = vrot.slane %v4948_v55, %v3658_v45  ;;  %v2452_v4 = vsel %vm696_vm15, %v2448_v63, %v2392_v1 }
 0xd5a   :  { %v2098_v9 = vsel %vm2094_vm3, %v2093_v21, %v2087_v3  ;;  %v2222_v16 = vsel %vm2219_vm4, %v2212_v31, %v2214_v56  ;;  %v2095_v43 = vsel %vm2094_vm3, %v4939_v58, %v2093_v21  ;;  %v5719_v3 = vrot.slane %v4993_v27, %v5645_v57  ;;  %vm5758_vm3 = vmmov %vm5752_vm2 }
 0xd5b   :  { %v2125_v42 = vmul.f32 %v5718_v22, %v2098_v9  ;;  %v2319_v32 = vmul.f32 %v5720_v30, %v2098_v9  ;;  %v2468_v2 = vsel %vm136_vm1, %v2464_v40, %v2440_v17  ;;  %v2467_v33 = vsel %vm136_vm1, %v2463_v53, %v2439_v6 }
 0xd5c   :  { %v2248_v60 = vmul.f32 %v5719_v3, %v2222_v16  ;;  %v5721_v49 = vrot.slane %v4942_v14, %v3658_v45  ;;  %v5722_v1 = vrot.slane %v4937_v51, %v3655_v44  ;;  %v5723_v40 = vrot.slane %v4937_v51, %v3658_v45 }
 0xd5d   :  { %v2258_v7 = vpop.permute.xlu1 %2257  ;;  %v2218_v61 = vpop.permute.xlu0 %2217  ;;  %v2447_v6 = vsel %vm118_vm0, %v2125_v42, %v2379_v10  ;;  %v5725_v14 = vrot.slane %v4993_v27, %v3634_v39  ;;  %v2430_v53 = vrot.slane %v2319_v32, 4  ;;  %v5726_v32 = vrot.slane %v4993_v27, %v3655_v44 }
 0xd5e   :  { %v2404_v58 = vrot.slane %v2248_v60, 2  ;;  %v2260_v26 = vsel %vm2259_vm12, %v4923_v11, %v2258_v7  ;;  %v2263_v46 = vsel %vm2259_vm12, %v2258_v7, %v5008_v8  ;;  %v2128_v21 = vmul.f32 %v5721_v49, %v2095_v43  ;;  %vm5757_vm12 = vmmov %vm5752_vm2 }
 0xd5f   :  { %v2289_v18 = vmul.f32 %v5722_v1, %v2260_v26  ;;  %v2290_v17 = vmul.f32 %v5723_v40, %v2263_v46  ;;  %v2223_v11 = vsel %vm2219_vm4, %v2218_v61, %v2212_v31  ;;  %v5724_v8 = vrot.slane %v4948_v55, %v3655_v44 }
 0xd60   :  { %v2247_v9 = vmul.f32 %v5725_v14, %v2223_v11  ;;  %v2456_v16 = vsel %vm136_vm1, %v2452_v4, %v2404_v58  ;;  %v5730_v1 = vrot.slane %v4957_v28, %v5645_v57  ;;  %v2449_v14 = vsel %vm118_vm0, %v5081_v24, %v2381_v20 }
 0xd61   :  { %v2318_v63 = vmul.f32 %v5724_v8, %v2095_v43  ;;  %v2417_v22 = vrot.slane %v2289_v18, 6  ;;  %v2418_v3 = vrot.slane %v2290_v17, 6  ;;  %v2216_v51 = vpop.permute.xlu1 %2215  ;;  %v2174_v60 = vpop.permute.xlu0 %2173  ;;  %v2472_v30 = vpack.c.bf16 %v2468_v2, %v2456_v16 }
 0xd62   :  { %v2403_v7 = vrot.slane %v2247_v9, 2  ;;  %v2220_v31 = vsel %vm2219_vm4, %v2216_v51, %v2218_v61  ;;  %v2221_v55 = vsel %vm2219_vm4, %v2214_v56, %v2216_v51  ;;  %v2178_v10 = vsel %vm2177_vm13, %v2174_v60, %v2176_v15 }
 0xd63   :  { %v2451_v43 = vsel %vm696_vm15, %v2447_v6, %v2391_v54  ;;  %v2462_v42 = vsel %vm118_vm0, %v4900_v59, %v2418_v3  ;;  %v2249_v4 = vmul.f32 %v5726_v32, %v2221_v55  ;;  %v5727_v2 = vrot.slane %v4993_v27, %v3658_v45  ;;  %2495 = vmatprep.subr.bf16.mxu0 %v2472_v30 }
 0xd64   :  { %v2461_v56 = vsel %vm118_vm0, %v4889_v13, %v2417_v22  ;;  %v2455_v61 = vsel %vm136_vm1, %v2451_v43, %v2403_v7  ;;  %v2179_v15 = vsel %vm2177_vm13, %v5010_v0, %v2174_v60  ;;  %v5728_v59 = vrot.slane %v4954_v5, %v3658_v45 }
 0xd65   :  { %v2250_v58 = vmul.f32 %v5727_v2, %v2220_v31  ;;  %v2429_v26 = vrot.slane %v2318_v63, 4  ;;  %v5729_v27 = vrot.slane %v4954_v5, %v3655_v44  ;;  %v2372_v13 = vmul.f32 %v5730_v1, %v2179_v15 }
 0xd66   :  { %v2210_v54 = vmul.f32 %v5728_v59, %v2178_v10  ;;  %v2405_v18 = vrot.slane %v2249_v4, 2  ;;  %v2471_v17 = vpack.c.bf16 %v2467_v33, %v2455_v61  ;;  %v2466_v11 = vsel %vm696_vm15, %v2462_v42, %v2430_v53 }
 0xd67   :  { %v2406_v46 = vrot.slane %v2250_v58, 2  ;;  %v2209_v49 = vmul.f32 %v5729_v27, %v2179_v15  ;;  %v2450_v0 = vsel %vm118_vm0, %v2128_v21, %v2382_v19  ;;  %v2465_v8 = vsel %vm696_vm15, %v2461_v56, %v2429_v26 }
 0xd68   :  { %v2394_v40 = vrot.slane %v2210_v54, 4  ;;  %v2476_v63 = vpack.c.bf16 %v2372_v13, %v2372_v13  ;;  %v5731_v5 = vrot.slane %v4957_v28, %v3658_v45  ;;  %v2373_v33 = vmul.f32 %v2362_v25, %v2178_v10  ;;  %2496 = vmatpush1.bf16.msra.mxu0 %v2471_v17 }
 0xd69   :  { %v2393_v6 = vrot.slane %v2209_v49, 4  ;;  %v2470_v24 = vsel %vm136_vm1, %v2466_v11, %v2442_v47  ;;  %v2469_v28 = vsel %vm136_vm1, %v2465_v8, %v2441_v41  ;;  %v2484_v25 = vsel %vm730_vm6, %v2475_v48, 0 }
 0xd6a   :  { %v2374_v9 = vmul.f32 %v5731_v5, %v5070_v29  ;;  %v2454_v16 = vsel %vm696_vm15, %v2450_v0, %v2394_v40  ;;  %3220 = vmatprep.subr.msk.bf16.mxu0 %vm730_vm6, %v2476_v63  ;;  %v2477_v3 = vpack.c.bf16 %v2373_v33, %v2373_v33  ;;  %v2618_v0 = vld [vmem:[%s5473_s18] sm:$0x3]  ;;  %vm5763_vm13 = vcmp.lt.s32.totalorder %v3623_v36, 127 }
 0xd6b   :  { %v2453_v19 = vsel %vm696_vm15, %v2449_v14, %v2393_v6  ;;  %v2458_v21 = vsel %vm136_vm1, %v2454_v16, %v2406_v46  ;;  %v2607_v14 = vld [vmem:[%s5474_s17] sm:$0x3]  ;;  %vm5765_vm4 = vmmov %vm5763_vm13 }
 0xd6c   :  { %v2474_v20 = vpack.c.bf16 %v2470_v24, %v2458_v21  ;;  %v2457_v29 = vsel %vm136_vm1, %v2453_v19, %v2405_v18  ;;  %v2478_v22 = vpack.c.bf16 %v2374_v9, %v2374_v9  ;;  %2498 = vmatpush1.bf16.msra.mxu0 %v2484_v25  ;;  %v2490_v52 = vsel %vm730_vm6, %v2477_v3, 0 }
 0xd6d   :  { %v2473_v53 = vpack.c.bf16 %v2469_v28, %v2457_v29 }
 0xd6e   :  { %2536 = vmatprep.subr.bf16.mxu1 %v2474_v20 }
 0xd6f   :  { %2537 = vmatpush1.bf16.msra.mxu1 %v2473_v53  ;;  %3221 = vmatmul.mubr.msk.bf16.vlgmr.msra.gmra.mrb[16].mxu0 %vm726_vm9, %v2479_v35 }
 0xd70   :  { %3222 = vmatprep.subr.msk.bf16.mxu1 %vm730_vm6, %v2478_v22  ;;  %2733 = vmatprep.mubr.bf16.mxu0 %v5676_v38 }
 0xd73   :  { %2539 = vmatpush1.bf16.msra.mxu1 %v2490_v52 }
 0xd76   :  { %3223 = vmatmul.mubr.msk.bf16.vlgmr.msra.gmra.mrb[16].mxu1 %vm726_vm9, %v2479_v35 }
 0xd77   :  { %2774 = vmatprep.mubr.bf16.mxu1 %v5676_v38 }
 0xe42   :  { %v2529_v37 = vpop.f32.mrb[16].mxu0 }
 0xe43   :  { %v2577_v47 = vsel %vm118_vm0, %v2529_v37, 0.0  ;;  %v2531_v48 = vpop.f32.mrb[17].mxu0 }
 0xe44   :  { %v2578_v41 = vsel %vm118_vm0, %v2531_v48, 0.0  ;;  %v2533_v51 = vpop.f32.mrb[18].mxu0 }
 0xe45   :  { %v2579_v60 = vadd.f32 %v2578_v41, %v2577_v47  ;;  %v2534_v30 = vpop.f32.mrb[19].mxu0 }
 0xe49   :  { %v2570_v7 = vpop.f32.mrb[16].mxu1 }
 0xe4a   :  { %v2580_v31 = vsel %vm118_vm0, %v2570_v7, 0.0  ;;  %v2572_v55 = vpop.f32.mrb[17].mxu1 }
 0xe4b   :  { %v2581_v10 = vadd.f32 %v2580_v31, %v2579_v60  ;;  %v2582_v43 = vsel %vm118_vm0, %v2572_v55, 0.0  ;;  %v2574_v42 = vpop.f32.mrb[18].mxu1 }
 0xe4c   :  { %v2575_v32 = vpop.f32.mrb[19].mxu1 }
 0xe4d   :  { %v2583_v4 = vadd.f32 %v2582_v43, %v2581_v10 }
 0xe4f   :  { %2584 = vadd.xlane.f32.xlu0 %v2583_v4 }
 0xedc   :  { %v2585_v2 = vpop.xlane.xlu0 %2584 }
 0xedd   :  { %v2586_v58 = vmul.f32 0.001953125, %v2585_v2 }
 0xedf   :  { %v2587_v56 = vsub.f32 %v2529_v37, %v2586_v58  ;;  %v2588_v61 = vsub.f32 %v2531_v48, %v2586_v58  ;;  %v2589_v15 = vsub.f32 %v2570_v7, %v2586_v58  ;;  %v2590_v59 = vsub.f32 %v2572_v55, %v2586_v58 }
 0xee1   :  { %v2591_v54 = vmul.f32 %v2587_v56, %v2587_v56  ;;  %v2592_v26 = vmul.f32 %v2588_v61, %v2588_v61  ;;  %v2593_v46 = vmul.f32 %v2589_v15, %v2589_v15  ;;  %v2594_v27 = vmul.f32 %v2590_v59, %v2590_v59 }
 0xee3   :  { %v2595_v49 = vsel %vm118_vm0, %v2591_v54, 0.0  ;;  %v2596_v1 = vsel %vm118_vm0, %v2592_v26, 0.0  ;;  %v2598_v18 = vsel %vm118_vm0, %v2593_v46, 0.0  ;;  %v2600_v17 = vsel %vm118_vm0, %v2594_v27, 0.0 }
 0xee4   :  { %v2597_v13 = vadd.f32 %v2596_v1, %v2595_v49  ;;  %vm2685_vm0 = vcmask 64512  }
 0xee6   :  { %v2599_v40 = vadd.f32 %v2598_v18, %v2597_v13 }
 0xee8   :  { %v2601_v11 = vadd.f32 %v2600_v17, %v2599_v40 }
 0xeea   :  { %2602 = vadd.xlane.f32.xlu1 %v2601_v11 }
 0xefb   :  { %2621 = vperm.xlu1 %3265, %v2618_v0  }
 0xf77   :  { %v2603_v8 = vpop.xlane.xlu1 %2602 }
 0xf78   :  { %v2604_v6 = vmul.f32 0.001953125, %v2603_v8 }
 0xf7a   :  { %v2605_v63 = vadd.f32 1e-05, %v2604_v6  ;;  %v2816_v6 = vld [vmem:[%s5476_s21] sm:$0xff]  ;;  %s5733_s21 = smov 112  }
 0xf7b   :  { %v2622_v20 = vpop.permute.xlu1 %2621 }
 0xf7c   :  { %3280 = vrsqrt.f32 %v2605_v63 }
 0xf86   :  { %v3281_v5 = vpop.eup %3280 }
 0xf87   :  { %v2608_v9 = vmul.f32 %v3281_v5, %v2607_v14 }
 0xf89   :  { %2611 = vperm.xlu0 %3266, %v2608_v9   ;;  %v2805_v9 = vld [vmem:[%s5477_s20] sm:$0xff]  ;;  %s5732_s20 = smov 113  }
0x1008   :  { %v2612_v33 = vpop.permute.xlu0 %2611 }
0x1009   :  { %v2614_v16 = vmul.f32 %v2612_v33, %v2587_v56  ;;  %v2615_v19 = vmul.f32 %v2612_v33, %v2588_v61  ;;  %v2616_v21 = vmul.f32 %v2612_v33, %v2589_v15  ;;  %v2617_v24 = vmul.f32 %v2612_v33, %v2590_v59 }
0x100b   :  { %v2624_v29 = vadd.f32 %v2622_v20, %v2614_v16  ;;  %v2625_v28 = vadd.f32 %v2622_v20, %v2615_v19  ;;  %v2626_v25 = vadd.f32 %v2622_v20, %v2616_v21  ;;  %v2627_v53 = vadd.f32 %v2622_v20, %v2617_v24 }
0x100d   :  { %v2628_v22 = vmax.f32 %v2624_v29, 0.0  ;;  %v2629_v3 = vmax.f32 %v2625_v28, 0.0  ;;  %v2630_v35 = vmax.f32 %v2626_v25, 0.0  ;;  %v2631_v52 = vmax.f32 %v2627_v53, 0.0 }
0x100f   :  { %v2660_v37 = vrot.slane %v2628_v22, 2  ;;  %v2661_v47 = vrot.slane %v2629_v3, 2  ;;  %v2662_v48 = vrot.slane %v2630_v35, 2  ;;  %v2663_v41 = vrot.slane %v2631_v52, 2 }
0x1011   :  { %v2677_v51 = vsel %vm136_vm1, %v4876_v12, %v2661_v47  ;;  %v2679_v60 = vsel %vm136_vm1, %v4879_v34, %v2663_v41  ;;  %v2676_v30 = vsel %vm136_vm1, %v4882_v62, %v2660_v37  ;;  %v2678_v7 = vsel %vm136_vm1, %v4892_v23, %v2662_v48  ;;  %v2684_v34 = vld [vmem:[%s5475_s19] sm:$0xf] }
0x1012   :  { %v2681_v31 = vpack.c.bf16 %v2677_v51, %v2677_v51  ;;  %v2683_v55 = vpack.c.bf16 %v2679_v60, %v2679_v60  ;;  %v2680_v10 = vpack.c.bf16 %v2676_v30, %v2676_v30  ;;  %v2682_v43 = vpack.c.bf16 %v2678_v7, %v2678_v7 }
0x1013   :  { %vm5735_vm1 = vcmp.lt.s32.totalorder %v3623_v36, 16 }
0x1014   :  { %3224 = vmatprep.subr.msk.bf16.mxu0 %vm696_vm15, %v2681_v31  ;;  %3226 = vmatprep.subr.msk.bf16.mxu1 %vm696_vm15, %v2683_v55  ;;  %v2690_v42 = vsel %vm696_vm15, %v2680_v10, 0  ;;  %v2696_v12 = vsel %vm696_vm15, %v2682_v43, 0  ;;  %v5736_v31 = vld [vmem:[#allocation16_spill] sm:$0xff]  ;;  %v5737_v10 = vld [vmem:[#allocation9_spill] sm:$0xff]  ;;  %vm5738_vm6 = vmmov %vm5735_vm1 }
0x1015   :  { %2702 = vmatpush1.bf16.msra.mxu0 %v2690_v42  ;;  %2743 = vmatpush1.bf16.msra.mxu1 %v2696_v12  ;;  %vm5741_vm9 = vmmov %vm5735_vm1 }
0x1016   :  { %vm5742_vm5 = vmmov %vm5735_vm1 }
0x1018   :  { %3225 = vmatmul.mubr.msk.bf16.vlgmr.msra.gmra.mrb[20].mxu0 %vm2685_vm0, %v2684_v34  ;;  %3227 = vmatmul.mubr.msk.bf16.vlgmr.msra.gmra.mrb[20].mxu1 %vm2685_vm0, %v2684_v34  ;;  %vm5766_vm0 = vmmov %vm5765_vm4 }
0x1019   :  { %3027 = vmatprep.mubr.bf16.mxu0 %v5676_v38  ;;  %3068 = vmatprep.mubr.bf16.mxu1 %v5676_v38 }
0x10eb   :  { %v2735_v62 = vpop.f32.mrb[20].mxu0  ;;  %v2776_v23 = vpop.f32.mrb[20].mxu1 }
0x10ec   :  { %v2737_v32 = vpop.f32.mrb[21].mxu0  ;;  %v2778_v4 = vpop.f32.mrb[21].mxu1 }
0x10ed   :  { %v2783_v2 = vadd.f32 %v2737_v32, %v2735_v62  ;;  %v2739_v58 = vpop.f32.mrb[22].mxu0  ;;  %v2780_v56 = vpop.f32.mrb[22].mxu1 }
0x10ee   :  { %v2740_v61 = vpop.f32.mrb[23].mxu0  ;;  %v2781_v15 = vpop.f32.mrb[23].mxu1 }
0x10ef   :  { %v2784_v59 = vadd.f32 %v2783_v2, %v2776_v23  ;;  %v5740_v2 = vld [vmem:[#allocation27_spill] sm:$0xff] }
0x10f1   :  { %v2785_v54 = vadd.f32 %v2784_v59, %v2778_v4 }
0x10f3   :  { %2786 = vadd.xlane.f32.xlu0 %v2785_v54 }
0x1180   :  { %v2787_v26 = vpop.xlane.xlu0 %2786 }
0x1181   :  { %v2788_v46 = vmul.f32 0.001953125, %v2787_v26 }
0x1183   :  { %v2789_v27 = vsub.f32 %v2735_v62, %v2788_v46  ;;  %v2790_v49 = vsub.f32 %v2737_v32, %v2788_v46  ;;  %v2791_v1 = vsub.f32 %v2776_v23, %v2788_v46  ;;  %v2792_v13 = vsub.f32 %v2778_v4, %v2788_v46  ;;  %v5739_v32 = vld [vmem:[#allocation12_spill] sm:$0xff] }
0x1185   :  { %v2793_v18 = vmul.f32 %v2789_v27, %v2789_v27  ;;  %v2794_v38 = vmul.f32 %v2790_v49, %v2790_v49  ;;  %v2795_v40 = vmul.f32 %v2791_v1, %v2791_v1  ;;  %v2796_v11 = vmul.f32 %v2792_v13, %v2792_v13 }
0x1187   :  { %v2797_v17 = vadd.f32 %v2794_v38, %v2793_v18  ;;  %v5745_v18 = vld [vmem:[#allocation26_spill] sm:$0xff] }
0x1189   :  { %v2798_v0 = vadd.f32 %v2797_v17, %v2795_v40  ;;  %v5746_v40 = vld [vmem:[#allocation28_spill] sm:$0xff] }
0x118b   :  { %v2799_v8 = vadd.f32 %v2798_v0, %v2796_v11 }
0x118d   :  { %2800 = vadd.xlane.f32.xlu1 %v2799_v8 }
0x119e   :  { %2819 = vperm.xlu1 %3265, %v2816_v6  }
0x121a   :  { %v2801_v63 = vpop.xlane.xlu1 %2800 }
0x121b   :  { %v2802_v14 = vmul.f32 0.001953125, %v2801_v63 }
0x121d   :  { %v2803_v5 = vadd.f32 1e-05, %v2802_v14 }
0x121e   :  { %v2820_v20 = vpop.permute.xlu1 %2819 }
0x121f   :  { %3282 = vrsqrt.f32 %v2803_v5 }
0x1229   :  { %v3283_v33 = vpop.eup %3282 }
0x122a   :  { %v2806_v16 = vmul.f32 %v3283_v33, %v2805_v9  ;;  %v5749_v33 = vld [vmem:[#allocation13_spill] sm:$0xff] }
0x122c   :  { %2809 = vperm.xlu0 %3266, %v2806_v16  }
0x12ab   :  { %v2810_v19 = vpop.permute.xlu0 %2809 }
0x12ac   :  { %v2812_v21 = vmul.f32 %v2810_v19, %v2789_v27  ;;  %v2813_v24 = vmul.f32 %v2810_v19, %v2790_v49  ;;  %v2815_v25 = vmul.f32 %v2810_v19, %v2792_v13  ;;  %v2814_v3 = vmul.f32 %v2810_v19, %v2791_v1  ;;  %v5743_v27 = vld [vmem:[#allocation17_spill] sm:$0xff]  ;;  %v5744_v1 = vld [vmem:[#allocation18_spill] sm:$0xff] }
0x12ad   :  { %v5750_v19 = vld [vmem:[#allocation21_spill] sm:$0xff] }
0x12ae   :  { %v2822_v29 = vadd.f32 %v2820_v20, %v2812_v21  ;;  %v2823_v28 = vadd.f32 %v2820_v20, %v2813_v24  ;;  %v2825_v35 = vadd.f32 %v2820_v20, %v2815_v25  ;;  %v2824_v52 = vadd.f32 %v2820_v20, %v2814_v3  ;;  %v5753_v3 = vld [vmem:[#allocation30_spill] sm:$0xff] }
0x12b0   :  { %v5244_v53 = vmax.f32 %v2822_v29, 0.0  ;;  %v5246_v22 = vmax.f32 %v2823_v28, 0.0  ;;  %v5256_v37 = vmax.f32 %v2825_v35, 0.0  ;;  %v5262_v47 = vmax.f32 %v2824_v52, 0.0  ;;  %v5754_v52 = vld [vmem:[#allocation19_spill] sm:$0xff] }
0x12b2   :  { %2832 = vrot.lane.b32.xlu1 %v5246_v22, %s3295_s5  ;;  %2830 = vrot.lane.b32.xlu0 %v5244_v53, %s3295_s5 }
0x12b6   :  { %2848 = vrot.lane.b32.xlu1 %v5246_v22, %s3292_s4  ;;  %2846 = vrot.lane.b32.xlu0 %v5244_v53, %s3292_s4 }
0x12ba   :  { %2852 = vrot.lane.b32.xlu1 %v5256_v37, %s3292_s4  ;;  %2836 = vrot.lane.b32.xlu0 %v5256_v37, %s3295_s5 }
0x12be   :  { %2850 = vrot.lane.b32.xlu1 %v5262_v47, %s3292_s4  ;;  %2834 = vrot.lane.b32.xlu0 %v5262_v47, %s3295_s5  ;;  %s5734_s4 = smov 111  }
0x12c2   :  { %2864 = vrot.lane.b32.xlu1 %v5246_v22, %s3296_s26  ;;  %2862 = vrot.lane.b32.xlu0 %v5244_v53, %s3296_s26 }
0x12c6   :  { %2880 = vrot.lane.b32.xlu1 %v5246_v22, %s3297_s3  ;;  %2878 = vrot.lane.b32.xlu0 %v5244_v53, %s3297_s3 }
0x12ca   :  { %2884 = vrot.lane.b32.xlu1 %v5256_v37, %s3297_s3  ;;  %2868 = vrot.lane.b32.xlu0 %v5256_v37, %s3296_s26 }
0x12ce   :  { %2882 = vrot.lane.b32.xlu1 %v5262_v47, %s3297_s3  ;;  %2866 = vrot.lane.b32.xlu0 %v5262_v47, %s3296_s26 }
0x12d2   :  { %2898 = vrot.lane.b32.xlu1 %v5262_v47, %s3293_s30  ;;  %2896 = vrot.lane.b32.xlu0 %v5246_v22, %s3293_s30 }
0x12d6   :  { %2900 = vrot.lane.b32.xlu1 %v5256_v37, %s3293_s30  ;;  %2894 = vrot.lane.b32.xlu0 %v5244_v53, %s3293_s30 }
0x12da   :  { %2914 = vrot.lane.b32.xlu1 %v5262_v47, %s5732_s20  ;;  %2912 = vrot.lane.b32.xlu0 %v5246_v22, %s5732_s20 }
0x12de   :  { %2930 = vrot.lane.b32.xlu1 %v5262_v47, %s5733_s21  ;;  %2928 = vrot.lane.b32.xlu0 %v5246_v22, %s5733_s21 }
0x12e2   :  { %2926 = vrot.lane.b32.xlu1 %v5244_v53, %s5733_s21  ;;  %2910 = vrot.lane.b32.xlu0 %v5244_v53, %s5732_s20 }
0x12e6   :  { %2932 = vrot.lane.b32.xlu1 %v5256_v37, %s5733_s21  ;;  %2916 = vrot.lane.b32.xlu0 %v5256_v37, %s5732_s20 }
0x12ea   :  { %2944 = vrot.lane.b32.xlu1 %v5246_v22, %s5734_s4  ;;  %2942 = vrot.lane.b32.xlu0 %v5244_v53, %s5734_s4 }
0x12ee   :  { %2948 = vrot.lane.b32.xlu1 %v5256_v37, %s5734_s4  ;;  %2946 = vrot.lane.b32.xlu0 %v5262_v47, %s5734_s4 }
0x1324   :  { %v2833_v48 = vpop.permute.xlu1 %2832  ;;  %v2831_v41 = vpop.permute.xlu0 %2830 }
0x1325   :  { %v2840_v51 = vsel %vm300_vm14, %v2831_v41, %v2833_v48 }
0x1326   :  { %v2843_v55 = vmul.f32 %v2840_v51, %v5736_v31 }
0x1328   :  { %v2849_v60 = vpop.permute.xlu1 %2848  ;;  %v2847_v30 = vpop.permute.xlu0 %2846 }
0x1329   :  { %v2856_v7 = vsel %vm5735_vm1, %v2847_v30, %v2849_v60  ;;  %vm5767_vm1 = vmmov %vm5766_vm0 }
0x132a   :  { %v2859_v43 = vmul.f32 %v2856_v7, %v5737_v10  ;;  %v5759_v10 = vld [vmem:[#allocation35_spill] sm:$0xff] }
0x132c   :  { %v2853_v42 = vpop.permute.xlu1 %2852  ;;  %v2837_v12 = vpop.permute.xlu0 %2836  ;;  %v2959_v34 = vpack.c.bf16 %v2859_v43, %v2843_v55 }
0x132d   :  { %v2857_v62 = vsel %vm5738_vm6, %v2853_v42, %v2847_v30  ;;  %v2841_v23 = vsel %vm300_vm14, %v2837_v12, %v2831_v41  ;;  %vm5771_vm6 = vcmp.lt.s32.totalorder %v3623_v36, 113 }
0x132e   :  { %v2858_v4 = vmul.f32 %v2857_v62, %v5739_v32  ;;  %v2842_v58 = vmul.f32 %v2841_v23, %v5740_v2  ;;  %2995 = vmatprep.subr.bf16.mxu0 %v2959_v34  ;;  %v5761_v34 = vld [vmem:[#allocation23_spill] sm:$0xff]  ;;  %v5762_v23 = vld [vmem:[#allocation24_spill] sm:$0xff] }
0x1330   :  { %v2958_v56 = vpack.c.bf16 %v2858_v4, %v2842_v58  ;;  %v2851_v61 = vpop.permute.xlu1 %2850  ;;  %v2835_v15 = vpop.permute.xlu0 %2834 }
0x1331   :  { %v2854_v59 = vsel %vm5741_vm9, %v2851_v61, %v2853_v42  ;;  %v2855_v54 = vsel %vm5742_vm5, %v2849_v60, %v2851_v61  ;;  %v2838_v26 = vsel %vm300_vm14, %v2835_v15, %v2837_v12  ;;  %v2839_v46 = vsel %vm300_vm14, %v2833_v48, %v2835_v15  ;;  %v5760_v42 = vld [vmem:[#allocation36_spill] sm:$0xff]  ;;  %v5764_v15 = vld [vmem:[#allocation11_spill] sm:$0xff] }
0x1332   :  { %v2860_v49 = vmul.f32 %v2855_v54, %v5743_v27  ;;  %v2861_v13 = vmul.f32 %v2854_v59, %v5744_v1  ;;  %v2844_v38 = vmul.f32 %v2839_v46, %v5745_v18  ;;  %v2845_v17 = vmul.f32 %v2838_v26, %v5746_v40  ;;  %2996 = vmatpush1.bf16.msra.mxu0 %v2958_v56 }
0x1333   :  { %vm5748_vm14 = vcmp.lt.s32.totalorder %v3623_v36, 1  ;;  %vm5772_vm9 = vcmp.lt.s32.totalorder %v3623_v36, 112 }
0x1334   :  { %v2960_v11 = vpack.c.bf16 %v2860_v49, %v2844_v38  ;;  %v2865_v0 = vpop.permute.xlu1 %2864  ;;  %v2863_v8 = vpop.permute.xlu0 %2862  ;;  %v2961_v6 = vpack.c.bf16 %v2861_v13, %v2845_v17  ;;  %vm5751_vm8 = vmmov %vm5748_vm14  ;;  %v5768_v13 = vld [vmem:[#allocation20_spill] sm:$0xff]  ;;  %v5769_v38 = vld [vmem:[#allocation10_spill] sm:$0xff] }
0x1335   :  { %v2872_v63 = vsel %vm5747_vm10, %v2863_v8, %v2865_v0  ;;  %vm5755_vm7 = vmmov %vm5751_vm8  ;;  %v5770_v17 = vld [vmem:[#allocation22_spill] sm:$0xff] }
0x1336   :  { %3036 = vmatprep.subr.bf16.mxu1 %v2961_v6  ;;  %v2875_v16 = vmul.f32 %v2872_v63, %v5749_v33  ;;  %vm5756_vm11 = vmmov %vm5755_vm7 }
0x1337   :  { %3037 = vmatpush1.bf16.msra.mxu1 %v2960_v11  ;;  %vm5775_vm5 = vmmov %vm5772_vm9 }
0x1338   :  { %v2881_v14 = vpop.permute.xlu1 %2880  ;;  %v2879_v5 = vpop.permute.xlu0 %2878  ;;  %vm5776_vm10 = vmmov %vm5771_vm6 }
0x1339   :  { %v2888_v9 = vsel %vm5748_vm14, %v2879_v5, %v2881_v14  ;;  %vm5779_vm14 = vmmov %vm5775_vm5 }
0x133a   :  { %v2891_v21 = vmul.f32 %v2888_v9, %v5750_v19 }
0x133c   :  { %v2885_v24 = vpop.permute.xlu1 %2884  ;;  %v2869_v20 = vpop.permute.xlu0 %2868  ;;  %v2963_v29 = vpack.c.bf16 %v2891_v21, %v2875_v16  ;;  %v5773_v16 = vld [vmem:[#allocation15_spill] sm:$0xff] }
0x133d   :  { %v2889_v28 = vsel %vm5751_vm8, %v2885_v24, %v2879_v5  ;;  %v2873_v25 = vsel %vm5752_vm2, %v2869_v20, %v2863_v8  ;;  %vm5780_vm8 = vmmov %vm5775_vm5 }
0x133e   :  { %v2890_v35 = vmul.f32 %v2889_v28, %v5753_v3  ;;  %v2874_v48 = vmul.f32 %v2873_v25, %v5754_v52  ;;  %2997 = vmatprep.subr.bf16.mxu0 %v2963_v29  ;;  %v5777_v28 = vld [vmem:[#allocation31_spill] sm:$0xff]  ;;  %v5778_v3 = vld [vmem:[#allocation14_spill] sm:$0xff]  ;;  %vm5781_vm2 = vmmov %vm5771_vm6 }
0x1340   :  { %v2962_v41 = vpack.c.bf16 %v2890_v35, %v2874_v48  ;;  %v2883_v51 = vpop.permute.xlu1 %2882  ;;  %v2867_v60 = vpop.permute.xlu0 %2866 }
0x1341   :  { %v2886_v30 = vsel %vm5755_vm7, %v2883_v51, %v2885_v24  ;;  %v2887_v7 = vsel %vm5756_vm11, %v2881_v14, %v2883_v51  ;;  %v2870_v31 = vsel %vm5757_vm12, %v2867_v60, %v2869_v20  ;;  %v2871_v55 = vsel %vm5758_vm3, %v2865_v0, %v2867_v60  ;;  %vm5782_vm7 = vmmov %vm5781_vm2 }
0x1342   :  { %v2892_v43 = vmul.f32 %v2887_v7, %v5759_v10  ;;  %v2893_v12 = vmul.f32 %v2886_v30, %v5760_v42  ;;  %v2876_v62 = vmul.f32 %v2871_v55, %v5761_v34  ;;  %v2877_v32 = vmul.f32 %v2870_v31, %v5762_v23  ;;  %2998 = vmatpush1.bf16.msra.mxu0 %v2962_v41  ;;  %v5783_v31 = vld [vmem:[#allocation29_spill] sm:$0xff]  ;;  %v5784_v10 = vld [vmem:[#allocation32_spill] sm:$0xff]  ;;  %v5786_v34 = vld [vmem:[#allocation34_spill] sm:$0xff] }
0x1343   :  { %v5785_v42 = vld [vmem:[#allocation33_spill] sm:$0xff]  ;;  %vm5787_vm11 = vcmp.lt.s32.totalorder %v3623_v36, 111  ;;  %v2978_v36 = vld [vmem:[%s5478_s22] sm:$0xf] }
0x1344   :  { %v2964_v4 = vpack.c.bf16 %v2892_v43, %v2876_v62  ;;  %v2899_v2 = vpop.permute.xlu1 %2898  ;;  %v2897_v58 = vpop.permute.xlu0 %2896  ;;  %v2965_v56 = vpack.c.bf16 %v2893_v12, %v2877_v32  ;;  %vm5789_vm12 = vmmov %vm5787_vm11 }
0x1345   :  { %v2903_v61 = vsel %vm5763_vm13, %v2897_v58, %v2899_v2  ;;  %vm5790_vm3 = vmmov %vm5787_vm11 }
0x1346   :  { %v2907_v59 = vmul.f32 %v2903_v61, %v5764_v15  ;;  %3038 = vmatprep.subr.bf16.mxu1 %v2965_v56  ;;  %v5788_v56 = vld [vmem:[#allocation37_spill] sm:$0xff]  ;;  %vm5791_vm13 = vmmov %vm5790_vm3 }
0x1347   :  { %3039 = vmatpush1.bf16.msra.mxu1 %v2964_v4 }
0x1348   :  { %v2901_v54 = vpop.permute.xlu1 %2900  ;;  %v2895_v26 = vpop.permute.xlu0 %2894  ;;  %v2967_v46 = vpack.c.bf16 %v2907_v59, %v5246_v22 }
0x1349   :  { %v2902_v27 = vsel %vm5765_vm4, %v2899_v2, %v2901_v54  ;;  %v2904_v49 = vsel %vm5766_vm0, %v2895_v26, %v2897_v58  ;;  %v2905_v1 = vsel %vm5767_vm1, %v2901_v54, %v2895_v26  ;;  %vm2979_vm4 = vcmask 588800  }
0x134a   :  { %v2908_v18 = vmul.f32 %v2902_v27, %v5768_v13  ;;  %v2906_v40 = vmul.f32 %v2904_v49, %v5769_v38  ;;  %v2909_v11 = vmul.f32 %v2905_v1, %v5770_v17  ;;  %2999 = vmatprep.subr.bf16.mxu0 %v2967_v46  ;;  %v5792_v49 = vld [vmem:[#allocation38_spill] sm:$0xff]  ;;  %v5793_v13 = vld [vmem:[#allocation8_spill] sm:$0xff]  ;;  %v5794_v38 = vld [vmem:[#allocation39_spill] sm:$0xff] }
0x134c   :  { %v2968_v0 = vpack.c.bf16 %v2908_v18, %v5262_v47  ;;  %v2966_v22 = vpack.c.bf16 %v2906_v40, %v5244_v53  ;;  %v2915_v8 = vpop.permute.xlu1 %2914  ;;  %v2913_v6 = vpop.permute.xlu0 %2912  ;;  %v2969_v63 = vpack.c.bf16 %v2909_v11, %v5256_v37  ;;  %v5774_v47 = vld [vmem:[#allocation25_spill] sm:$0xff] }
0x134d   :  { %v2919_v14 = vsel %vm5771_vm6, %v2913_v6, %v2915_v8 }
0x134e   :  { %3000 = vmatpush1.bf16.msra.mxu0 %v2966_v22  ;;  %3040 = vmatprep.subr.bf16.mxu1 %v2969_v63  ;;  %v2923_v19 = vmul.f32 %v2919_v14, %v5773_v16  ;;  %v5795_v63 = vld [vmem:[#allocation6_spill] sm:$0xff]  ;;  %v5797_v14 = vld [vmem:[#allocation7_spill] sm:$0xff] }
0x134f   :  { %3041 = vmatpush1.bf16.msra.mxu1 %v2968_v0  ;;  %vm5796_vm1 = vcmp.ge.s32.totalorder %v5795_v63, 1 }
0x1350   :  { %v2931_v5 = vpop.permute.xlu1 %2930  ;;  %v2929_v9 = vpop.permute.xlu0 %2928 }
0x1351   :  { %v2935_v33 = vsel %vm5772_vm9, %v2929_v9, %v2931_v5  ;;  %vm5798_vm9 = vcmp.ge.s32.totalorder %v5797_v14, 1 }
0x1352   :  { %v2939_v21 = vmul.f32 %v2935_v33, %v5774_v47 }
0x1354   :  { %v2927_v53 = vpop.permute.xlu1 %2926  ;;  %v2911_v24 = vpop.permute.xlu0 %2910  ;;  %v2971_v20 = vpack.c.bf16 %v2939_v21, %v2923_v19 }
0x1355   :  { %v2936_v37 = vsel %vm5775_vm5, %v2927_v53, %v2929_v9  ;;  %v2920_v29 = vsel %vm5776_vm10, %v2911_v24, %v2913_v6  ;;  %v3288_v6 = vld [vmem:[%s5609_s8] sm:$0xf] }
0x1356   :  { %v2938_v25 = vmul.f32 %v2936_v37, %v5777_v28  ;;  %v2922_v35 = vmul.f32 %v2920_v29, %v5778_v3  ;;  %3001 = vmatprep.subr.bf16.mxu0 %v2971_v20  ;;  %vm3077_vm0 = vcmp.le.s32.totalorder %v3288_v6, 14 }
0x1357   :  { %vm3078_vm6 = vmand %vm5796_vm1, %vm3077_vm0 }
0x1358   :  { %v2970_v52 = vpack.c.bf16 %v2938_v25, %v2922_v35  ;;  %v2933_v48 = vpop.permute.xlu1 %2932  ;;  %v2917_v41 = vpop.permute.xlu0 %2916 }
0x1359   :  { %v2934_v51 = vsel %vm5779_vm14, %v2931_v5, %v2933_v48  ;;  %v2937_v60 = vsel %vm5780_vm8, %v2933_v48, %v2927_v53  ;;  %v2918_v30 = vsel %vm5781_vm2, %v2915_v8, %v2917_v41  ;;  %v2921_v7 = vsel %vm5782_vm7, %v2917_v41, %v2911_v24  ;;  %v3289_v5 = vld [vmem:[%s5611_s1] sm:$0xf] }
0x135a   :  { %v2940_v55 = vmul.f32 %v2934_v51, %v5783_v31  ;;  %v2941_v43 = vmul.f32 %v2937_v60, %v5784_v10  ;;  %v2924_v12 = vmul.f32 %v2918_v30, %v5785_v42  ;;  %v2925_v62 = vmul.f32 %v2921_v7, %v5786_v34  ;;  %3002 = vmatpush1.bf16.msra.mxu0 %v2970_v52 }
0x135b   :  { %vm3080_vm5 = vcmp.le.s32.totalorder %v3289_v5, 14 }
0x135c   :  { %v2972_v23 = vpack.c.bf16 %v2940_v55, %v2924_v12  ;;  %v2945_v32 = vpop.permute.xlu1 %2944  ;;  %v2943_v4 = vpop.permute.xlu0 %2942  ;;  %v2973_v2 = vpack.c.bf16 %v2941_v43, %v2925_v62 }
0x135d   :  { %v2952_v58 = vsel %vm5787_vm11, %v2943_v4, %v2945_v32 }
0x135e   :  { %v2954_v61 = vmul.f32 %v2952_v58, %v5788_v56  ;;  %3042 = vmatprep.subr.bf16.mxu1 %v2973_v2 }
0x135f   :  { %3043 = vmatpush1.bf16.msra.mxu1 %v2972_v23 }
0x1360   :  { %v2949_v15 = vpop.permute.xlu1 %2948  ;;  %v2947_v59 = vpop.permute.xlu0 %2946  ;;  %v2974_v27 = vpack.c.bf16 %v2954_v61, %v2954_v61  ;;  %v3135_v61 = vld [vmem:[%s5480_s23] sm:$0xff] }
0x1361   :  { %v2953_v54 = vsel %vm5789_vm12, %v2949_v15, %v2943_v4  ;;  %v2950_v26 = vsel %vm5790_vm3, %v2947_v59, %v2949_v15  ;;  %v2951_v46 = vsel %vm5791_vm13, %v2945_v32, %v2947_v59  ;;  %v3146_v4 = vld [vmem:[%s5479_s24] sm:$0xff] }
0x1362   :  { %v2957_v1 = vmul.f32 %v2953_v54, %v5792_v49  ;;  %v2955_v18 = vmul.f32 %v2951_v46, %v5793_v13  ;;  %v2956_v40 = vmul.f32 %v2950_v26, %v5794_v38  ;;  %v2984_v22 = vsel %vm696_vm15, %v2974_v27, 0 }
0x1364   :  { %v2977_v17 = vpack.c.bf16 %v2957_v1, %v2957_v1  ;;  %v2975_v11 = vpack.c.bf16 %v2955_v18, %v2955_v18  ;;  %v2976_v0 = vpack.c.bf16 %v2956_v40, %v2956_v40 }
0x1366   :  { %3228 = vmatprep.subr.msk.bf16.mxu0 %vm696_vm15, %v2975_v11  ;;  %3230 = vmatprep.subr.msk.bf16.mxu1 %vm696_vm15, %v2977_v17  ;;  %v2990_v8 = vsel %vm696_vm15, %v2976_v0, 0  ;;  %vm3079_vm15 = vmand %vm3078_vm6, %vm5798_vm9 }
0x1367   :  { %3004 = vmatpush1.bf16.msra.mxu0 %v2984_v22  ;;  %3045 = vmatpush1.bf16.msra.mxu1 %v2990_v8  ;;  %vm3081_vm10 = vmand %vm3079_vm15, %vm3080_vm5 }
0x1368   :  { %v3232_v9 = vsel %vm3081_vm10, 1.0, %v5640_v50 }
0x1369   :  { %v3088_v33 = vrot.slane %v3232_v9, %v3634_v39  ;;  %v3092_v16 = vrot.slane %v3232_v9, %v5645_v57  ;;  %v3096_v19 = vrot.slane %v3232_v9, %v3655_v44  ;;  %v3100_v25 = vrot.slane %v3232_v9, %v3658_v45 }
0x136a   :  { %3229 = vmatmul.mubr.msk.bf16.vlgmr.msra.gmra.mrb[24].mxu0 %vm2979_vm4, %v2978_v36  ;;  %3231 = vmatmul.mubr.msk.bf16.vlgmr.msra.gmra.mrb[24].mxu1 %vm2979_vm4, %v2978_v36 }
0x143d   :  { %v3029_v47 = vpop.f32.mrb[24].mxu0  ;;  %v3070_v21 = vpop.f32.mrb[24].mxu1 }
0x143e   :  { %v3105_v53 = vmul.f32 %v3088_v33, %v3029_v47  ;;  %v3031_v24 = vpop.f32.mrb[25].mxu0  ;;  %v3072_v20 = vpop.f32.mrb[25].mxu1  ;;  %v3107_v29 = vmul.f32 %v3096_v19, %v3070_v21 }
0x143f   :  { %v3106_v37 = vmul.f32 %v3092_v16, %v3031_v24  ;;  %v3033_v28 = vpop.f32.mrb[26].mxu0  ;;  %v3074_v3 = vpop.f32.mrb[26].mxu1  ;;  %v3108_v39 = vmul.f32 %v3100_v25, %v3072_v20 }
0x1440   :  { %v3034_v35 = vpop.f32.mrb[27].mxu0  ;;  %v3075_v52 = vpop.f32.mrb[27].mxu1 }
0x1441   :  { %v3109_v50 = vadd.f32 %v3106_v37, %v3105_v53 }
0x1443   :  { %v3110_v48 = vadd.f32 %v3109_v50, %v3107_v29 }
0x1445   :  { %v3111_v41 = vadd.f32 %v3110_v48, %v3108_v39 }
0x1447   :  { %3112 = vadd.xlane.f32.xlu0 %v3111_v41 }
0x14d4   :  { %v3113_v57 = vpop.xlane.xlu0 %3112 }
0x14d5   :  { %v3114_v44 = vmul.f32 0.0025510204, %v3113_v57 }
0x14d7   :  { %v3115_v51 = vsub.f32 %v3029_v47, %v3114_v44  ;;  %v3116_v60 = vsub.f32 %v3031_v24, %v3114_v44  ;;  %v3117_v30 = vsub.f32 %v3070_v21, %v3114_v44  ;;  %v3118_v7 = vsub.f32 %v3072_v20, %v3114_v44 }
0x14d9   :  { %v3119_v31 = vmul.f32 %v3115_v51, %v3088_v33  ;;  %v3120_v55 = vmul.f32 %v3116_v60, %v3092_v16  ;;  %v3121_v10 = vmul.f32 %v3117_v30, %v3096_v19  ;;  %v3122_v43 = vmul.f32 %v3118_v7, %v3100_v25 }
0x14db   :  { %v3123_v42 = vmul.f32 %v3119_v31, %v3119_v31  ;;  %v3124_v45 = vmul.f32 %v3120_v55, %v3120_v55  ;;  %v3125_v12 = vmul.f32 %v3121_v10, %v3121_v10  ;;  %v3126_v62 = vmul.f32 %v3122_v43, %v3122_v43 }
0x14dd   :  { %v3127_v34 = vadd.f32 %v3124_v45, %v3123_v42 }
0x14df   :  { %v3128_v23 = vadd.f32 %v3127_v34, %v3125_v12 }
0x14e1   :  { %v3129_v32 = vadd.f32 %v3128_v23, %v3126_v62 }
0x14e3   :  { %3130 = vadd.xlane.f32.xlu1 %v3129_v32 }
0x14f4   :  { %3149 = vperm.xlu1 %3265, %v3146_v4  }
0x1570   :  { %v3131_v2 = vpop.xlane.xlu1 %3130 }
0x1571   :  { %v3132_v58 = vmul.f32 0.0025510204, %v3131_v2 }
0x1573   :  { %v3133_v56 = vadd.f32 1e-05, %v3132_v58 }
0x1574   :  { %v3150_v1 = vpop.permute.xlu1 %3149 }
0x1575   :  { %3284 = vrsqrt.f32 %v3133_v56 }
0x157f   :  { %v3285_v15 = vpop.eup %3284 }
0x1580   :  { %v3136_v59 = vmul.f32 %v3285_v15, %v3135_v61 }
0x1582   :  { %3139 = vperm.xlu0 %3266, %v3136_v59  }
0x1601   :  { %v3140_v54 = vpop.permute.xlu0 %3139 }
0x1602   :  { %v3142_v26 = vmul.f32 %v3140_v54, %v3115_v51  ;;  %v3143_v46 = vmul.f32 %v3140_v54, %v3116_v60  ;;  %v3144_v27 = vmul.f32 %v3140_v54, %v3117_v30  ;;  %v3145_v49 = vmul.f32 %v3140_v54, %v3118_v7 }
0x1604   :  { %v3152_v13 = vadd.f32 %v3150_v1, %v3142_v26  ;;  %v3153_v18 = vadd.f32 %v3150_v1, %v3143_v46  ;;  %v3154_v38 = vadd.f32 %v3150_v1, %v3144_v27  ;;  %v3155_v40 = vadd.f32 %v3150_v1, %v3145_v49 }
0x1606   :  { %v3156_v17 = vmax.f32 %v3152_v13, 0.0  ;;  %v3157_v11 = vmax.f32 %v3153_v18, 0.0  ;;  %v3158_v0 = vmax.f32 %v3154_v38, 0.0  ;;  %v3159_v22 = vmax.f32 %v3155_v40, 0.0 }
0x1608   :  { %3160 = vst [vmem:[%s5481_s25] sm:$0xff] %v3156_v17  ;;  %3161 = vst [vmem:[%s5481_s25 + $0x8] sm:$0xff] %v3157_v11 }
0x1609   :  { %3162 = vst [vmem:[%s5481_s25 + $0x10] sm:$0xff] %v3158_v0  ;;  %3163 = vst [vmem:[%s5481_s25 + $0x18] sm:$0xff] %v3159_v22 }

</bundles_post_ra>
